<compile_context>
chip_gen: v6e
topology: v6e:2x2x1
jax: 0.10.0
libtpu: 0.0.40
codegen_flags: <defaults>
</compile_context>

<pallas_src>
import functools

import jax
import jax.numpy as jnp
from jax.experimental import pallas as pl
from jax.experimental.pallas import tpu as pltpu

IN_FEATURES = 1632          # fc input dim from the module definition
NUM_CLASSES = 8631          # config['num_classes']
TILE_N = 1024               # class-dim tile (multiple of 128 lanes)
WEIGHT_DTYPE = jnp.bfloat16  # streamed weight dtype (f32 accumulate on MXU)


def _fc_kernel(x_ref, w_ref, b_ref, o_ref):
    # x_ref: [B, K]   bf16 (full block, resident across the grid)
    # w_ref: [K, TN]  bf16 (one class tile of the weight)
    # b_ref: [1, TN]  f32
    # o_ref: [B, TN]  f32
    acc = jnp.dot(x_ref[...], w_ref[...], preferred_element_type=jnp.float32)
    o_ref[...] = (acc + b_ref[...]).astype(o_ref.dtype)


def prepare_fc_params(w, b, tile_n=TILE_N, dtype=WEIGHT_DTYPE):
    """One-time parameter prep (NOT in the hot path).

    Pads the class dim to a multiple of `tile_n` (padded columns stay zero so
    the final slice is exact) and casts the weight to the streaming dtype.
    """
    k, n = w.shape
    n_pad = pl.cdiv(n, tile_n) * tile_n
    w_p = jnp.pad(w, ((0, 0), (0, n_pad - n))).astype(dtype)
    b_p = jnp.pad(b, (0, n_pad - n)).astype(jnp.float32).reshape(1, n_pad)
    return w_p, b_p


@functools.partial(jax.jit, static_argnames=("num_classes",))
def classifier_forward(x, w_padded, b_padded, num_classes):
    """x: [B, 1632] f32, w_padded: [1632, Npad] bf16, b_padded: [1, Npad] f32."""
    B, K = x.shape
    n_pad = w_padded.shape[1]
    grid = (n_pad // TILE_N,)

    # x is tiny (B x 1632); cast once so the MXU runs a clean bf16 matmul.
    x_in = x.astype(w_padded.dtype)

    out_p = pl.pallas_call(
        _fc_kernel,
        out_shape=jax.ShapeDtypeStruct((B, n_pad), jnp.float32),
        grid_spec=pltpu.PrefetchScalarGridSpec(
            num_scalar_prefetch=0,
            grid=grid,
            in_specs=[
                pl.BlockSpec((B, K), lambda j: (0, 0)),        # feats (whole)
                pl.BlockSpec((K, TILE_N), lambda j: (0, j)),   # weight tile
                pl.BlockSpec((1, TILE_N), lambda j: (0, j)),   # bias tile
            ],
            out_specs=pl.BlockSpec((B, TILE_N), lambda j: (0, j)),
        ),
        compiler_params=pltpu.CompilerParams(
            dimension_semantics=("parallel",),
        ),
    )(x_in, w_padded, b_padded)

    out = out_p[:, :num_classes]
    # Matches the PyTorch module's return value (backbone == identity here).
    return {"feats": x, "out": out}


def init_fc_params(key, in_features, num_classes, dtype=jnp.float32):
    """Deterministic init matching nn.Linear's default U(-1/sqrt(in), 1/sqrt(in)).

    Note: PyTorch stores weight as [out, in]; we store it transposed [in, out]
    so the kernel does feats @ W directly.
    """
    k_w, k_b = jax.random.split(key)
    bound = 1.0 / jnp.sqrt(jnp.asarray(in_features, dtype))
    w = jax.random.uniform(k_w, (in_features, num_classes), dtype,
                           minval=-bound, maxval=bound)
    b = jax.random.uniform(k_b, (num_classes,), dtype,
                           minval=-bound, maxval=bound)
    return w, b


if __name__ == "__main__":
    key = jax.random.PRNGKey(0)
    k_x, k_p = jax.random.split(key)

    batch = 8  # small batch for the demo
    # Backbone treated as identity -> input is already the 1632-dim feature vec.
    x = jax.random.normal(k_x, (batch, IN_FEATURES), dtype=jnp.float32)
    w, b = init_fc_params(k_p, IN_FEATURES, NUM_CLASSES)

    # One-time parameter prep (padding + bf16 cast) -- outside the forward.
    w_p, b_p = prepare_fc_params(w, b)

    result = classifier_forward(x, w_p, b_p, NUM_CLASSES)
    jax.block_until_ready(result)

    # Reference with the same bf16 weight/input quantization (f32 accumulate).
    x_q = x.astype(WEIGHT_DTYPE).astype(jnp.float32)
    w_q = w_p.astype(jnp.float32)[:, :NUM_CLASSES]
    ref_out = x_q @ w_q + b

    assert result["out"].shape == (batch, NUM_CLASSES)
    assert result["feats"].shape == (batch, IN_FEATURES)
    assert jnp.allclose(result["out"], ref_out, atol=1e-2, rtol=1e-2)
    assert jnp.allclose(result["feats"], x)

    print("KERNEL_OK")
</pallas_src>

<mosaic_0001>
module attributes {stable_mosaic.version = 11 : i64} {
  func.func @_fc_kernel(%arg0: i32, %arg1: memref<8x1632xbf16, #tpu.memory_space<vmem>>, %arg2: memref<1632x1024xbf16, #tpu.memory_space<vmem>>, %arg3: memref<1x1024xf32, #tpu.memory_space<vmem>>, %arg4: memref<8x1024xf32, #tpu.memory_space<vmem>>) attributes {dimension_semantics = [#tpu.dimension_semantics<parallel>], iteration_bounds = array<i64: 9>, scalar_prefetch = 0 : i64, scratch_operands = 0 : i64, tpu.core_type = #tpu.core_type<tc>, window_params = [{pipeline_mode = #tpu.pipeline_mode<synchronous>, transform_indices = @transform_0, window_bounds = array<i64: 8, 1632>}, {transform_indices = @transform_1, window_bounds = array<i64: 1632, 1024>}, {transform_indices = @transform_2, window_bounds = array<i64: 1, 1024>}, {transform_indices = @transform_3, window_bounds = array<i64: 8, 1024>}]} {
    %c0 = arith.constant 0 : index
    %c0_0 = arith.constant 0 : index
    %0 = vector.load %arg1[%c0, %c0_0] : memref<8x1632xbf16, #tpu.memory_space<vmem>>, vector<8x1632xbf16>
    %c0_1 = arith.constant 0 : index
    %c0_2 = arith.constant 0 : index
    %1 = vector.load %arg2[%c0_1, %c0_2] : memref<1632x1024xbf16, #tpu.memory_space<vmem>>, vector<1632x1024xbf16>
    %cst = arith.constant dense<0.000000e+00> : vector<8x1024xf32>
    %2 = tpu.matmul %0, %1, %cst {dimension_numbers = #tpu.dot_dimension_numbers<[1], [0], [0], [1], [0, 0, 1, 1], [], []>} : vector<8x1632xbf16>, vector<1632x1024xbf16>, vector<8x1024xf32> -> vector<8x1024xf32>
    %c0_3 = arith.constant 0 : index
    %c0_4 = arith.constant 0 : index
    %3 = vector.load %arg3[%c0_3, %c0_4] : memref<1x1024xf32, #tpu.memory_space<vmem>>, vector<1x1024xf32>
    %4 = vector.broadcast %3 : vector<1x1024xf32> to vector<8x1024xf32>
    %5 = arith.addf %2, %4 : vector<8x1024xf32>
    %c0_5 = arith.constant 0 : index
    %c0_6 = arith.constant 0 : index
    %6 = vector.load %arg4[%c0_5, %c0_6] : memref<8x1024xf32, #tpu.memory_space<vmem>>, vector<8x1024xf32>
    tpu.vector_store %arg4[%c0_5, %c0_6], %5 {strides = array<i32>} : memref<8x1024xf32, #tpu.memory_space<vmem>>, vector<8x1024xf32>,
    return
  }
  func.func @transform_0(%arg0: i32) -> (i32, i32) {
    %c0_i32 = arith.constant 0 : i32
    %c0_i32_0 = arith.constant 0 : i32
    %c0_i32_1 = arith.constant 0 : i32
    return %c0_i32, %c0_i32_0 : i32, i32
  }
  func.func @transform_1(%arg0: i32) -> (i32, i32) {
    %c0_i32 = arith.constant 0 : i32
    %c0_i32_0 = arith.constant 0 : i32
    return %c0_i32, %arg0 : i32, i32
  }
  func.func @transform_2(%arg0: i32) -> (i32, i32) {
    %c0_i32 = arith.constant 0 : i32
    %c0_i32_0 = arith.constant 0 : i32
    return %c0_i32, %arg0 : i32, i32
  }
  func.func @transform_3(%arg0: i32) -> (i32, i32) {
    %c0_i32 = arith.constant 0 : i32
    %c0_i32_0 = arith.constant 0 : i32
    return %c0_i32, %arg0 : i32, i32
  }
}

</mosaic_0001>

<bundles_post_ra>
// kernel: classifier_forward.1
= control target key start
LH: loop header
LB: loop body
LE: loop exit
PB: predicated region body
PF: predicated region fallthrough
CT: control target
= control target key end

     0   :  { %8 = vsyncpa [#allocation3], 0  ;;  %s8715_s0 = inlined_call_operand.vmem [shape: bf16[8,1632], index: 0, kind: input, shape index: {}]   ;;  %s8716_s1 = inlined_call_operand.hbm [shape: bf16[1632,9216], index: 1, kind: input, shape index: {}]   ;;  %s8717_s2 = inlined_call_operand.hbm [shape: f32[1,9216], index: 2, kind: input, shape index: {}]   ;;  %s8718_s3 = inlined_call_operand.vmem [shape: f32[8,9216], index: 3, kind: output, shape index: {}]  }
   0x1   :  { %10 = vsyncpa [#allocation3 + $0x1], 0 }
   0x2   :  { %11 = vsyncpa [#allocation5], 0 }
   0x3   :  { %13 = vsyncpa [#allocation5 + $0x1], 0  ;;  %s7514_s12 = smov 0   ;;  %s7516_s13 = smov 0  }
   0x4   :  { %s7518_s14 = smov 0   ;;  %s7520_s15 = smov 0  }
   0x5 LB: > { %s6473_s16 = sadd.s32 4294967295, %s7486_s15   ;;  %s7534_s17 = sadd.s32 1, %s7486_s15   ;;  %s7486_s15 = sphi %s7520_s15, %s8728_s15   ;;  %s7482_s14 = sphi %s7518_s14, %s8727_s14   ;;  %s7478_s13 = sphi %s7516_s13, %s8726_s13   ;;  %s7474_s12 = sphi %s7514_s12, %s8725_s12  }
   0x6   : > { %s44_s18 = ssub.s32 %s7486_s15, %s7534_s17  ;;  %s47_s19 = sadd.s32 1, %s7482_s14 }
   0x7   : > { %p45_p0 = scmp.eq.s32.totalorder %s44_s18, 0  ;;  %p54_p1 = scmp.ne.s32.totalorder %s7482_s14, %s7478_s13 }
   0x8   : > { %p55_p2 = scmp.eq.s32.totalorder %s7486_s15, 0  ;;  %p60_p3 = scmp.ne.s32.totalorder %s7478_s13, %s7474_s12 }
   0x9   : > { %s7544_s20 = scalar_select %p45_p0, %s7482_s14, %s47_s19  }
   0xa   : > { %p56_p4 = por %p55_p2, %p54_p1  ;;  %p61_p5 = scmp.eq.s32.totalorder %s6473_s16, 0 }
   0xb   : > { %p7336_p6 = scmp.lt.s32.totalorder %s7486_s15, 9  ;;  %s7554_s22 = sand.u32 1, %s7482_s14  }
   0xc   : > { %p7549_p7 = por %p61_p5, %p60_p3  ;;  %s7323_s23 = smul.u32 6528, %s7554_s22 }
   0xd   : > { %s7321_s24 = sshll.u32 %s7486_s15, 9  ;;  %p7558_p8 = pnand %p7336_p6, %p56_p4 }
   0xe   : > { %s8720_s21 = scalar_select %p7549_p7, 1, 0 }
   0xf   : > { %s7565_s28 = scalar_lea.hbm %s8716_s1, %s7321_s24  ;;  %s143_s29 = scalar_lea.vmem [#allocation2], %s7323_s23 }
  0x10   : > { %s150_s30 = sshll.u32 %s143_s29, 4  ;;  %s140_s4 = scalar_lea.sflag [#allocation3], %s7554_s22  ;;  %s7567_s30 = int_to_ptr.vmem [resolvable:$true] %s150_s30 }
  0x11   : > { %s7392_s5 = scalar_lea.hbm %s7565_s28, 104448  ;;  %p7394_p10 = pneg %p7558_p8 }
  0x12   : > { %p7393_p9 = scmp.ne.s32.totalorder %s7565_s28, %s7392_s5  ;;  %s7397_s8 = scalar_lea.hbm %s8716_s1, 940032 }
  0x13   : > { %p7398_p13 = scmp.lt.s32.totalorder %s7565_s28, %s8716_s1  ;;  %p7399_p0 = scmp.lt.s32.totalorder %s7397_s8, %s7392_s5 }
  0x14   : > { %p7395_p11 = pnand %p7394_p10, %p7393_p9 }
  0x15   : > { %p7400_p1 = por %p7399_p0, %p7398_p13 }
  0x16   : > { %p7396_p12 = pneg %p7395_p11 }
  0x18   : > { %p7401_p2 = pnand %p7400_p1, %p7396_p12 }
  0x1a   : > { %7404 = shalt.err (!%p7401_p2)
}
  0x1b   : > { %s7405_s11 = scalar_lea.vmem %s7567_s30, 104448  ;;  %s7488_s12 = smov [#allocation2]  }
  0x1c   : > { %p7406_p3 = scmp.ne.s32.totalorder %s7567_s30, %s7405_s11  ;;  %s7410_s18 = sshll.u32 %s7488_s12, 4  ;;  %s7411_s18 = int_to_ptr.vmem [resolvable:$false] %s7410_s18 }
  0x1d   : > { %s7412_s19 = scalar_lea.vmem %s7411_s18, 208896  ;;  %p7413_p6 = scmp.lt.s32.totalorder %s7567_s30, %s7411_s18 }
  0x1e   : > { %p7408_p4 = pnand %p7406_p3, %p7394_p10  ;;  %p7414_p9 = scmp.lt.s32.totalorder %s7412_s19, %s7405_s11 }
  0x20   : > { %p7409_p5 = pneg %p7408_p4  ;;  %p7415_p11 = por %p7414_p9, %p7413_p6 }
  0x22   : > { %p7416_p13 = pnand %p7415_p11, %p7409_p5 }
  0x24   : > { %7419 = shalt.err (!%p7416_p13)
}
  0x25   : > { %s7489_s23 = smov 4608   ;;  %s7490_s24 = smov 512  }
  0x26   : > { %s7491_s26 = smov 32   ;;  %p6482_p12 = scmp.ge.s32.totalorder %s7486_s15, 1 }
  0x27   : > { %7332 = dma.hbm_to_vmem [thread:$0]  (!%p7558_p8), %s7565_s28, 104448, %s7567_s30, %s140_s4, %s7489_s23, %s7490_s24, %s7491_s26  }
  0x28   : > { %p177_p0 = scmp.lt.s32.totalorder %s7486_s15, 10  ;;  %s6479_s27 = sshll.u32 %s7554_s22, 3 }
  0x29   : > { %s7322_s5 = sshll.u32 %s7486_s15, 7  ;;  %s164_s6 = scalar_lea.vmem [#allocation4], %s6479_s27 }
  0x2a   : > { %p7599_p1 = pnand %p6482_p12, %p177_p0  ;;  %s172_s7 = sshll.u32 %s164_s6, 4  ;;  %s173_s7 = int_to_ptr.vmem [resolvable:$true] %s172_s7 }
  0x2b   : > { %s170_s10 = scalar_lea.hbm %s8717_s2, %s7322_s5  ;;  %s161_s11 = scalar_lea.sflag [#allocation5], %s7554_s22 }
  0x2c   : > { %s8722_s29 = scalar_select %p7599_p1, 1, 0 }
  0x2d   : > { %s7420_s12 = scalar_lea.hbm %s170_s10, 128  ;;  %s7425_s4 = scalar_lea.hbm %s8717_s2, 1152 }
  0x2e   : > { %p7421_p2 = scmp.ne.s32.totalorder %s170_s10, %s7420_s12  ;;  %p7426_p5 = scmp.lt.s32.totalorder %s170_s10, %s8717_s2 }
  0x2f   : > { %p7427_p6 = scmp.lt.s32.totalorder %s7425_s4, %s7420_s12 }
  0x30   : > { %p7423_p3 = pnand %p7421_p2, %p7394_p10 }
  0x31   : > { %p7428_p9 = por %p7427_p6, %p7426_p5 }
  0x32   : > { %p7424_p4 = pneg %p7423_p3 }
  0x34   : > { %p7429_p11 = pnand %p7428_p9, %p7424_p4 }
  0x36   : > { %7432 = shalt.err (!%p7429_p11)
}
  0x37   : > { %s7433_s23 = scalar_lea.vmem %s173_s7, 128  ;;  %s7492_s22 = smov [#allocation4]  }
  0x38   : > { %p7434_p13 = scmp.ne.s32.totalorder %s173_s7, %s7433_s23  ;;  %s7438_s24 = sshll.u32 %s7492_s22, 4  ;;  %s7439_s24 = int_to_ptr.vmem [resolvable:$false] %s7438_s24 }
  0x39   : > { %s7440_s26 = scalar_lea.vmem %s7439_s24, 256  ;;  %p7441_p2 = scmp.lt.s32.totalorder %s173_s7, %s7439_s24 }
  0x3a   : > { %p7436_p12 = pnand %p7434_p13, %p7394_p10  ;;  %p7442_p3 = scmp.lt.s32.totalorder %s7440_s26, %s7433_s23 }
  0x3c   : > { %p7437_p0 = pneg %p7436_p12  ;;  %p7443_p7 = por %p7442_p3, %p7441_p2 }
  0x3e   : > { %p7444_p1 = pnand %p7443_p7, %p7437_p0 }
  0x40   : > { %7447 = shalt.err (!%p7444_p1)
}
  0x41   : > { %7335 = dma.hbm_to_vmem [thread:$0]  (!%p7558_p8), %s170_s10, 128, %s173_s7, %s161_s11  }
  0x42   : > { %p8723_p4 = scmp.ne.s32.totalorder %s8722_s29, 0 }
  0x43   : > { %s183_s27 = sand.u32 (!%p8723_p4), 1, %s7478_s13   ;;  %p8724_p10 = scmp.ne.s32.totalorder (!%p8723_p4), %s8720_s21, 0 }
  0x44   : > { %181 = sbr.rel (%p8723_p4) target bundleno = 1100 (0x44c), region = 32  ;;  %s184_s6 = scalar_lea.sflag (!%p8723_p4), [#allocation3], %s183_s27 }
  0x45   : > { %s7324_s5 = smul.u32 (!%p8723_p4), 6528, %s183_s27 }
  0x47   : > { %s7625_s8 = scalar_lea.vmem (!%p8723_p4), [#allocation2], %s7324_s5 }
  0x49   : > { %7465 = dma.done.wait (%p8724_p10), %s184_s6, 104448  }
  0x4a   : > { %7467 = vsyncadd (%p8724_p10), %s184_s6, 4294862848  ;;  %s6483_s9 = sshll.u32 %s183_s27, 3  ;;  %s193_s12 = scalar_lea.sflag [#allocation5], %s183_s27 }
  0x4b   : > { %s7631_s25 = scalar_lea.vmem [#allocation4], %s6483_s9 }
  0x4c   : > { %7469 = dma.done.wait (%p8724_p10), %s193_s12, 128  }
  0x4d   : > { %7471 = vsyncadd (%p8724_p10), %s193_s12, 4294967168  ;;  %v296_v0 = vld [vmem:[%s7625_s8 + $0x1c0] sm:$0xff]  ;;  %v7673_v54 = vld [vmem:[%s8715_s0 + $0x8] sm:$0xff]  ;;  %vm5223_vm0 = vcmask 785408   ;;  %s6484_s27 = sshll.u32 %s6473_s16, 3 }
  0x4e   : > { %v300_v1 = vld [vmem:[%s7625_s8 + $0x1e0] sm:$0xff]  ;;  %v7683_v59 = vcombine.high %v7673_v54, %v7673_v54  ;;  %p227_p7 = scmp.lt.s32.totalorder %s6484_s27, 71 }
  0x4f   : > { %v424_v2 = vld [vmem:[%s7625_s8 + $0x5c0] sm:$0xff]  ;;  %v6556_v3 = vcombine.high %v296_v0, %v300_v1  ;;  %v6555_v5 = vcombine.low %v296_v0, %v300_v1 }
  0x50   : > { %v428_v4 = vld [vmem:[%s7625_s8 + $0x5e0] sm:$0xff]  ;;  %5300 = vmatprep.mubr.bf16.mxu1 %v7683_v59  ;;  %s8730_s27 = smov (!%p227_p7, %s6484_s27), 71 }
  0x51   : > { %v288_v6 = vld [vmem:[%s7625_s8 + $0x180] sm:$0xff]  ;;  %v6684_v8 = vcombine.high %v424_v2, %v428_v4  ;;  %v6683_v9 = vcombine.low %v424_v2, %v428_v4  ;;  %5227 = vmatprep.subr.bf16.mxu0 %v6556_v3  ;;  %s6485_s15 = sshll.u32 %s8730_s27, 3 }
  0x52   : > { %v292_v7 = vld [vmem:[%s7625_s8 + $0x1a0] sm:$0xff]  ;;  %5228 = vmatpush1.bf16.msra.mxu0 %v6555_v5  ;;  %s8195_s6 = scalar_lea.vmem %s8718_s3, %s6485_s15 }
  0x53   : > { %v6548_v10 = vcombine.high %v288_v6, %v292_v7  ;;  %v416_v11 = vld [vmem:[%s7625_s8 + $0x580] sm:$0xff]  ;;  %5268 = vmatprep.subr.bf16.mxu1 %v6684_v8  ;;  %v6547_v18 = vcombine.low %v288_v6, %v292_v7 }
  0x54   : > { %v420_v12 = vld [vmem:[%s7625_s8 + $0x5a0] sm:$0xff]  ;;  %5269 = vmatpush1.bf16.msra.mxu1 %v6683_v9 }
  0x55   : > { %v280_v13 = vld [vmem:[%s7625_s8 + $0x140] sm:$0xff]  ;;  %v6676_v14 = vcombine.high %v416_v11, %v420_v12  ;;  %5229 = vmatprep.subr.bf16.mxu0 %v6548_v10  ;;  %v6675_v19 = vcombine.low %v416_v11, %v420_v12 }
  0x56   : > { %v284_v15 = vld [vmem:[%s7625_s8 + $0x160] sm:$0xff]  ;;  %5230 = vmatpush1.bf16.msra.mxu0 %v6547_v18 }
  0x57   : > { %v408_v16 = vld [vmem:[%s7625_s8 + $0x540] sm:$0xff]  ;;  %v6540_v20 = vcombine.high %v280_v13, %v284_v15  ;;  %5270 = vmatprep.subr.bf16.mxu1 %v6676_v14  ;;  %v6539_v26 = vcombine.low %v280_v13, %v284_v15 }
  0x58   : > { %v412_v17 = vld [vmem:[%s7625_s8 + $0x560] sm:$0xff]  ;;  %5271 = vmatpush1.bf16.msra.mxu1 %v6675_v19 }
  0x59   : > { %v6668_v21 = vcombine.high %v408_v16, %v412_v17  ;;  %v272_v22 = vld [vmem:[%s7625_s8 + $0x100] sm:$0xff]  ;;  %5231 = vmatprep.subr.bf16.mxu0 %v6540_v20  ;;  %v6667_v27 = vcombine.low %v408_v16, %v412_v17 }
  0x5a   : > { %v276_v23 = vld [vmem:[%s7625_s8 + $0x120] sm:$0xff]  ;;  %5232 = vmatpush1.bf16.msra.mxu0 %v6539_v26 }
  0x5b   : > { %v400_v24 = vld [vmem:[%s7625_s8 + $0x500] sm:$0xff]  ;;  %v6532_v28 = vcombine.high %v272_v22, %v276_v23  ;;  %5272 = vmatprep.subr.bf16.mxu1 %v6668_v21  ;;  %v6531_v34 = vcombine.low %v272_v22, %v276_v23 }
  0x5c   : > { %v404_v25 = vld [vmem:[%s7625_s8 + $0x520] sm:$0xff]  ;;  %5273 = vmatpush1.bf16.msra.mxu1 %v6667_v27 }
  0x5d   : > { %v6660_v29 = vcombine.high %v400_v24, %v404_v25  ;;  %v264_v30 = vld [vmem:[%s7625_s8 + $0xc0] sm:$0xff]  ;;  %5233 = vmatprep.subr.bf16.mxu0 %v6532_v28  ;;  %v6659_v35 = vcombine.low %v400_v24, %v404_v25 }
  0x5e   : > { %v268_v31 = vld [vmem:[%s7625_s8 + $0xe0] sm:$0xff]  ;;  %5234 = vmatpush1.bf16.msra.mxu0 %v6531_v34 }
  0x5f   : > { %v392_v32 = vld [vmem:[%s7625_s8 + $0x4c0] sm:$0xff]  ;;  %v6524_v36 = vcombine.high %v264_v30, %v268_v31  ;;  %5274 = vmatprep.subr.bf16.mxu1 %v6660_v29  ;;  %v6523_v42 = vcombine.low %v264_v30, %v268_v31 }
  0x60   : > { %v396_v33 = vld [vmem:[%s7625_s8 + $0x4e0] sm:$0xff]  ;;  %5275 = vmatpush1.bf16.msra.mxu1 %v6659_v35 }
  0x61   : > { %v6652_v37 = vcombine.high %v392_v32, %v396_v33  ;;  %v256_v38 = vld [vmem:[%s7625_s8 + $0x80] sm:$0xff]  ;;  %5235 = vmatprep.subr.bf16.mxu0 %v6524_v36  ;;  %v6651_v43 = vcombine.low %v392_v32, %v396_v33 }
  0x62   : > { %v260_v39 = vld [vmem:[%s7625_s8 + $0xa0] sm:$0xff]  ;;  %5236 = vmatpush1.bf16.msra.mxu0 %v6523_v42 }
  0x63   : > { %v384_v40 = vld [vmem:[%s7625_s8 + $0x480] sm:$0xff]  ;;  %v6516_v44 = vcombine.high %v256_v38, %v260_v39  ;;  %5276 = vmatprep.subr.bf16.mxu1 %v6652_v37  ;;  %v6515_v50 = vcombine.low %v256_v38, %v260_v39 }
  0x64   : > { %v388_v41 = vld [vmem:[%s7625_s8 + $0x4a0] sm:$0xff]  ;;  %5277 = vmatpush1.bf16.msra.mxu1 %v6651_v43 }
  0x65   : > { %v6644_v45 = vcombine.high %v384_v40, %v388_v41  ;;  %v248_v46 = vld [vmem:[%s7625_s8 + $0x40] sm:$0xff]  ;;  %5237 = vmatprep.subr.bf16.mxu0 %v6516_v44  ;;  %v6643_v51 = vcombine.low %v384_v40, %v388_v41 }
  0x66   : > { %v252_v47 = vld [vmem:[%s7625_s8 + $0x60] sm:$0xff]  ;;  %5238 = vmatpush1.bf16.msra.mxu0 %v6515_v50 }
  0x67   : > { %v376_v48 = vld [vmem:[%s7625_s8 + $0x440] sm:$0xff]  ;;  %v6508_v52 = vcombine.high %v248_v46, %v252_v47  ;;  %5278 = vmatprep.subr.bf16.mxu1 %v6644_v45  ;;  %v6507_v62 = vcombine.low %v248_v46, %v252_v47 }
  0x68   : > { %v380_v49 = vld [vmem:[%s7625_s8 + $0x460] sm:$0xff]  ;;  %5279 = vmatpush1.bf16.msra.mxu1 %v6643_v51 }
  0x69   : > { %v7668_v53 = vld [vmem:[%s8715_s0] sm:$0xff]  ;;  %v6636_v55 = vcombine.high %v376_v48, %v380_v49  ;;  %5239 = vmatprep.subr.bf16.mxu0 %v6508_v52  ;;  %v6635_v63 = vcombine.low %v376_v48, %v380_v49 }
  0x6a   : > { %v240_v56 = vld [vmem:[%s7625_s8] sm:$0xff]  ;;  %v7679_v58 = vcombine.high %v7668_v53, %v7668_v53  ;;  %5240 = vmatpush1.bf16.msra.mxu0 %v6507_v62 }
  0x6b   : > { %v244_v57 = vld [vmem:[%s7625_s8 + $0x20] sm:$0xff]  ;;  %5280 = vmatprep.subr.bf16.mxu1 %v6636_v55 }
  0x6c   : > { %v368_v60 = vld [vmem:[%s7625_s8 + $0x400] sm:$0xff]  ;;  %5259 = vmatprep.mubr.bf16.mxu0 %v7679_v58  ;;  %v6500_v0 = vcombine.high %v240_v56, %v244_v57  ;;  %v6499_v6 = vcombine.low %v240_v56, %v244_v57  ;;  %5281 = vmatpush1.bf16.msra.mxu1 %v6635_v63 }
  0x6d   : > { %v372_v61 = vld [vmem:[%s7625_s8 + $0x420] sm:$0xff] }
  0x6e   : > { %v6628_v1 = vcombine.high %v368_v60, %v372_v61  ;;  %v360_v2 = vld [vmem:[%s7625_s8 + $0x3c0] sm:$0xff]  ;;  %5241 = vmatprep.subr.bf16.mxu0 %v6500_v0  ;;  %v6627_v7 = vcombine.low %v368_v60, %v372_v61 }
  0x6f   : > { %v364_v3 = vld [vmem:[%s7625_s8 + $0x3e0] sm:$0xff]  ;;  %5242 = vmatpush1.bf16.msra.mxu0 %v6499_v6 }
  0x70   : > { %v488_v4 = vld [vmem:[%s7625_s8 + $0x7c0] sm:$0xff]  ;;  %v6620_v8 = vcombine.high %v360_v2, %v364_v3  ;;  %5282 = vmatprep.subr.bf16.mxu1 %v6628_v1  ;;  %v6619_v14 = vcombine.low %v360_v2, %v364_v3 }
  0x71   : > { %v492_v5 = vld [vmem:[%s7625_s8 + $0x7e0] sm:$0xff]  ;;  %5283 = vmatpush1.bf16.msra.mxu1 %v6627_v7 }
  0x72   : > { %v6748_v9 = vcombine.high %v488_v4, %v492_v5  ;;  %v352_v10 = vld [vmem:[%s7625_s8 + $0x380] sm:$0xff]  ;;  %5243 = vmatprep.subr.bf16.mxu0 %v6620_v8  ;;  %v6747_v15 = vcombine.low %v488_v4, %v492_v5 }
  0x73   : > { %v356_v11 = vld [vmem:[%s7625_s8 + $0x3a0] sm:$0xff]  ;;  %5244 = vmatpush2.bf16.msra.mxu0 %v6619_v14 }
  0x74   : > { %v480_v12 = vld [vmem:[%s7625_s8 + $0x780] sm:$0xff]  ;;  %v6612_v16 = vcombine.high %v352_v10, %v356_v11  ;;  %5284 = vmatprep.subr.bf16.mxu1 %v6748_v9  ;;  %v6611_v22 = vcombine.low %v352_v10, %v356_v11 }
  0x75   : > { %v484_v13 = vld [vmem:[%s7625_s8 + $0x7a0] sm:$0xff]  ;;  %5285 = vmatpush2.bf16.msra.mxu1 %v6747_v15 }
  0x76   : > { %v6740_v17 = vcombine.high %v480_v12, %v484_v13  ;;  %v344_v18 = vld [vmem:[%s7625_s8 + $0x340] sm:$0xff]  ;;  %5245 = vmatprep.subr.bf16.mxu0 %v6612_v16  ;;  %v6739_v23 = vcombine.low %v480_v12, %v484_v13  ;;  %v7729_v16 = vcombine.low %v7668_v53, %v7668_v53  ;;  %v7745_v53 = vld [vmem:[%s8715_s0 + $0x18] sm:$0xff] }
  0x77   : > { %v348_v19 = vld [vmem:[%s7625_s8 + $0x360] sm:$0xff]  ;;  %5246 = vmatpush2.bf16.msra.mxu0 %v6611_v22 }
  0x78   : > { %v472_v20 = vld [vmem:[%s7625_s8 + $0x740] sm:$0xff]  ;;  %v6604_v24 = vcombine.high %v344_v18, %v348_v19  ;;  %5286 = vmatprep.subr.bf16.mxu1 %v6740_v17  ;;  %v6603_v30 = vcombine.low %v344_v18, %v348_v19  ;;  %v7736_v19 = vld [vmem:[%s8715_s0 + $0x10] sm:$0xff] }
  0x79   : > { %v476_v21 = vld [vmem:[%s7625_s8 + $0x760] sm:$0xff]  ;;  %5287 = vmatpush2.bf16.msra.mxu1 %v6739_v23 }
  0x7a   : > { %v6732_v25 = vcombine.high %v472_v20, %v476_v21  ;;  %v336_v26 = vld [vmem:[%s7625_s8 + $0x300] sm:$0xff]  ;;  %5247 = vmatprep.subr.bf16.mxu0 %v6604_v24  ;;  %v6731_v31 = vcombine.low %v472_v20, %v476_v21  ;;  %v7740_v20 = vcombine.low %v7673_v54, %v7673_v54  ;;  %v7751_v54 = vcombine.high %v7736_v19, %v7736_v19 }
  0x7b   : > { %v340_v27 = vld [vmem:[%s7625_s8 + $0x320] sm:$0xff]  ;;  %5248 = vmatpush2.bf16.msra.mxu0 %v6603_v30 }
  0x7c   : > { %v464_v28 = vld [vmem:[%s7625_s8 + $0x700] sm:$0xff]  ;;  %v6596_v32 = vcombine.high %v336_v26, %v340_v27  ;;  %5288 = vmatprep.subr.bf16.mxu1 %v6732_v25  ;;  %v6595_v38 = vcombine.low %v336_v26, %v340_v27 }
  0x7d   : > { %v468_v29 = vld [vmem:[%s7625_s8 + $0x720] sm:$0xff]  ;;  %5289 = vmatpush2.bf16.msra.mxu1 %v6731_v31 }
  0x7e   : > { %v6724_v33 = vcombine.high %v464_v28, %v468_v29  ;;  %v328_v34 = vld [vmem:[%s7625_s8 + $0x2c0] sm:$0xff]  ;;  %5249 = vmatprep.subr.bf16.mxu0 %v6596_v32  ;;  %v6723_v39 = vcombine.low %v464_v28, %v468_v29  ;;  %v7758_v29 = vcombine.high %v7745_v53, %v7745_v53 }
  0x7f   : > { %v332_v35 = vld [vmem:[%s7625_s8 + $0x2e0] sm:$0xff]  ;;  %5250 = vmatpush2.bf16.msra.mxu0 %v6595_v38 }
  0x80   : > { %v456_v36 = vld [vmem:[%s7625_s8 + $0x6c0] sm:$0xff]  ;;  %v6588_v40 = vcombine.high %v328_v34, %v332_v35  ;;  %5290 = vmatprep.subr.bf16.mxu1 %v6724_v33  ;;  %v6587_v46 = vcombine.low %v328_v34, %v332_v35 }
  0x81   : > { %v460_v37 = vld [vmem:[%s7625_s8 + $0x6e0] sm:$0xff]  ;;  %5291 = vmatpush2.bf16.msra.mxu1 %v6723_v39 }
  0x82   : > { %v6716_v41 = vcombine.high %v456_v36, %v460_v37  ;;  %v320_v42 = vld [vmem:[%s7625_s8 + $0x280] sm:$0xff]  ;;  %5251 = vmatprep.subr.bf16.mxu0 %v6588_v40  ;;  %v6715_v47 = vcombine.low %v456_v36, %v460_v37 }
  0x83   : > { %v324_v43 = vld [vmem:[%s7625_s8 + $0x2a0] sm:$0xff]  ;;  %5252 = vmatpush2.bf16.msra.mxu0 %v6587_v46 }
  0x84   : > { %v448_v44 = vld [vmem:[%s7625_s8 + $0x680] sm:$0xff]  ;;  %v6580_v48 = vcombine.high %v320_v42, %v324_v43  ;;  %5292 = vmatprep.subr.bf16.mxu1 %v6716_v41  ;;  %v6579_v56 = vcombine.low %v320_v42, %v324_v43 }
  0x85   : > { %v452_v45 = vld [vmem:[%s7625_s8 + $0x6a0] sm:$0xff]  ;;  %5293 = vmatpush2.bf16.msra.mxu1 %v6715_v47 }
  0x86   : > { %v6708_v49 = vcombine.high %v448_v44, %v452_v45  ;;  %v312_v50 = vld [vmem:[%s7625_s8 + $0x240] sm:$0xff]  ;;  %5253 = vmatprep.subr.bf16.mxu0 %v6580_v48  ;;  %v6707_v57 = vcombine.low %v448_v44, %v452_v45 }
  0x87   : > { %v316_v51 = vld [vmem:[%s7625_s8 + $0x260] sm:$0xff]  ;;  %5254 = vmatpush2.bf16.msra.mxu0 %v6579_v56 }
  0x88   : > { %v440_v52 = vld [vmem:[%s7625_s8 + $0x640] sm:$0xff]  ;;  %v6572_v60 = vcombine.high %v312_v50, %v316_v51  ;;  %5294 = vmatprep.subr.bf16.mxu1 %v6708_v49  ;;  %v6571_v2 = vcombine.low %v312_v50, %v316_v51 }
  0x89   : > { %v444_v55 = vld [vmem:[%s7625_s8 + $0x660] sm:$0xff]  ;;  %5295 = vmatpush2.bf16.msra.mxu1 %v6707_v57 }
  0x8a   : > { %v6700_v61 = vcombine.high %v440_v52, %v444_v55  ;;  %v304_v62 = vld [vmem:[%s7625_s8 + $0x200] sm:$0xff]  ;;  %5255 = vmatprep.subr.bf16.mxu0 %v6572_v60  ;;  %v6699_v3 = vcombine.low %v440_v52, %v444_v55 }
  0x8b   : > { %v308_v63 = vld [vmem:[%s7625_s8 + $0x220] sm:$0xff]  ;;  %5256 = vmatpush2.bf16.msra.mxu0 %v6571_v2 }
  0x8c   : > { %v432_v0 = vld [vmem:[%s7625_s8 + $0x600] sm:$0xff]  ;;  %v6564_v4 = vcombine.high %v304_v62, %v308_v63  ;;  %5296 = vmatprep.subr.bf16.mxu1 %v6700_v61  ;;  %v6563_v10 = vcombine.low %v304_v62, %v308_v63 }
  0x8d   : > { %v436_v1 = vld [vmem:[%s7625_s8 + $0x620] sm:$0xff]  ;;  %5297 = vmatpush2.bf16.msra.mxu1 %v6699_v3 }
  0x8e   : > { %v6692_v5 = vcombine.high %v432_v0, %v436_v1  ;;  %v552_v6 = vld [vmem:[%s7625_s8 + $0x9c0] sm:$0xff]  ;;  %5257 = vmatprep.subr.bf16.mxu0 %v6564_v4  ;;  %v6691_v11 = vcombine.low %v432_v0, %v436_v1 }
  0x8f   : > { %v556_v7 = vld [vmem:[%s7625_s8 + $0x9e0] sm:$0xff]  ;;  %5258 = vmatpush2.bf16.msra.mxu0 %v6563_v10 }
  0x90   : > { %v680_v8 = vld [vmem:[%s7625_s8 + $0xdc0] sm:$0xff]  ;;  %v6812_v12 = vcombine.high %v552_v6, %v556_v7  ;;  %5298 = vmatprep.subr.bf16.mxu1 %v6692_v5  ;;  %v6811_v21 = vcombine.low %v552_v6, %v556_v7 }
  0x91   : > { %v684_v9 = vld [vmem:[%s7625_s8 + $0xde0] sm:$0xff]  ;;  %5299 = vmatpush2.bf16.msra.mxu1 %v6691_v11 }
  0x92   : > { %v6940_v13 = vcombine.high %v680_v8, %v684_v9  ;;  %v544_v14 = vld [vmem:[%s7625_s8 + $0x980] sm:$0xff]  ;;  %5309 = vmatprep.subr.bf16.mxu0 %v6812_v12  ;;  %v6939_v22 = vcombine.low %v680_v8, %v684_v9  ;;  %5260 = vmatmul.mubr.bf16.vlgmr.msra.gmra.mxu0 %v7729_v16 }
  0x93   : > { %v548_v15 = vld [vmem:[%s7625_s8 + $0x9a0] sm:$0xff]  ;;  %5310 = vmatpush1.bf16.msra.mxu0 %v6811_v21  ;;  %5341 = vmatprep.mubr.bf16.mxu0 %v7751_v54 }
  0x94   : > { %v672_v17 = vld [vmem:[%s7625_s8 + $0xd80] sm:$0xff]  ;;  %v6804_v23 = vcombine.high %v544_v14, %v548_v15  ;;  %5350 = vmatprep.subr.bf16.mxu1 %v6940_v13  ;;  %5301 = vmatmul.mubr.bf16.vlgmr.msra.gmra.mxu1 %v7740_v20  ;;  %v6803_v30 = vcombine.low %v544_v14, %v548_v15 }
  0x95   : > { %v676_v18 = vld [vmem:[%s7625_s8 + $0xda0] sm:$0xff]  ;;  %5351 = vmatpush1.bf16.msra.mxu1 %v6939_v22  ;;  %5382 = vmatprep.mubr.bf16.mxu1 %v7758_v29 }
  0x96   : > { %v6932_v24 = vcombine.high %v672_v17, %v676_v18  ;;  %v536_v25 = vld [vmem:[%s7625_s8 + $0x940] sm:$0xff]  ;;  %5311 = vmatprep.subr.bf16.mxu0 %v6804_v23  ;;  %v6931_v31 = vcombine.low %v672_v17, %v676_v18 }
  0x97   : > { %v540_v26 = vld [vmem:[%s7625_s8 + $0x960] sm:$0xff]  ;;  %5312 = vmatpush1.bf16.msra.mxu0 %v6803_v30 }
  0x98   : > { %v664_v27 = vld [vmem:[%s7625_s8 + $0xd40] sm:$0xff]  ;;  %v6796_v32 = vcombine.high %v536_v25, %v540_v26  ;;  %5352 = vmatprep.subr.bf16.mxu1 %v6932_v24  ;;  %v6795_v38 = vcombine.low %v536_v25, %v540_v26 }
  0x99   : > { %v668_v28 = vld [vmem:[%s7625_s8 + $0xd60] sm:$0xff]  ;;  %5353 = vmatpush1.bf16.msra.mxu1 %v6931_v31 }
  0x9a   : > { %v6924_v33 = vcombine.high %v664_v27, %v668_v28  ;;  %v528_v34 = vld [vmem:[%s7625_s8 + $0x900] sm:$0xff]  ;;  %5313 = vmatprep.subr.bf16.mxu0 %v6796_v32  ;;  %v6923_v39 = vcombine.low %v664_v27, %v668_v28 }
  0x9b   : > { %v532_v35 = vld [vmem:[%s7625_s8 + $0x920] sm:$0xff]  ;;  %5314 = vmatpush1.bf16.msra.mxu0 %v6795_v38 }
  0x9c   : > { %v656_v36 = vld [vmem:[%s7625_s8 + $0xd00] sm:$0xff]  ;;  %v6788_v40 = vcombine.high %v528_v34, %v532_v35  ;;  %5354 = vmatprep.subr.bf16.mxu1 %v6924_v33  ;;  %v6787_v46 = vcombine.low %v528_v34, %v532_v35 }
  0x9d   : > { %v660_v37 = vld [vmem:[%s7625_s8 + $0xd20] sm:$0xff]  ;;  %5355 = vmatpush1.bf16.msra.mxu1 %v6923_v39 }
  0x9e   : > { %v6916_v41 = vcombine.high %v656_v36, %v660_v37  ;;  %v520_v42 = vld [vmem:[%s7625_s8 + $0x8c0] sm:$0xff]  ;;  %5315 = vmatprep.subr.bf16.mxu0 %v6788_v40  ;;  %v6915_v47 = vcombine.low %v656_v36, %v660_v37 }
  0x9f   : > { %v524_v43 = vld [vmem:[%s7625_s8 + $0x8e0] sm:$0xff]  ;;  %5316 = vmatpush1.bf16.msra.mxu0 %v6787_v46 }
  0xa0   : > { %v648_v44 = vld [vmem:[%s7625_s8 + $0xcc0] sm:$0xff]  ;;  %v6780_v48 = vcombine.high %v520_v42, %v524_v43  ;;  %5356 = vmatprep.subr.bf16.mxu1 %v6916_v41  ;;  %v6779_v56 = vcombine.low %v520_v42, %v524_v43 }
  0xa1   : > { %v652_v45 = vld [vmem:[%s7625_s8 + $0xce0] sm:$0xff]  ;;  %5357 = vmatpush1.bf16.msra.mxu1 %v6915_v47 }
  0xa2   : > { %v6908_v49 = vcombine.high %v648_v44, %v652_v45  ;;  %v512_v50 = vld [vmem:[%s7625_s8 + $0x880] sm:$0xff]  ;;  %5317 = vmatprep.subr.bf16.mxu0 %v6780_v48  ;;  %v6907_v57 = vcombine.low %v648_v44, %v652_v45 }
  0xa3   : > { %v516_v51 = vld [vmem:[%s7625_s8 + $0x8a0] sm:$0xff]  ;;  %5318 = vmatpush1.bf16.msra.mxu0 %v6779_v56 }
  0xa4   : > { %v640_v52 = vld [vmem:[%s7625_s8 + $0xc80] sm:$0xff]  ;;  %v6772_v60 = vcombine.high %v512_v50, %v516_v51  ;;  %5358 = vmatprep.subr.bf16.mxu1 %v6908_v49  ;;  %v6771_v2 = vcombine.low %v512_v50, %v516_v51 }
  0xa5   : > { %v644_v55 = vld [vmem:[%s7625_s8 + $0xca0] sm:$0xff]  ;;  %5359 = vmatpush1.bf16.msra.mxu1 %v6907_v57 }
  0xa6   : > { %v6900_v61 = vcombine.high %v640_v52, %v644_v55  ;;  %v504_v62 = vld [vmem:[%s7625_s8 + $0x840] sm:$0xff]  ;;  %5319 = vmatprep.subr.bf16.mxu0 %v6772_v60  ;;  %v6899_v3 = vcombine.low %v640_v52, %v644_v55 }
  0xa7   : > { %v508_v63 = vld [vmem:[%s7625_s8 + $0x860] sm:$0xff]  ;;  %5320 = vmatpush1.bf16.msra.mxu0 %v6771_v2 }
  0xa8   : > { %v632_v0 = vld [vmem:[%s7625_s8 + $0xc40] sm:$0xff]  ;;  %v6764_v4 = vcombine.high %v504_v62, %v508_v63  ;;  %5360 = vmatprep.subr.bf16.mxu1 %v6900_v61  ;;  %v6763_v10 = vcombine.low %v504_v62, %v508_v63 }
  0xa9   : > { %v636_v1 = vld [vmem:[%s7625_s8 + $0xc60] sm:$0xff]  ;;  %5361 = vmatpush1.bf16.msra.mxu1 %v6899_v3 }
  0xaa   : > { %v6892_v5 = vcombine.high %v632_v0, %v636_v1  ;;  %v496_v6 = vld [vmem:[%s7625_s8 + $0x800] sm:$0xff]  ;;  %5321 = vmatprep.subr.bf16.mxu0 %v6764_v4  ;;  %v6891_v11 = vcombine.low %v632_v0, %v636_v1 }
  0xab   : > { %v500_v7 = vld [vmem:[%s7625_s8 + $0x820] sm:$0xff]  ;;  %5322 = vmatpush1.bf16.msra.mxu0 %v6763_v10 }
  0xac   : > { %v624_v8 = vld [vmem:[%s7625_s8 + $0xc00] sm:$0xff]  ;;  %v6756_v12 = vcombine.high %v496_v6, %v500_v7  ;;  %5362 = vmatprep.subr.bf16.mxu1 %v6892_v5  ;;  %v6755_v21 = vcombine.low %v496_v6, %v500_v7 }
  0xad   : > { %v628_v9 = vld [vmem:[%s7625_s8 + $0xc20] sm:$0xff]  ;;  %5363 = vmatpush1.bf16.msra.mxu1 %v6891_v11 }
  0xae   : > { %v6884_v13 = vcombine.high %v624_v8, %v628_v9  ;;  %v616_v14 = vld [vmem:[%s7625_s8 + $0xbc0] sm:$0xff]  ;;  %5323 = vmatprep.subr.bf16.mxu0 %v6756_v12  ;;  %v6883_v22 = vcombine.low %v624_v8, %v628_v9 }
  0xaf   : > { %v620_v15 = vld [vmem:[%s7625_s8 + $0xbe0] sm:$0xff]  ;;  %5324 = vmatpush1.bf16.msra.mxu0 %v6755_v21 }
  0xb0   : > { %v744_v17 = vld [vmem:[%s7625_s8 + $0xfc0] sm:$0xff]  ;;  %v6876_v23 = vcombine.high %v616_v14, %v620_v15  ;;  %5364 = vmatprep.subr.bf16.mxu1 %v6884_v13  ;;  %v6875_v30 = vcombine.low %v616_v14, %v620_v15 }
  0xb1   : > { %v748_v18 = vld [vmem:[%s7625_s8 + $0xfe0] sm:$0xff]  ;;  %5365 = vmatpush1.bf16.msra.mxu1 %v6883_v22 }
  0xb2   : > { %v7004_v24 = vcombine.high %v744_v17, %v748_v18  ;;  %v608_v25 = vld [vmem:[%s7625_s8 + $0xb80] sm:$0xff]  ;;  %5325 = vmatprep.subr.bf16.mxu0 %v6876_v23  ;;  %v7003_v31 = vcombine.low %v744_v17, %v748_v18 }
  0xb3   : > { %v612_v26 = vld [vmem:[%s7625_s8 + $0xba0] sm:$0xff]  ;;  %5326 = vmatpush2.bf16.msra.mxu0 %v6875_v30 }
  0xb4   : > { %v736_v27 = vld [vmem:[%s7625_s8 + $0xf80] sm:$0xff]  ;;  %v6868_v32 = vcombine.high %v608_v25, %v612_v26  ;;  %5366 = vmatprep.subr.bf16.mxu1 %v7004_v24  ;;  %v6867_v38 = vcombine.low %v608_v25, %v612_v26 }
  0xb5   : > { %v740_v28 = vld [vmem:[%s7625_s8 + $0xfa0] sm:$0xff]  ;;  %5367 = vmatpush2.bf16.msra.mxu1 %v7003_v31 }
  0xb6   : > { %v6996_v33 = vcombine.high %v736_v27, %v740_v28  ;;  %v600_v34 = vld [vmem:[%s7625_s8 + $0xb40] sm:$0xff]  ;;  %5327 = vmatprep.subr.bf16.mxu0 %v6868_v32  ;;  %v6995_v39 = vcombine.low %v736_v27, %v740_v28 }
  0xb7   : > { %v604_v35 = vld [vmem:[%s7625_s8 + $0xb60] sm:$0xff]  ;;  %5328 = vmatpush2.bf16.msra.mxu0 %v6867_v38 }
  0xb8   : > { %v728_v36 = vld [vmem:[%s7625_s8 + $0xf40] sm:$0xff]  ;;  %v6860_v40 = vcombine.high %v600_v34, %v604_v35  ;;  %5368 = vmatprep.subr.bf16.mxu1 %v6996_v33  ;;  %v6859_v46 = vcombine.low %v600_v34, %v604_v35 }
  0xb9   : > { %v732_v37 = vld [vmem:[%s7625_s8 + $0xf60] sm:$0xff]  ;;  %5369 = vmatpush2.bf16.msra.mxu1 %v6995_v39 }
  0xba   : > { %v6988_v41 = vcombine.high %v728_v36, %v732_v37  ;;  %v592_v42 = vld [vmem:[%s7625_s8 + $0xb00] sm:$0xff]  ;;  %5329 = vmatprep.subr.bf16.mxu0 %v6860_v40  ;;  %v6987_v47 = vcombine.low %v728_v36, %v732_v37  ;;  %v7823_v36 = vcombine.low %v7736_v19, %v7736_v19  ;;  %v7834_v40 = vcombine.low %v7745_v53, %v7745_v53  ;;  %v7839_v19 = vld [vmem:[%s8715_s0 + $0x28] sm:$0xff] }
  0xbb   : > { %v596_v43 = vld [vmem:[%s7625_s8 + $0xb20] sm:$0xff]  ;;  %5330 = vmatpush2.bf16.msra.mxu0 %v6859_v46 }
  0xbc   : > { %v720_v44 = vld [vmem:[%s7625_s8 + $0xf00] sm:$0xff]  ;;  %v6852_v48 = vcombine.high %v592_v42, %v596_v43  ;;  %5370 = vmatprep.subr.bf16.mxu1 %v6988_v41  ;;  %v6851_v56 = vcombine.low %v592_v42, %v596_v43 }
  0xbd   : > { %v724_v45 = vld [vmem:[%s7625_s8 + $0xf20] sm:$0xff]  ;;  %5371 = vmatpush2.bf16.msra.mxu1 %v6987_v47 }
  0xbe   : > { %v6980_v49 = vcombine.high %v720_v44, %v724_v45  ;;  %v584_v50 = vld [vmem:[%s7625_s8 + $0xac0] sm:$0xff]  ;;  %5331 = vmatprep.subr.bf16.mxu0 %v6852_v48  ;;  %v6979_v57 = vcombine.low %v720_v44, %v724_v45 }
  0xbf   : > { %v588_v51 = vld [vmem:[%s7625_s8 + $0xae0] sm:$0xff]  ;;  %5332 = vmatpush2.bf16.msra.mxu0 %v6851_v56 }
  0xc0   : > { %v712_v52 = vld [vmem:[%s7625_s8 + $0xec0] sm:$0xff]  ;;  %v6844_v60 = vcombine.high %v584_v50, %v588_v51  ;;  %5372 = vmatprep.subr.bf16.mxu1 %v6980_v49  ;;  %v6843_v2 = vcombine.low %v584_v50, %v588_v51  ;;  %v7852_v49 = vcombine.high %v7839_v19, %v7839_v19 }
  0xc1   : > { %v716_v55 = vld [vmem:[%s7625_s8 + $0xee0] sm:$0xff]  ;;  %5373 = vmatpush2.bf16.msra.mxu1 %v6979_v57 }
  0xc2   : > { %v6972_v61 = vcombine.high %v712_v52, %v716_v55  ;;  %v576_v62 = vld [vmem:[%s7625_s8 + $0xa80] sm:$0xff]  ;;  %5333 = vmatprep.subr.bf16.mxu0 %v6844_v60  ;;  %v6971_v3 = vcombine.low %v712_v52, %v716_v55 }
  0xc3   : > { %v580_v63 = vld [vmem:[%s7625_s8 + $0xaa0] sm:$0xff]  ;;  %5334 = vmatpush2.bf16.msra.mxu0 %v6843_v2 }
  0xc4   : > { %v704_v0 = vld [vmem:[%s7625_s8 + $0xe80] sm:$0xff]  ;;  %v6836_v4 = vcombine.high %v576_v62, %v580_v63  ;;  %5374 = vmatprep.subr.bf16.mxu1 %v6972_v61  ;;  %v6835_v10 = vcombine.low %v576_v62, %v580_v63 }
  0xc5   : > { %v708_v1 = vld [vmem:[%s7625_s8 + $0xea0] sm:$0xff]  ;;  %5375 = vmatpush2.bf16.msra.mxu1 %v6971_v3 }
  0xc6   : > { %v6964_v5 = vcombine.high %v704_v0, %v708_v1  ;;  %v568_v6 = vld [vmem:[%s7625_s8 + $0xa40] sm:$0xff]  ;;  %5335 = vmatprep.subr.bf16.mxu0 %v6836_v4  ;;  %v6963_v11 = vcombine.low %v704_v0, %v708_v1 }
  0xc7   : > { %v572_v7 = vld [vmem:[%s7625_s8 + $0xa60] sm:$0xff]  ;;  %5336 = vmatpush2.bf16.msra.mxu0 %v6835_v10 }
  0xc8   : > { %v696_v8 = vld [vmem:[%s7625_s8 + $0xe40] sm:$0xff]  ;;  %v6828_v12 = vcombine.high %v568_v6, %v572_v7  ;;  %5376 = vmatprep.subr.bf16.mxu1 %v6964_v5  ;;  %v6827_v21 = vcombine.low %v568_v6, %v572_v7 }
  0xc9   : > { %v700_v9 = vld [vmem:[%s7625_s8 + $0xe60] sm:$0xff]  ;;  %5377 = vmatpush2.bf16.msra.mxu1 %v6963_v11 }
  0xca   : > { %v6956_v13 = vcombine.high %v696_v8, %v700_v9  ;;  %v560_v14 = vld [vmem:[%s7625_s8 + $0xa00] sm:$0xff]  ;;  %5337 = vmatprep.subr.bf16.mxu0 %v6828_v12  ;;  %v6955_v22 = vcombine.low %v696_v8, %v700_v9 }
  0xcb   : > { %v564_v15 = vld [vmem:[%s7625_s8 + $0xa20] sm:$0xff]  ;;  %5338 = vmatpush2.bf16.msra.mxu0 %v6827_v21 }
  0xcc   : > { %v688_v17 = vld [vmem:[%s7625_s8 + $0xe00] sm:$0xff]  ;;  %v6820_v23 = vcombine.high %v560_v14, %v564_v15  ;;  %5378 = vmatprep.subr.bf16.mxu1 %v6956_v13  ;;  %v6819_v30 = vcombine.low %v560_v14, %v564_v15 }
  0xcd   : > { %v692_v18 = vld [vmem:[%s7625_s8 + $0xe20] sm:$0xff]  ;;  %5379 = vmatpush2.bf16.msra.mxu1 %v6955_v22 }
  0xce   : > { %v6948_v24 = vcombine.high %v688_v17, %v692_v18  ;;  %v808_v25 = vld [vmem:[%s7625_s8 + $0x11c0] sm:$0xff]  ;;  %5339 = vmatprep.subr.bf16.mxu0 %v6820_v23  ;;  %v6947_v31 = vcombine.low %v688_v17, %v692_v18 }
  0xcf   : > { %v812_v26 = vld [vmem:[%s7625_s8 + $0x11e0] sm:$0xff]  ;;  %5340 = vmatpush2.bf16.msra.mxu0 %v6819_v30 }
  0xd0   : > { %v936_v27 = vld [vmem:[%s7625_s8 + $0x15c0] sm:$0xff]  ;;  %v7068_v32 = vcombine.high %v808_v25, %v812_v26  ;;  %5380 = vmatprep.subr.bf16.mxu1 %v6948_v24  ;;  %v7067_v41 = vcombine.low %v808_v25, %v812_v26 }
  0xd1   : > { %v940_v28 = vld [vmem:[%s7625_s8 + $0x15e0] sm:$0xff]  ;;  %5381 = vmatpush2.bf16.msra.mxu1 %v6947_v31 }
  0xd2   : > { %v7196_v33 = vcombine.high %v936_v27, %v940_v28  ;;  %v800_v34 = vld [vmem:[%s7625_s8 + $0x1180] sm:$0xff]  ;;  %5391 = vmatprep.subr.bf16.mxu0 %v7068_v32  ;;  %v7195_v42 = vcombine.low %v936_v27, %v940_v28  ;;  %5342 = vmatmul.mubr.bf16.vlgmr.msra.gmra.mxu0 %v7823_v36 }
  0xd3   : > { %v804_v35 = vld [vmem:[%s7625_s8 + $0x11a0] sm:$0xff]  ;;  %5392 = vmatpush1.bf16.msra.mxu0 %v7067_v41 }
  0xd4   : > { %v928_v37 = vld [vmem:[%s7625_s8 + $0x1580] sm:$0xff]  ;;  %v7060_v43 = vcombine.high %v800_v34, %v804_v35  ;;  %5432 = vmatprep.subr.bf16.mxu1 %v7196_v33  ;;  %5383 = vmatmul.mubr.bf16.vlgmr.msra.gmra.mxu1 %v7834_v40  ;;  %v7059_v50 = vcombine.low %v800_v34, %v804_v35 }
  0xd5   : > { %v932_v38 = vld [vmem:[%s7625_s8 + $0x15a0] sm:$0xff]  ;;  %5433 = vmatpush1.bf16.msra.mxu1 %v7195_v42  ;;  %5464 = vmatprep.mubr.bf16.mxu1 %v7852_v49 }
  0xd6   : > { %v7830_v39 = vld [vmem:[%s8715_s0 + $0x20] sm:$0xff]  ;;  %v7188_v44 = vcombine.high %v928_v37, %v932_v38  ;;  %5393 = vmatprep.subr.bf16.mxu0 %v7060_v43  ;;  %v7187_v51 = vcombine.low %v928_v37, %v932_v38 }
  0xd7   : > { %v792_v45 = vld [vmem:[%s7625_s8 + $0x1140] sm:$0xff]  ;;  %v7845_v53 = vcombine.high %v7830_v39, %v7830_v39  ;;  %5394 = vmatpush1.bf16.msra.mxu0 %v7059_v50 }
  0xd8   : > { %v796_v46 = vld [vmem:[%s7625_s8 + $0x1160] sm:$0xff]  ;;  %5434 = vmatprep.subr.bf16.mxu1 %v7188_v44 }
  0xd9   : > { %v920_v47 = vld [vmem:[%s7625_s8 + $0x1540] sm:$0xff]  ;;  %v7052_v52 = vcombine.high %v792_v45, %v796_v46  ;;  %5423 = vmatprep.mubr.bf16.mxu0 %v7845_v53  ;;  %v7051_v62 = vcombine.low %v792_v45, %v796_v46  ;;  %5435 = vmatpush1.bf16.msra.mxu1 %v7187_v51 }
  0xda   : > { %v924_v48 = vld [vmem:[%s7625_s8 + $0x1560] sm:$0xff] }
  0xdb   : > { %v7180_v55 = vcombine.high %v920_v47, %v924_v48  ;;  %v784_v56 = vld [vmem:[%s7625_s8 + $0x1100] sm:$0xff]  ;;  %5395 = vmatprep.subr.bf16.mxu0 %v7052_v52  ;;  %v7179_v63 = vcombine.low %v920_v47, %v924_v48 }
  0xdc   : > { %v788_v57 = vld [vmem:[%s7625_s8 + $0x1120] sm:$0xff]  ;;  %5396 = vmatpush1.bf16.msra.mxu0 %v7051_v62 }
  0xdd   : > { %v912_v60 = vld [vmem:[%s7625_s8 + $0x1500] sm:$0xff]  ;;  %v7044_v0 = vcombine.high %v784_v56, %v788_v57  ;;  %5436 = vmatprep.subr.bf16.mxu1 %v7180_v55  ;;  %v7043_v6 = vcombine.low %v784_v56, %v788_v57 }
  0xde   : > { %v916_v61 = vld [vmem:[%s7625_s8 + $0x1520] sm:$0xff]  ;;  %5437 = vmatpush1.bf16.msra.mxu1 %v7179_v63 }
  0xdf   : > { %v7172_v1 = vcombine.high %v912_v60, %v916_v61  ;;  %v776_v2 = vld [vmem:[%s7625_s8 + $0x10c0] sm:$0xff]  ;;  %5397 = vmatprep.subr.bf16.mxu0 %v7044_v0  ;;  %v7171_v7 = vcombine.low %v912_v60, %v916_v61 }
  0xe0   : > { %v780_v3 = vld [vmem:[%s7625_s8 + $0x10e0] sm:$0xff]  ;;  %5398 = vmatpush1.bf16.msra.mxu0 %v7043_v6 }
  0xe1   : > { %v904_v4 = vld [vmem:[%s7625_s8 + $0x14c0] sm:$0xff]  ;;  %v7036_v8 = vcombine.high %v776_v2, %v780_v3  ;;  %5438 = vmatprep.subr.bf16.mxu1 %v7172_v1  ;;  %v7035_v14 = vcombine.low %v776_v2, %v780_v3 }
  0xe2   : > { %v908_v5 = vld [vmem:[%s7625_s8 + $0x14e0] sm:$0xff]  ;;  %5439 = vmatpush1.bf16.msra.mxu1 %v7171_v7 }
  0xe3   : > { %v7164_v9 = vcombine.high %v904_v4, %v908_v5  ;;  %v768_v10 = vld [vmem:[%s7625_s8 + $0x1080] sm:$0xff]  ;;  %5399 = vmatprep.subr.bf16.mxu0 %v7036_v8  ;;  %v7163_v15 = vcombine.low %v904_v4, %v908_v5 }
  0xe4   : > { %v772_v11 = vld [vmem:[%s7625_s8 + $0x10a0] sm:$0xff]  ;;  %5400 = vmatpush1.bf16.msra.mxu0 %v7035_v14 }
  0xe5   : > { %v896_v12 = vld [vmem:[%s7625_s8 + $0x1480] sm:$0xff]  ;;  %v7028_v17 = vcombine.high %v768_v10, %v772_v11  ;;  %5440 = vmatprep.subr.bf16.mxu1 %v7164_v9  ;;  %v7027_v25 = vcombine.low %v768_v10, %v772_v11 }
  0xe6   : > { %v900_v13 = vld [vmem:[%s7625_s8 + $0x14a0] sm:$0xff]  ;;  %5441 = vmatpush1.bf16.msra.mxu1 %v7163_v15 }
  0xe7   : > { %v7156_v18 = vcombine.high %v896_v12, %v900_v13  ;;  %v760_v21 = vld [vmem:[%s7625_s8 + $0x1040] sm:$0xff]  ;;  %5401 = vmatprep.subr.bf16.mxu0 %v7028_v17  ;;  %v7155_v26 = vcombine.low %v896_v12, %v900_v13 }
  0xe8   : > { %v764_v22 = vld [vmem:[%s7625_s8 + $0x1060] sm:$0xff]  ;;  %5402 = vmatpush1.bf16.msra.mxu0 %v7027_v25 }
  0xe9   : > { %v888_v23 = vld [vmem:[%s7625_s8 + $0x1440] sm:$0xff]  ;;  %v7020_v27 = vcombine.high %v760_v21, %v764_v22  ;;  %5442 = vmatprep.subr.bf16.mxu1 %v7156_v18  ;;  %v7019_v34 = vcombine.low %v760_v21, %v764_v22 }
  0xea   : > { %v892_v24 = vld [vmem:[%s7625_s8 + $0x1460] sm:$0xff]  ;;  %5443 = vmatpush1.bf16.msra.mxu1 %v7155_v26 }
  0xeb   : > { %v7148_v28 = vcombine.high %v888_v23, %v892_v24  ;;  %v752_v30 = vld [vmem:[%s7625_s8 + $0x1000] sm:$0xff]  ;;  %5403 = vmatprep.subr.bf16.mxu0 %v7020_v27  ;;  %v7147_v35 = vcombine.low %v888_v23, %v892_v24 }
  0xec   : > { %v756_v31 = vld [vmem:[%s7625_s8 + $0x1020] sm:$0xff]  ;;  %5404 = vmatpush1.bf16.msra.mxu0 %v7019_v34 }
  0xed   : > { %v880_v32 = vld [vmem:[%s7625_s8 + $0x1400] sm:$0xff]  ;;  %v7012_v37 = vcombine.high %v752_v30, %v756_v31  ;;  %5444 = vmatprep.subr.bf16.mxu1 %v7148_v28  ;;  %v7011_v45 = vcombine.low %v752_v30, %v756_v31 }
  0xee   : > { %v884_v33 = vld [vmem:[%s7625_s8 + $0x1420] sm:$0xff]  ;;  %5445 = vmatpush1.bf16.msra.mxu1 %v7147_v35 }
  0xef   : > { %v7140_v38 = vcombine.high %v880_v32, %v884_v33  ;;  %v872_v41 = vld [vmem:[%s7625_s8 + $0x13c0] sm:$0xff]  ;;  %5405 = vmatprep.subr.bf16.mxu0 %v7012_v37  ;;  %v7139_v46 = vcombine.low %v880_v32, %v884_v33 }
  0xf0   : > { %v876_v42 = vld [vmem:[%s7625_s8 + $0x13e0] sm:$0xff]  ;;  %5406 = vmatpush1.bf16.msra.mxu0 %v7011_v45 }
  0xf1   : > { %v1000_v43 = vld [vmem:[%s7625_s8 + $0x17c0] sm:$0xff]  ;;  %v7132_v47 = vcombine.high %v872_v41, %v876_v42  ;;  %5446 = vmatprep.subr.bf16.mxu1 %v7140_v38  ;;  %v7131_v56 = vcombine.low %v872_v41, %v876_v42 }
  0xf2   : > { %v1004_v44 = vld [vmem:[%s7625_s8 + $0x17e0] sm:$0xff]  ;;  %5447 = vmatpush1.bf16.msra.mxu1 %v7139_v46 }
  0xf3   : > { %v7260_v48 = vcombine.high %v1000_v43, %v1004_v44  ;;  %v864_v50 = vld [vmem:[%s7625_s8 + $0x1380] sm:$0xff]  ;;  %5407 = vmatprep.subr.bf16.mxu0 %v7132_v47  ;;  %v7259_v57 = vcombine.low %v1000_v43, %v1004_v44 }
  0xf4   : > { %v868_v51 = vld [vmem:[%s7625_s8 + $0x13a0] sm:$0xff]  ;;  %5408 = vmatpush2.bf16.msra.mxu0 %v7131_v56 }
  0xf5   : > { %v992_v52 = vld [vmem:[%s7625_s8 + $0x1780] sm:$0xff]  ;;  %v7124_v60 = vcombine.high %v864_v50, %v868_v51  ;;  %5448 = vmatprep.subr.bf16.mxu1 %v7260_v48  ;;  %v7123_v2 = vcombine.low %v864_v50, %v868_v51 }
  0xf6   : > { %v996_v55 = vld [vmem:[%s7625_s8 + $0x17a0] sm:$0xff]  ;;  %5449 = vmatpush2.bf16.msra.mxu1 %v7259_v57 }
  0xf7   : > { %v7252_v61 = vcombine.high %v992_v52, %v996_v55  ;;  %v856_v62 = vld [vmem:[%s7625_s8 + $0x1340] sm:$0xff]  ;;  %5409 = vmatprep.subr.bf16.mxu0 %v7124_v60  ;;  %v7251_v3 = vcombine.low %v992_v52, %v996_v55  ;;  %v297_v60 = vld [vmem:[%s7625_s8 + $0x1c8] sm:$0xff] }
  0xf8   : > { %v860_v63 = vld [vmem:[%s7625_s8 + $0x1360] sm:$0xff]  ;;  %5410 = vmatpush2.bf16.msra.mxu0 %v7123_v2 }
  0xf9   : > { %v984_v0 = vld [vmem:[%s7625_s8 + $0x1740] sm:$0xff]  ;;  %v7116_v4 = vcombine.high %v856_v62, %v860_v63  ;;  %5450 = vmatprep.subr.bf16.mxu1 %v7252_v61  ;;  %v7115_v10 = vcombine.low %v856_v62, %v860_v63  ;;  %v301_v61 = vld [vmem:[%s7625_s8 + $0x1e8] sm:$0xff] }
  0xfa   : > { %v988_v1 = vld [vmem:[%s7625_s8 + $0x1760] sm:$0xff]  ;;  %5451 = vmatpush2.bf16.msra.mxu1 %v7251_v3 }
  0xfb   : > { %v7244_v5 = vcombine.high %v984_v0, %v988_v1  ;;  %v848_v6 = vld [vmem:[%s7625_s8 + $0x1300] sm:$0xff]  ;;  %5411 = vmatprep.subr.bf16.mxu0 %v7116_v4  ;;  %v7243_v11 = vcombine.low %v984_v0, %v988_v1  ;;  %v6558_v1 = vcombine.high %v297_v60, %v301_v61  ;;  %v7917_v4 = vcombine.low %v7830_v39, %v7830_v39 }
  0xfc   : > { %v852_v7 = vld [vmem:[%s7625_s8 + $0x1320] sm:$0xff]  ;;  %5412 = vmatpush2.bf16.msra.mxu0 %v7115_v10 }
  0xfd   : > { %v976_v8 = vld [vmem:[%s7625_s8 + $0x1700] sm:$0xff]  ;;  %v7108_v12 = vcombine.high %v848_v6, %v852_v7  ;;  %5452 = vmatprep.subr.bf16.mxu1 %v7244_v5  ;;  %v7107_v21 = vcombine.low %v848_v6, %v852_v7  ;;  %v289_v5 = vld [vmem:[%s7625_s8 + $0x188] sm:$0xff]  ;;  %v7923_v7 = vcombine.low %v7839_v19, %v7839_v19 }
  0xfe   : > { %v980_v9 = vld [vmem:[%s7625_s8 + $0x1720] sm:$0xff]  ;;  %5453 = vmatpush2.bf16.msra.mxu1 %v7243_v11  ;;  %v293_v6 = vld [vmem:[%s7625_s8 + $0x1a8] sm:$0xff] }
  0xff   : > { %v7236_v13 = vcombine.high %v976_v8, %v980_v9  ;;  %v840_v14 = vld [vmem:[%s7625_s8 + $0x12c0] sm:$0xff]  ;;  %5413 = vmatprep.subr.bf16.mxu0 %v7108_v12  ;;  %v7235_v22 = vcombine.low %v976_v8, %v980_v9  ;;  %v6557_v9 = vcombine.low %v297_v60, %v301_v61  ;;  %v6550_v11 = vcombine.high %v289_v5, %v293_v6 }
 0x100   : > { %v844_v15 = vld [vmem:[%s7625_s8 + $0x12e0] sm:$0xff]  ;;  %5414 = vmatpush2.bf16.msra.mxu0 %v7107_v21 }
 0x101   : > { %v968_v17 = vld [vmem:[%s7625_s8 + $0x16c0] sm:$0xff]  ;;  %v7100_v23 = vcombine.high %v840_v14, %v844_v15  ;;  %5454 = vmatprep.subr.bf16.mxu1 %v7236_v13  ;;  %v7099_v30 = vcombine.low %v840_v14, %v844_v15  ;;  %v281_v13 = vld [vmem:[%s7625_s8 + $0x148] sm:$0xff]  ;;  %v6549_v15 = vcombine.low %v289_v5, %v293_v6 }
 0x102   : > { %v972_v18 = vld [vmem:[%s7625_s8 + $0x16e0] sm:$0xff]  ;;  %5455 = vmatpush2.bf16.msra.mxu1 %v7235_v22  ;;  %v285_v14 = vld [vmem:[%s7625_s8 + $0x168] sm:$0xff] }
 0x103   : > { %v7228_v24 = vcombine.high %v968_v17, %v972_v18  ;;  %v832_v25 = vld [vmem:[%s7625_s8 + $0x1280] sm:$0xff]  ;;  %5415 = vmatprep.subr.bf16.mxu0 %v7100_v23  ;;  %v7227_v31 = vcombine.low %v968_v17, %v972_v18  ;;  %v6542_v18 = vcombine.high %v281_v13, %v285_v14  ;;  %v7493_v23 = vmov 0  }
 0x104   : > { %v836_v26 = vld [vmem:[%s7625_s8 + $0x12a0] sm:$0xff]  ;;  %5416 = vmatpush2.bf16.msra.mxu0 %v7099_v30 }
 0x105   : > { %v960_v27 = vld [vmem:[%s7625_s8 + $0x1680] sm:$0xff]  ;;  %v7092_v32 = vcombine.high %v832_v25, %v836_v26  ;;  %5456 = vmatprep.subr.bf16.mxu1 %v7228_v24  ;;  %v7091_v41 = vcombine.low %v832_v25, %v836_v26  ;;  %v273_v24 = vld [vmem:[%s7625_s8 + $0x108] sm:$0xff] }
 0x106   : > { %v964_v28 = vld [vmem:[%s7625_s8 + $0x16a0] sm:$0xff]  ;;  %5457 = vmatpush2.bf16.msra.mxu1 %v7227_v31  ;;  %v277_v25 = vld [vmem:[%s7625_s8 + $0x128] sm:$0xff] }
 0x107   : > { %v7220_v33 = vcombine.high %v960_v27, %v964_v28  ;;  %v824_v34 = vld [vmem:[%s7625_s8 + $0x1240] sm:$0xff]  ;;  %5417 = vmatprep.subr.bf16.mxu0 %v7092_v32  ;;  %v7219_v42 = vcombine.low %v960_v27, %v964_v28  ;;  %v6541_v27 = vcombine.low %v281_v13, %v285_v14  ;;  %v6534_v30 = vcombine.high %v273_v24, %v277_v25 }
 0x108   : > { %v828_v35 = vld [vmem:[%s7625_s8 + $0x1260] sm:$0xff]  ;;  %5418 = vmatpush2.bf16.msra.mxu0 %v7091_v41 }
 0x109   : > { %v952_v37 = vld [vmem:[%s7625_s8 + $0x1640] sm:$0xff]  ;;  %v7084_v43 = vcombine.high %v824_v34, %v828_v35  ;;  %5458 = vmatprep.subr.bf16.mxu1 %v7220_v33  ;;  %v7083_v50 = vcombine.low %v824_v34, %v828_v35  ;;  %v265_v33 = vld [vmem:[%s7625_s8 + $0xc8] sm:$0xff] }
 0x10a   : > { %v956_v38 = vld [vmem:[%s7625_s8 + $0x1660] sm:$0xff]  ;;  %5459 = vmatpush2.bf16.msra.mxu1 %v7219_v42  ;;  %v269_v34 = vld [vmem:[%s7625_s8 + $0xe8] sm:$0xff] }
 0x10b   : > { %v7212_v44 = vcombine.high %v952_v37, %v956_v38  ;;  %v816_v45 = vld [vmem:[%s7625_s8 + $0x1200] sm:$0xff]  ;;  %5419 = vmatprep.subr.bf16.mxu0 %v7084_v43  ;;  %v7211_v51 = vcombine.low %v952_v37, %v956_v38  ;;  %v6533_v37 = vcombine.low %v273_v24, %v277_v25  ;;  %v6526_v41 = vcombine.high %v265_v33, %v269_v34 }
 0x10c   : > { %v820_v46 = vld [vmem:[%s7625_s8 + $0x1220] sm:$0xff]  ;;  %5420 = vmatpush2.bf16.msra.mxu0 %v7083_v50 }
 0x10d   : > { %v944_v47 = vld [vmem:[%s7625_s8 + $0x1600] sm:$0xff]  ;;  %v7076_v52 = vcombine.high %v816_v45, %v820_v46  ;;  %5460 = vmatprep.subr.bf16.mxu1 %v7212_v44  ;;  %v7075_v62 = vcombine.low %v816_v45, %v820_v46  ;;  %v257_v44 = vld [vmem:[%s7625_s8 + $0x88] sm:$0xff] }
 0x10e   : > { %v948_v48 = vld [vmem:[%s7625_s8 + $0x1620] sm:$0xff]  ;;  %5461 = vmatpush2.bf16.msra.mxu1 %v7211_v51  ;;  %v261_v45 = vld [vmem:[%s7625_s8 + $0xa8] sm:$0xff] }
 0x10f   : > { %v7204_v55 = vcombine.high %v944_v47, %v948_v48  ;;  %v1048_v56 = vld [vmem:[%s7625_s8 + $0x1940] sm:$0xff]  ;;  %5421 = vmatprep.subr.bf16.mxu0 %v7076_v52  ;;  %v7203_v63 = vcombine.low %v944_v47, %v948_v48  ;;  %v6525_v47 = vcombine.low %v265_v33, %v269_v34  ;;  %v6518_v50 = vcombine.high %v257_v44, %v261_v45  ;;  %v425_v51 = vld [vmem:[%s7625_s8 + $0x5c8] sm:$0xff] }
 0x110   : > { %v1052_v57 = vld [vmem:[%s7625_s8 + $0x1960] sm:$0xff]  ;;  %5422 = vmatpush2.bf16.msra.mxu0 %v7075_v62  ;;  %v429_v52 = vld [vmem:[%s7625_s8 + $0x5e8] sm:$0xff]  ;;  %v6517_v60 = vcombine.low %v257_v44, %v261_v45 }
 0x111   : > { %v7308_v0 = vcombine.high %v1048_v56, %v1052_v57  ;;  %5462 = vmatprep.subr.bf16.mxu1 %v7204_v55  ;;  %v1040_v2 = vld [vmem:[%s7625_s8 + $0x1900] sm:$0xff]  ;;  %v7307_v8 = vcombine.low %v1048_v56, %v1052_v57  ;;  %v249_v55 = vld [vmem:[%s7625_s8 + $0x48] sm:$0xff]  ;;  %v6686_v61 = vcombine.high %v425_v51, %v429_v52  ;;  %v6685_v5 = vcombine.low %v425_v51, %v429_v52 }
 0x112   : > { %v1044_v3 = vld [vmem:[%s7625_s8 + $0x1920] sm:$0xff]  ;;  %5463 = vmatpush2.bf16.msra.mxu1 %v7203_v63  ;;  %v253_v56 = vld [vmem:[%s7625_s8 + $0x68] sm:$0xff] }
 0x113   : > { %5477 = vmatprep.subr.bf16.mxu0 %v7308_v0  ;;  %v7300_v10 = vcombine.high %v1040_v2, %v1044_v3  ;;  %5514 = vmatprep.subr.bf16.mxu1 %v6558_v1  ;;  %v1032_v12 = vld [vmem:[%s7625_s8 + $0x18c0] sm:$0xff]  ;;  %v7299_v19 = vcombine.low %v1040_v2, %v1044_v3  ;;  %v6510_v62 = vcombine.high %v249_v55, %v253_v56  ;;  %v417_v63 = vld [vmem:[%s7625_s8 + $0x588] sm:$0xff]  ;;  %v7385_v1 = vld [vmem:[%s8715_s0 + $0x30] ss:$0 sps:$4 sm:$0xff]  }
 0x114   : > { %v1036_v39 = vld [vmem:[%s7625_s8 + $0x18e0] sm:$0xff]  ;;  %5424 = vmatmul.mubr.bf16.vlgmr.msra.gmra.mxu0 %v7917_v4  ;;  %v421_v0 = vld [vmem:[%s7625_s8 + $0x5a8] sm:$0xff]  ;;  %v6509_v6 = vcombine.low %v249_v55, %v253_v56 }
 0x115   : > { %5465 = vmatmul.mubr.bf16.vlgmr.msra.gmra.mxu1 %v7923_v7  ;;  %5478 = vmatpush1.bf16.msra.mxu0 %v7307_v8  ;;  %v7292_v17 = vcombine.high %v1032_v12, %v1036_v39  ;;  %v1024_v21 = vld [vmem:[%s7625_s8 + $0x1880] sm:$0xff]  ;;  %v7291_v26 = vcombine.low %v1032_v12, %v1036_v39  ;;  %v241_v2 = vld [vmem:[%s7625_s8 + $0x8] sm:$0xff]  ;;  %v6678_v8 = vcombine.high %v417_v63, %v421_v0 }
 0x116   : > { %5515 = vmatpush1.bf16.msra.mxu1 %v6557_v9  ;;  %5479 = vmatprep.subr.bf16.mxu0 %v7300_v10  ;;  %v1028_v22 = vld [vmem:[%s7625_s8 + $0x18a0] sm:$0xff]  ;;  %v245_v3 = vld [vmem:[%s7625_s8 + $0x28] sm:$0xff]  ;;  %v6677_v13 = vcombine.low %v417_v63, %v421_v0 }
 0x117   : > { %5516 = vmatprep.subr.bf16.mxu1 %v6550_v11  ;;  %5505 = vmatprep.mubr.bf16.mxu0 %v7493_v23  ;;  %v7284_v28 = vcombine.high %v1024_v21, %v1028_v22  ;;  %v1016_v31 = vld [vmem:[%s7625_s8 + $0x1840] sm:$0xff]  ;;  %v7283_v35 = vcombine.low %v1024_v21, %v1028_v22  ;;  %v6502_v9 = vcombine.high %v241_v2, %v245_v3  ;;  %v409_v10 = vld [vmem:[%s7625_s8 + $0x548] sm:$0xff] }
 0x118   : > { %5546 = vmatprep.mubr.bf16.mxu1 %v7679_v58  ;;  %v1020_v32 = vld [vmem:[%s7625_s8 + $0x1860] sm:$0xff]  ;;  %v413_v11 = vld [vmem:[%s7625_s8 + $0x568] sm:$0xff]  ;;  %v6501_v14 = vcombine.low %v241_v2, %v245_v3 }
 0x119   : > { %5480 = vmatpush1.bf16.msra.mxu0 %v7299_v19  ;;  %v7276_v38 = vcombine.high %v1016_v31, %v1020_v32  ;;  %v1008_v42 = vld [vmem:[%s7625_s8 + $0x1800] sm:$0xff]  ;;  %v7275_v46 = vcombine.low %v1016_v31, %v1020_v32  ;;  %v361_v12 = vld [vmem:[%s7625_s8 + $0x3c8] sm:$0xff]  ;;  %v6670_v19 = vcombine.high %v409_v10, %v413_v11  ;;  %v6669_v24 = vcombine.low %v409_v10, %v413_v11 }
 0x11a   : > { %5517 = vmatpush1.bf16.msra.mxu1 %v6549_v15  ;;  %5481 = vmatprep.subr.bf16.mxu0 %v7292_v17  ;;  %v1012_v43 = vld [vmem:[%s7625_s8 + $0x1820] sm:$0xff]  ;;  %v365_v39 = vld [vmem:[%s7625_s8 + $0x3e8] sm:$0xff] }
 0x11b   : > { %5518 = vmatprep.subr.bf16.mxu1 %v6542_v18  ;;  %v7268_v48 = vcombine.high %v1008_v42, %v1012_v43  ;;  %v7267_v57 = vcombine.low %v1008_v42, %v1012_v43  ;;  %v6622_v15 = vcombine.high %v361_v12, %v365_v39  ;;  %v401_v17 = vld [vmem:[%s7625_s8 + $0x508] sm:$0xff]  ;;  %v6621_v25 = vcombine.low %v361_v12, %v365_v39 }
 0x11c   : > { %v405_v18 = vld [vmem:[%s7625_s8 + $0x528] sm:$0xff]  ;;  %v1058_v12 = vlaneseq }
 0x11d   : > { %5482 = vmatpush1.bf16.msra.mxu0 %v7291_v26  ;;  %v353_v21 = vld [vmem:[%s7625_s8 + $0x388] sm:$0xff]  ;;  %v6662_v26 = vcombine.high %v401_v17, %v405_v18  ;;  %v6661_v33 = vcombine.low %v401_v17, %v405_v18 }
 0x11e   : > { %5519 = vmatpush1.bf16.msra.mxu1 %v6541_v27  ;;  %5483 = vmatprep.subr.bf16.mxu0 %v7284_v28  ;;  %v357_v22 = vld [vmem:[%s7625_s8 + $0x3a8] sm:$0xff] }
 0x11f   : > { %5520 = vmatprep.subr.bf16.mxu1 %v6534_v30  ;;  %v6614_v27 = vcombine.high %v353_v21, %v357_v22  ;;  %v393_v28 = vld [vmem:[%s7625_s8 + $0x4c8] sm:$0xff]  ;;  %v6613_v34 = vcombine.low %v353_v21, %v357_v22  ;;  %v7990_v22 = vshrl.u32 %v1058_v12, 7 }
 0x120   : > { %v397_v30 = vld [vmem:[%s7625_s8 + $0x4e8] sm:$0xff] }
 0x121   : > { %5484 = vmatpush1.bf16.msra.mxu0 %v7283_v35  ;;  %v345_v31 = vld [vmem:[%s7625_s8 + $0x348] sm:$0xff]  ;;  %v6654_v35 = vcombine.high %v393_v28, %v397_v30  ;;  %v6653_v44 = vcombine.low %v393_v28, %v397_v30 }
 0x122   : > { %5521 = vmatpush1.bf16.msra.mxu1 %v6533_v37  ;;  %5485 = vmatprep.subr.bf16.mxu0 %v7276_v38  ;;  %v349_v32 = vld [vmem:[%s7625_s8 + $0x368] sm:$0xff] }
 0x123   : > { %5522 = vmatprep.subr.bf16.mxu1 %v6526_v41  ;;  %v6606_v37 = vcombine.high %v345_v31, %v349_v32  ;;  %v385_v38 = vld [vmem:[%s7625_s8 + $0x488] sm:$0xff]  ;;  %v6605_v45 = vcombine.low %v345_v31, %v349_v32 }
 0x124   : > { %v389_v41 = vld [vmem:[%s7625_s8 + $0x4a8] sm:$0xff] }
 0x125   : > { %5486 = vmatpush1.bf16.msra.mxu0 %v7275_v46  ;;  %v337_v42 = vld [vmem:[%s7625_s8 + $0x308] sm:$0xff]  ;;  %v6646_v46 = vcombine.high %v385_v38, %v389_v41  ;;  %v6645_v55 = vcombine.low %v385_v38, %v389_v41  ;;  %v1064_v41 = vsub.s32 1, %v7990_v22 }
 0x126   : > { %5523 = vmatpush1.bf16.msra.mxu1 %v6525_v47  ;;  %5487 = vmatprep.subr.bf16.mxu0 %v7268_v48  ;;  %v341_v43 = vld [vmem:[%s7625_s8 + $0x328] sm:$0xff] }
 0x127   : > { %5524 = vmatprep.subr.bf16.mxu1 %v6518_v50  ;;  %v6598_v47 = vcombine.high %v337_v42, %v341_v43  ;;  %v377_v48 = vld [vmem:[%s7625_s8 + $0x448] sm:$0xff]  ;;  %v6597_v56 = vcombine.low %v337_v42, %v341_v43 }
 0x128   : > { %v381_v50 = vld [vmem:[%s7625_s8 + $0x468] sm:$0xff] }
 0x129   : > { %5488 = vmatpush1.bf16.msra.mxu0 %v7267_v57  ;;  %v329_v51 = vld [vmem:[%s7625_s8 + $0x2c8] sm:$0xff]  ;;  %v6638_v57 = vcombine.high %v377_v48, %v381_v50 }
 0x12a   : > { %5525 = vmatpush1.bf16.msra.mxu1 %v6517_v60  ;;  %5555 = vmatprep.subr.bf16.mxu0 %v6686_v61  ;;  %v333_v52 = vld [vmem:[%s7625_s8 + $0x2e8] sm:$0xff] }
 0x12b   : > { %5526 = vmatprep.subr.bf16.mxu1 %v6510_v62  ;;  %v6590_v60 = vcombine.high %v329_v51, %v333_v52  ;;  %v369_v61 = vld [vmem:[%s7625_s8 + $0x408] sm:$0xff]  ;;  %v6589_v2 = vcombine.low %v329_v51, %v333_v52 }
 0x12c   : > { %7315 = vmatmul.mubr.msk.bf16.vlgmr.msra.gmra.mxu0 %vm5223_vm0, %v7385_v1  ;;  %v373_v62 = vld [vmem:[%s7625_s8 + $0x428] sm:$0xff]  ;;  %v6637_v1 = vcombine.low %v377_v48, %v381_v50 }
 0x12d   : > { %5556 = vmatpush1.bf16.msra.mxu0 %v6685_v5  ;;  %5587 = vmatprep.mubr.bf16.mxu0 %v7683_v59  ;;  %v321_v63 = vld [vmem:[%s7625_s8 + $0x288] sm:$0xff]  ;;  %v6630_v3 = vcombine.high %v369_v61, %v373_v62  ;;  %v6629_v11 = vcombine.low %v369_v61, %v373_v62 }
 0x12e   : > { %5527 = vmatpush1.bf16.msra.mxu1 %v6509_v6  ;;  %5557 = vmatprep.subr.bf16.mxu0 %v6678_v8  ;;  %v325_v0 = vld [vmem:[%s7625_s8 + $0x2a8] sm:$0xff] }
 0x12f   : > { %5528 = vmatprep.subr.bf16.mxu1 %v6502_v9  ;;  %v6582_v5 = vcombine.high %v321_v63, %v325_v0  ;;  %v489_v6 = vld [vmem:[%s7625_s8 + $0x7c8] sm:$0xff]  ;;  %v6581_v39 = vcombine.low %v321_v63, %v325_v0 }
 0x130   : > { %v493_v8 = vld [vmem:[%s7625_s8 + $0x7e8] sm:$0xff] }
 0x131   : > { %5558 = vmatpush1.bf16.msra.mxu0 %v6677_v13  ;;  %v313_v9 = vld [vmem:[%s7625_s8 + $0x248] sm:$0xff]  ;;  %v6750_v13 = vcombine.high %v489_v6, %v493_v8  ;;  %v6749_v21 = vcombine.low %v489_v6, %v493_v8 }
 0x132   : > { %5529 = vmatpush1.bf16.msra.mxu1 %v6501_v14  ;;  %5559 = vmatprep.subr.bf16.mxu0 %v6670_v19  ;;  %v317_v10 = vld [vmem:[%s7625_s8 + $0x268] sm:$0xff] }
 0x133   : > { %5530 = vmatprep.subr.bf16.mxu1 %v6622_v15  ;;  %v6574_v14 = vcombine.high %v313_v9, %v317_v10  ;;  %v481_v19 = vld [vmem:[%s7625_s8 + $0x788] sm:$0xff] }
 0x134   : > { %v485_v15 = vld [vmem:[%s7625_s8 + $0x7a8] sm:$0xff] }
 0x135   : > { %5560 = vmatpush1.bf16.msra.mxu0 %v6669_v24  ;;  %v305_v17 = vld [vmem:[%s7625_s8 + $0x208] sm:$0xff]  ;;  %v6573_v24 = vcombine.low %v313_v9, %v317_v10  ;;  %v6741_v32 = vcombine.low %v481_v19, %v485_v15 }
 0x136   : > { %5531 = vmatpush2.bf16.msra.mxu1 %v6621_v25  ;;  %5561 = vmatprep.subr.bf16.mxu0 %v6662_v26  ;;  %v309_v18 = vld [vmem:[%s7625_s8 + $0x228] sm:$0xff]  ;;  %v6742_v25 = vcombine.high %v481_v19, %v485_v15 }
 0x137   : > { %5532 = vmatprep.subr.bf16.mxu1 %v6614_v27  ;;  %v6566_v26 = vcombine.high %v305_v17, %v309_v18  ;;  %v473_v27 = vld [vmem:[%s7625_s8 + $0x748] sm:$0xff] }
 0x138   : > { %v477_v28 = vld [vmem:[%s7625_s8 + $0x768] sm:$0xff] }
 0x139   : > { %5562 = vmatpush1.bf16.msra.mxu0 %v6661_v33  ;;  %v553_v30 = vld [vmem:[%s7625_s8 + $0x9c8] sm:$0xff]  ;;  %v1060_v33 = vsub.s32 0, %v7990_v22 }
 0x13a   : > { %5533 = vmatpush2.bf16.msra.mxu1 %v6613_v34  ;;  %5563 = vmatprep.subr.bf16.mxu0 %v6654_v35  ;;  %v557_v31 = vld [vmem:[%s7625_s8 + $0x9e8] sm:$0xff]  ;;  %v6565_v34 = vcombine.low %v305_v17, %v309_v18 }
 0x13b   : > { %5534 = vmatprep.subr.bf16.mxu1 %v6606_v37  ;;  %v1056_v35 = vld [vmem:[%s7631_s25] sm:$0xff]  ;;  %v6734_v37 = vcombine.high %v473_v27, %v477_v28  ;;  %v6814_v38 = vcombine.high %v553_v30, %v557_v31  ;;  %v6813_v48 = vcombine.low %v553_v30, %v557_v31 }
 0x13c   : > { %v465_v42 = vld [vmem:[%s7625_s8 + $0x708] sm:$0xff]  ;;  %v1065_v51 = vrot.slane %v1056_v35, %v1064_v41 }
 0x13d   : > { %5564 = vmatpush1.bf16.msra.mxu0 %v6653_v44  ;;  %v469_v43 = vld [vmem:[%s7625_s8 + $0x728] sm:$0xff] }
 0x13e   : > { %5535 = vmatpush2.bf16.msra.mxu1 %v6605_v45  ;;  %5565 = vmatprep.subr.bf16.mxu0 %v6646_v46  ;;  %v545_v44 = vld [vmem:[%s7625_s8 + $0x988] sm:$0xff]  ;;  %v1061_v46 = vrot.slane %v1056_v35, %v1060_v33  ;;  %v6726_v50 = vcombine.high %v465_v42, %v469_v43  ;;  %v6725_v0 = vcombine.low %v465_v42, %v469_v43 }
 0x13f   : > { %5536 = vmatprep.subr.bf16.mxu1 %v6598_v47  ;;  %v549_v45 = vld [vmem:[%s7625_s8 + $0x9a8] sm:$0xff]  ;;  %v6733_v47 = vcombine.low %v473_v27, %v477_v28 }
 0x140   : > { %v6806_v52 = vcombine.high %v545_v44, %v549_v45  ;;  %v541_v61 = vld [vmem:[%s7625_s8 + $0x968] sm:$0xff] }
 0x141   : > { %5566 = vmatpush1.bf16.msra.mxu0 %v6645_v55  ;;  %v457_v55 = vld [vmem:[%s7625_s8 + $0x6c8] sm:$0xff] }
 0x142   : > { %5537 = vmatpush2.bf16.msra.mxu1 %v6597_v56  ;;  %5567 = vmatprep.subr.bf16.mxu0 %v6638_v57  ;;  %v461_v56 = vld [vmem:[%s7625_s8 + $0x6e8] sm:$0xff] }
 0x143   : > { %5538 = vmatprep.subr.bf16.mxu1 %v6590_v60  ;;  %v537_v60 = vld [vmem:[%s7625_s8 + $0x948] sm:$0xff]  ;;  %v6717_v15 = vcombine.low %v457_v55, %v461_v56 }
 0x144   : > { %v6798_v9 = vcombine.high %v537_v60, %v541_v61  ;;  %v449_v10 = vld [vmem:[%s7625_s8 + $0x688] sm:$0xff]  ;;  %v6797_v18 = vcombine.low %v537_v60, %v541_v61 }
 0x145   : > { %5568 = vmatpush1.bf16.msra.mxu0 %v6637_v1  ;;  %v445_v27 = vld [vmem:[%s7625_s8 + $0x668] sm:$0xff] }
 0x146   : > { %5539 = vmatpush2.bf16.msra.mxu1 %v6589_v2  ;;  %5569 = vmatprep.subr.bf16.mxu0 %v6630_v3  ;;  %v6805_v2 = vcombine.low %v545_v44, %v549_v45  ;;  %v6718_v3 = vcombine.high %v457_v55, %v461_v56  ;;  %v521_v28 = vld [vmem:[%s7625_s8 + $0x8c8] sm:$0xff] }
 0x147   : > { %5540 = vmatprep.subr.bf16.mxu1 %v6582_v5  ;;  %v525_v30 = vld [vmem:[%s7625_s8 + $0x8e8] sm:$0xff] }
 0x148   : > { %v433_v35 = vld [vmem:[%s7625_s8 + $0x608] sm:$0xff]  ;;  %v6781_v43 = vcombine.low %v521_v28, %v525_v30 }
 0x149   : > { %5570 = vmatpush1.bf16.msra.mxu0 %v6629_v11  ;;  %v453_v11 = vld [vmem:[%s7625_s8 + $0x6a8] sm:$0xff] }
 0x14a   : > { %5541 = vmatpush2.bf16.msra.mxu1 %v6581_v39  ;;  %5571 = vmatprep.subr.bf16.mxu0 %v6750_v13  ;;  %v529_v39 = vld [vmem:[%s7625_s8 + $0x908] sm:$0xff]  ;;  %v6709_v31 = vcombine.low %v449_v10, %v453_v11 }
 0x14b   : > { %5542 = vmatprep.subr.bf16.mxu1 %v6574_v14  ;;  %v533_v13 = vld [vmem:[%s7625_s8 + $0x928] sm:$0xff] }
 0x14c   : > { %v517_v41 = vld [vmem:[%s7625_s8 + $0x8a8] sm:$0xff] }
 0x14d   : > { %5572 = vmatpush2.bf16.msra.mxu0 %v6749_v21  ;;  %v6710_v21 = vcombine.high %v449_v10, %v453_v11  ;;  %v677_v60 = vld [vmem:[%s7625_s8 + $0xda8] sm:$0xff] }
 0x14e   : > { %5543 = vmatpush2.bf16.msra.mxu1 %v6573_v24  ;;  %5573 = vmatprep.subr.bf16.mxu0 %v6742_v25  ;;  %v6790_v25 = vcombine.high %v529_v39, %v533_v13  ;;  %v497_v61 = vld [vmem:[%s7625_s8 + $0x808] sm:$0xff] }
 0x14f   : > { %5544 = vmatprep.subr.bf16.mxu1 %v6566_v26  ;;  %v441_v26 = vld [vmem:[%s7625_s8 + $0x648] sm:$0xff] }
 0x150   : > { %v6702_v33 = vcombine.high %v441_v26, %v445_v27  ;;  %v6701_v42 = vcombine.low %v441_v26, %v445_v27  ;;  %v649_v26 = vld [vmem:[%s7625_s8 + $0xcc8] sm:$0xff] }
 0x151   : > { %5574 = vmatpush2.bf16.msra.mxu0 %v6741_v32  ;;  %v6789_v32 = vcombine.low %v529_v39, %v533_v13  ;;  %v657_v13 = vld [vmem:[%s7625_s8 + $0xd08] sm:$0xff] }
 0x152   : > { %5545 = vmatpush2.bf16.msra.mxu1 %v6565_v34  ;;  %5575 = vmatprep.subr.bf16.mxu0 %v6734_v37  ;;  %v5261_v57 = vpop.f32.mrf.mxu0  ;;  %v6782_v34 = vcombine.high %v521_v28, %v525_v30  ;;  %v437_v37 = vld [vmem:[%s7625_s8 + $0x628] sm:$0xff] }
 0x153   : > { %5596 = vmatprep.subr.bf16.mxu1 %v6814_v38  ;;  %v5262_v62 = vadd.f32 %v5261_v57, %v1061_v46  ;;  %v513_v38 = vld [vmem:[%s7625_s8 + $0x888] sm:$0xff]  ;;  %v6694_v44 = vcombine.high %v433_v35, %v437_v37 }
 0x154   : > { %v5302_v63 = vpop.f32.mrf.mxu1  ;;  %v5263_v1 = vpop.f32.mrf.mxu0  ;;  %v6774_v45 = vcombine.high %v513_v38, %v517_v41  ;;  %v681_v46 = vld [vmem:[%s7625_s8 + $0xdc8] sm:$0xff] }
 0x155   : > { %5547 = vmatmul.mubr.bf16.vlgmr.msra.gmra.mxu1 %v7729_v16  ;;  %5576 = vmatpush2.bf16.msra.mxu0 %v6733_v47  ;;  %v8008_v5 = vadd.f32 %v5302_v63, %v5262_v62  ;;  %v5264_v6 = vadd.f32 %v5263_v1, %v1065_v51  ;;  %v685_v47 = vld [vmem:[%s7625_s8 + $0xde8] sm:$0xff]  ;;  %v6693_v51 = vcombine.low %v433_v35, %v437_v37 }
 0x156   : > { %5597 = vmatpush1.bf16.msra.mxu1 %v6813_v48  ;;  %5577 = vmatprep.subr.bf16.mxu0 %v6726_v50  ;;  %v5304_v8 = vpop.f32.mrf.mxu1  ;;  %v5265_v12 = vpop.f32.mrf.mxu0  ;;  %v505_v48 = vld [vmem:[%s7625_s8 + $0x848] sm:$0xff]  ;;  %v6942_v55 = vcombine.high %v681_v46, %v685_v47  ;;  %v6941_v63 = vcombine.low %v681_v46, %v685_v47 }
 0x157   : > { %5598 = vmatprep.subr.bf16.mxu1 %v6806_v52  ;;  %5628 = vmatprep.mubr.bf16.mxu1 %v7751_v54  ;;  %v8015_v14 = vadd.f32 %v5304_v8, %v5264_v6  ;;  %v509_v50 = vld [vmem:[%s7625_s8 + $0x868] sm:$0xff]  ;;  %v6773_v52 = vcombine.low %v513_v38, %v517_v41 }
 0x158   : > { %v5306_v19 = vpop.f32.mrf.mxu1  ;;  %v5266_v17 = vpop.f32.mrf.mxu0  ;;  %v6766_v56 = vcombine.high %v505_v48, %v509_v50  ;;  %v673_v57 = vld [vmem:[%s7625_s8 + $0xd88] sm:$0xff] }
 0x159   : > { %5578 = vmatpush2.bf16.msra.mxu0 %v6725_v0  ;;  %v501_v62 = vld [vmem:[%s7625_s8 + $0x828] sm:$0xff]  ;;  %v6765_v0 = vcombine.low %v505_v48, %v509_v50  ;;  %v6934_v1 = vcombine.high %v673_v57, %v677_v60  ;;  %v6933_v10 = vcombine.low %v673_v57, %v677_v60 }
 0x15a   : > { %5599 = vmatpush1.bf16.msra.mxu1 %v6805_v2  ;;  %5579 = vmatprep.subr.bf16.mxu0 %v6718_v3  ;;  %v5307_v24 = vpop.f32.mrf.mxu1  ;;  %v6758_v2 = vcombine.high %v497_v61, %v501_v62  ;;  %v665_v3 = vld [vmem:[%s7625_s8 + $0xd48] sm:$0xff]  ;;  %v6757_v11 = vcombine.low %v497_v61, %v501_v62 }
 0x15b   : > { %5600 = vmatprep.subr.bf16.mxu1 %v6798_v9  ;;  %v669_v6 = vld [vmem:[%s7625_s8 + $0xd68] sm:$0xff] }
 0x15c   : > { %v617_v8 = vld [vmem:[%s7625_s8 + $0xbc8] sm:$0xff]  ;;  %v6926_v12 = vcombine.high %v665_v3, %v669_v6 }
 0x15d   : > { %5580 = vmatpush2.bf16.msra.mxu0 %v6717_v15  ;;  %v621_v9 = vld [vmem:[%s7625_s8 + $0xbe8] sm:$0xff] }
 0x15e   : > { %5601 = vmatpush1.bf16.msra.mxu1 %v6797_v18  ;;  %5581 = vmatprep.subr.bf16.mxu0 %v6710_v21  ;;  %v6878_v39 = vcombine.high %v617_v8, %v621_v9  ;;  %v661_v19 = vld [vmem:[%s7625_s8 + $0xd28] sm:$0xff]  ;;  %v6925_v18 = vcombine.low %v665_v3, %v669_v6  ;;  %v6877_v21 = vcombine.low %v617_v8, %v621_v9 }
 0x15f   : > { %5602 = vmatprep.subr.bf16.mxu1 %v6790_v25  ;;  %v609_v15 = vld [vmem:[%s7625_s8 + $0xb88] sm:$0xff]  ;;  %v6918_v24 = vcombine.high %v657_v13, %v661_v19 }
 0x160   : > { %v613_v17 = vld [vmem:[%s7625_s8 + $0xba8] sm:$0xff] }
 0x161   : > { %5582 = vmatpush2.bf16.msra.mxu0 %v6709_v31  ;;  %v6870_v25 = vcombine.high %v609_v15, %v613_v17  ;;  %v653_v27 = vld [vmem:[%s7625_s8 + $0xce8] sm:$0xff]  ;;  %v6917_v31 = vcombine.low %v657_v13, %v661_v19 }
 0x162   : > { %5603 = vmatpush1.bf16.msra.mxu1 %v6789_v32  ;;  %5583 = vmatprep.subr.bf16.mxu0 %v6702_v33  ;;  %v601_v28 = vld [vmem:[%s7625_s8 + $0xb48] sm:$0xff]  ;;  %v6869_v32 = vcombine.low %v609_v15, %v613_v17  ;;  %v6910_v33 = vcombine.high %v649_v26, %v653_v27 }
 0x163   : > { %5604 = vmatprep.subr.bf16.mxu1 %v6782_v34  ;;  %v605_v30 = vld [vmem:[%s7625_s8 + $0xb68] sm:$0xff] }
 0x164   : > { %v6862_v34 = vcombine.high %v601_v28, %v605_v30  ;;  %v641_v35 = vld [vmem:[%s7625_s8 + $0xc88] sm:$0xff] }
 0x165   : > { %5584 = vmatpush2.bf16.msra.mxu0 %v6701_v42  ;;  %v645_v37 = vld [vmem:[%s7625_s8 + $0xca8] sm:$0xff]  ;;  %v6909_v42 = vcombine.low %v649_v26, %v653_v27 }
 0x166   : > { %5605 = vmatpush1.bf16.msra.mxu1 %v6781_v43  ;;  %5585 = vmatprep.subr.bf16.mxu0 %v6694_v44  ;;  %v593_v38 = vld [vmem:[%s7625_s8 + $0xb08] sm:$0xff]  ;;  %v6861_v43 = vcombine.low %v601_v28, %v605_v30  ;;  %v6902_v44 = vcombine.high %v641_v35, %v645_v37 }
 0x167   : > { %5606 = vmatprep.subr.bf16.mxu1 %v6774_v45  ;;  %v597_v41 = vld [vmem:[%s7625_s8 + $0xb28] sm:$0xff] }
 0x168   : > { %v6854_v45 = vcombine.high %v593_v38, %v597_v41  ;;  %v633_v46 = vld [vmem:[%s7625_s8 + $0xc48] sm:$0xff] }
 0x169   : > { %5586 = vmatpush2.bf16.msra.mxu0 %v6693_v51  ;;  %v637_v47 = vld [vmem:[%s7625_s8 + $0xc68] sm:$0xff]  ;;  %v6901_v51 = vcombine.low %v641_v35, %v645_v37 }
 0x16a   : > { %5607 = vmatpush1.bf16.msra.mxu1 %v6773_v52  ;;  %5637 = vmatprep.subr.bf16.mxu0 %v6942_v55  ;;  %v585_v48 = vld [vmem:[%s7625_s8 + $0xac8] sm:$0xff]  ;;  %v6853_v52 = vcombine.low %v593_v38, %v597_v41  ;;  %v6894_v55 = vcombine.high %v633_v46, %v637_v47 }
 0x16b   : > { %5608 = vmatprep.subr.bf16.mxu1 %v6766_v56  ;;  %v589_v50 = vld [vmem:[%s7625_s8 + $0xae8] sm:$0xff] }
 0x16c   : > { %5588 = vmatmul.mubr.bf16.vlgmr.msra.gmra.mxu0 %v7740_v20  ;;  %v6846_v56 = vcombine.high %v585_v48, %v589_v50  ;;  %v625_v57 = vld [vmem:[%s7625_s8 + $0xc08] sm:$0xff] }
 0x16d   : > { %5638 = vmatpush1.bf16.msra.mxu0 %v6941_v63  ;;  %5669 = vmatprep.mubr.bf16.mxu0 %v7758_v29  ;;  %v629_v60 = vld [vmem:[%s7625_s8 + $0xc28] sm:$0xff]  ;;  %v6893_v63 = vcombine.low %v633_v46, %v637_v47 }
 0x16e   : > { %5609 = vmatpush1.bf16.msra.mxu1 %v6765_v0  ;;  %5639 = vmatprep.subr.bf16.mxu0 %v6934_v1  ;;  %v577_v61 = vld [vmem:[%s7625_s8 + $0xa88] sm:$0xff]  ;;  %v6845_v0 = vcombine.low %v585_v48, %v589_v50  ;;  %v6886_v1 = vcombine.high %v625_v57, %v629_v60 }
 0x16f   : > { %5610 = vmatprep.subr.bf16.mxu1 %v6758_v2  ;;  %v581_v62 = vld [vmem:[%s7625_s8 + $0xaa8] sm:$0xff] }
 0x170   : > { %v6838_v2 = vcombine.high %v577_v61, %v581_v62  ;;  %v745_v3 = vld [vmem:[%s7625_s8 + $0xfc8] sm:$0xff] }
 0x171   : > { %5640 = vmatpush1.bf16.msra.mxu0 %v6933_v10  ;;  %v749_v6 = vld [vmem:[%s7625_s8 + $0xfe8] sm:$0xff]  ;;  %v6885_v10 = vcombine.low %v625_v57, %v629_v60 }
 0x172   : > { %5611 = vmatpush1.bf16.msra.mxu1 %v6757_v11  ;;  %5641 = vmatprep.subr.bf16.mxu0 %v6926_v12  ;;  %v569_v8 = vld [vmem:[%s7625_s8 + $0xa48] sm:$0xff]  ;;  %v6837_v11 = vcombine.low %v577_v61, %v581_v62  ;;  %v7006_v12 = vcombine.high %v745_v3, %v749_v6 }
 0x173   : > { %5612 = vmatprep.subr.bf16.mxu1 %v6878_v39  ;;  %v573_v9 = vld [vmem:[%s7625_s8 + $0xa68] sm:$0xff] }
 0x174   : > { %v6830_v39 = vcombine.high %v569_v8, %v573_v9  ;;  %v737_v13 = vld [vmem:[%s7625_s8 + $0xf88] sm:$0xff] }
 0x175   : > { %5642 = vmatpush1.bf16.msra.mxu0 %v6925_v18  ;;  %v741_v19 = vld [vmem:[%s7625_s8 + $0xfa8] sm:$0xff]  ;;  %v7005_v18 = vcombine.low %v745_v3, %v749_v6 }
 0x176   : > { %5613 = vmatpush2.bf16.msra.mxu1 %v6877_v21  ;;  %5643 = vmatprep.subr.bf16.mxu0 %v6918_v24  ;;  %v561_v15 = vld [vmem:[%s7625_s8 + $0xa08] sm:$0xff]  ;;  %v6829_v21 = vcombine.low %v569_v8, %v573_v9  ;;  %v6998_v24 = vcombine.high %v737_v13, %v741_v19 }
 0x177   : > { %5614 = vmatprep.subr.bf16.mxu1 %v6870_v25  ;;  %v565_v17 = vld [vmem:[%s7625_s8 + $0xa28] sm:$0xff] }
 0x178   : > { %v6822_v25 = vcombine.high %v561_v15, %v565_v17  ;;  %v729_v26 = vld [vmem:[%s7625_s8 + $0xf48] sm:$0xff] }
 0x179   : > { %5644 = vmatpush1.bf16.msra.mxu0 %v6917_v31  ;;  %v733_v27 = vld [vmem:[%s7625_s8 + $0xf68] sm:$0xff]  ;;  %v6997_v31 = vcombine.low %v737_v13, %v741_v19 }
 0x17a   : > { %5615 = vmatpush2.bf16.msra.mxu1 %v6869_v32  ;;  %5645 = vmatprep.subr.bf16.mxu0 %v6910_v33  ;;  %v809_v28 = vld [vmem:[%s7625_s8 + $0x11c8] sm:$0xff]  ;;  %v6821_v32 = vcombine.low %v561_v15, %v565_v17  ;;  %v6990_v33 = vcombine.high %v729_v26, %v733_v27 }
 0x17b   : > { %5616 = vmatprep.subr.bf16.mxu1 %v6862_v34  ;;  %v813_v30 = vld [vmem:[%s7625_s8 + $0x11e8] sm:$0xff] }
 0x17c   : > { %v7070_v34 = vcombine.high %v809_v28, %v813_v30  ;;  %v721_v35 = vld [vmem:[%s7625_s8 + $0xf08] sm:$0xff] }
 0x17d   : > { %5646 = vmatpush1.bf16.msra.mxu0 %v6909_v42  ;;  %v725_v37 = vld [vmem:[%s7625_s8 + $0xf28] sm:$0xff]  ;;  %v6989_v42 = vcombine.low %v729_v26, %v733_v27 }
 0x17e   : > { %5617 = vmatpush2.bf16.msra.mxu1 %v6861_v43  ;;  %5647 = vmatprep.subr.bf16.mxu0 %v6902_v44  ;;  %v801_v38 = vld [vmem:[%s7625_s8 + $0x1188] sm:$0xff]  ;;  %v7069_v43 = vcombine.low %v809_v28, %v813_v30  ;;  %v6982_v44 = vcombine.high %v721_v35, %v725_v37 }
 0x17f   : > { %5618 = vmatprep.subr.bf16.mxu1 %v6854_v45  ;;  %v805_v41 = vld [vmem:[%s7625_s8 + $0x11a8] sm:$0xff] }
 0x180   : > { %v7062_v45 = vcombine.high %v801_v38, %v805_v41  ;;  %v713_v46 = vld [vmem:[%s7625_s8 + $0xec8] sm:$0xff]  ;;  %v7061_v60 = vcombine.low %v801_v38, %v805_v41 }
 0x181   : > { %5648 = vmatpush1.bf16.msra.mxu0 %v6901_v51  ;;  %v717_v47 = vld [vmem:[%s7625_s8 + $0xee8] sm:$0xff] }
 0x182   : > { %5619 = vmatpush2.bf16.msra.mxu1 %v6853_v52  ;;  %5649 = vmatprep.subr.bf16.mxu0 %v6894_v55  ;;  %v793_v50 = vld [vmem:[%s7625_s8 + $0x1148] sm:$0xff]  ;;  %v6974_v61 = vcombine.high %v713_v46, %v717_v47 }
 0x183   : > { %5620 = vmatprep.subr.bf16.mxu1 %v6846_v56  ;;  %v797_v51 = vld [vmem:[%s7625_s8 + $0x1168] sm:$0xff]  ;;  %v6981_v56 = vcombine.low %v721_v35, %v725_v37 }
 0x184   : > { %v785_v6 = vld [vmem:[%s7625_s8 + $0x1108] sm:$0xff] }
 0x185   : > { %5650 = vmatpush1.bf16.msra.mxu0 %v6893_v63  ;;  %v789_v8 = vld [vmem:[%s7625_s8 + $0x1128] sm:$0xff] }
 0x186   : > { %5621 = vmatpush2.bf16.msra.mxu1 %v6845_v0  ;;  %5651 = vmatprep.subr.bf16.mxu0 %v6886_v1  ;;  %v705_v1 = vld [vmem:[%s7625_s8 + $0xe88] sm:$0xff]  ;;  %v7046_v19 = vcombine.high %v785_v6, %v789_v8 }
 0x187   : > { %5622 = vmatprep.subr.bf16.mxu1 %v6838_v2  ;;  %v709_v2 = vld [vmem:[%s7625_s8 + $0xea8] sm:$0xff] }
 0x188   : > { %v697_v15 = vld [vmem:[%s7625_s8 + $0xe48] sm:$0xff] }
 0x189   : > { %5652 = vmatpush1.bf16.msra.mxu0 %v6885_v10  ;;  %v701_v17 = vld [vmem:[%s7625_s8 + $0xe68] sm:$0xff] }
 0x18a   : > { %5623 = vmatpush2.bf16.msra.mxu1 %v6837_v11  ;;  %5653 = vmatprep.subr.bf16.mxu0 %v7006_v12  ;;  %v6973_v11 = vcombine.low %v713_v46, %v717_v47  ;;  %v7053_v12 = vcombine.low %v793_v50, %v797_v51  ;;  %v6958_v26 = vcombine.high %v697_v15, %v701_v17  ;;  %v689_v28 = vld [vmem:[%s7625_s8 + $0xe08] sm:$0xff] }
 0x18b   : > { %5624 = vmatprep.subr.bf16.mxu1 %v6830_v39  ;;  %v6966_v39 = vcombine.high %v705_v1, %v709_v2  ;;  %v693_v30 = vld [vmem:[%s7625_s8 + $0xe28] sm:$0xff] }
 0x18c   : > { %v6950_v35 = vcombine.high %v689_v28, %v693_v30  ;;  %v937_v38 = vld [vmem:[%s7625_s8 + $0x15c8] sm:$0xff] }
 0x18d   : > { %5654 = vmatpush2.bf16.msra.mxu0 %v7005_v18  ;;  %v777_v18 = vld [vmem:[%s7625_s8 + $0x10c8] sm:$0xff] }
 0x18e   : > { %5625 = vmatpush2.bf16.msra.mxu1 %v6829_v21  ;;  %5655 = vmatprep.subr.bf16.mxu0 %v6998_v24  ;;  %v781_v21 = vld [vmem:[%s7625_s8 + $0x10e8] sm:$0xff]  ;;  %v6965_v24 = vcombine.low %v705_v1, %v709_v2 }
 0x18f   : > { %5626 = vmatprep.subr.bf16.mxu1 %v6822_v25  ;;  %v7045_v25 = vcombine.low %v785_v6, %v789_v8  ;;  %v7038_v27 = vcombine.high %v777_v18, %v781_v21  ;;  %v941_v41 = vld [vmem:[%s7625_s8 + $0x15e8] sm:$0xff] }
 0x190   : > { %v7198_v46 = vcombine.high %v937_v38, %v941_v41  ;;  %v913_v8 = vld [vmem:[%s7625_s8 + $0x1508] sm:$0xff] }
 0x191   : > { %5656 = vmatpush2.bf16.msra.mxu0 %v6997_v31  ;;  %v769_v31 = vld [vmem:[%s7625_s8 + $0x1088] sm:$0xff] }
 0x192   : > { %5627 = vmatpush2.bf16.msra.mxu1 %v6821_v32  ;;  %5657 = vmatprep.subr.bf16.mxu0 %v6990_v33  ;;  %v5343_v48 = vpop.f32.mrf.mxu0  ;;  %v773_v32 = vld [vmem:[%s7625_s8 + $0x10a8] sm:$0xff]  ;;  %v6957_v33 = vcombine.low %v697_v15, %v701_v17 }
 0x193   : > { %5678 = vmatprep.subr.bf16.mxu1 %v7070_v34  ;;  %v5344_v52 = vadd.f32 %v5343_v48, %v8008_v5  ;;  %v7054_v5 = vcombine.high %v793_v50, %v797_v51  ;;  %v7037_v34 = vcombine.low %v777_v18, %v781_v21  ;;  %v7030_v37 = vcombine.high %v769_v31, %v773_v32  ;;  %v929_v48 = vld [vmem:[%s7625_s8 + $0x1588] sm:$0xff] }
 0x194   : > { %v5384_v55 = vpop.f32.mrf.mxu1  ;;  %v5345_v57 = vpop.f32.mrf.mxu0  ;;  %v933_v50 = vld [vmem:[%s7625_s8 + $0x15a8] sm:$0xff] }
 0x195   : > { %5629 = vmatmul.mubr.bf16.vlgmr.msra.gmra.mxu1 %v7823_v36  ;;  %5658 = vmatpush2.bf16.msra.mxu0 %v6989_v42  ;;  %v8081_v62 = vadd.f32 %v5384_v55, %v5344_v52  ;;  %v5346_v63 = vadd.f32 %v5345_v57, %v8015_v14  ;;  %v761_v42 = vld [vmem:[%s7625_s8 + $0x1048] sm:$0xff]  ;;  %v7197_v55 = vcombine.low %v937_v38, %v941_v41 }
 0x196   : > { %5679 = vmatpush1.bf16.msra.mxu1 %v7069_v43  ;;  %5659 = vmatprep.subr.bf16.mxu0 %v6982_v44  ;;  %v5386_v0 = vpop.f32.mrf.mxu1  ;;  %v5347_v3 = vpop.f32.mrf.mxu0  ;;  %v765_v43 = vld [vmem:[%s7625_s8 + $0x1068] sm:$0xff]  ;;  %v6949_v44 = vcombine.low %v689_v28, %v693_v30  ;;  %v7190_v57 = vcombine.high %v929_v48, %v933_v50  ;;  %v7189_v1 = vcombine.low %v929_v48, %v933_v50 }
 0x197   : > { %5680 = vmatprep.subr.bf16.mxu1 %v7062_v45  ;;  %5710 = vmatprep.mubr.bf16.mxu1 %v7845_v53  ;;  %v8089_v9 = vadd.f32 %v5386_v0, %v5346_v63  ;;  %v7029_v45 = vcombine.low %v769_v31, %v773_v32  ;;  %v7022_v47 = vcombine.high %v761_v42, %v765_v43  ;;  %v753_v51 = vld [vmem:[%s7625_s8 + $0x1008] sm:$0xff] }
 0x198   : > { %v5388_v10 = vpop.f32.mrf.mxu1  ;;  %v5348_v14 = vpop.f32.mrf.mxu0  ;;  %v757_v52 = vld [vmem:[%s7625_s8 + $0x1028] sm:$0xff] }
 0x199   : > { %5660 = vmatpush2.bf16.msra.mxu0 %v6981_v56  ;;  %v7021_v56 = vcombine.low %v761_v42, %v765_v43  ;;  %v925_v63 = vld [vmem:[%s7625_s8 + $0x1568] sm:$0xff]  ;;  %v7013_v2 = vcombine.low %v753_v51, %v757_v52 }
 0x19a   : > { %5681 = vmatpush1.bf16.msra.mxu1 %v7061_v60  ;;  %5661 = vmatprep.subr.bf16.mxu0 %v6974_v61  ;;  %v5389_v13 = vpop.f32.mrf.mxu1  ;;  %v7014_v60 = vcombine.high %v753_v51, %v757_v52  ;;  %v921_v61 = vld [vmem:[%s7625_s8 + $0x1548] sm:$0xff] }
 0x19b   : > { %5682 = vmatprep.subr.bf16.mxu1 %v7054_v5  ;;  %v873_v0 = vld [vmem:[%s7625_s8 + $0x13c8] sm:$0xff]  ;;  %v7182_v3 = vcombine.high %v921_v61, %v925_v63 }
 0x19c   : > { %v877_v5 = vld [vmem:[%s7625_s8 + $0x13e8] sm:$0xff] }
 0x19d   : > { %5662 = vmatpush2.bf16.msra.mxu0 %v6973_v11  ;;  %v7134_v6 = vcombine.high %v873_v0, %v877_v5  ;;  %v917_v10 = vld [vmem:[%s7625_s8 + $0x1528] sm:$0xff] }
 0x19e   : > { %5683 = vmatpush1.bf16.msra.mxu1 %v7053_v12  ;;  %5663 = vmatprep.subr.bf16.mxu0 %v6966_v39  ;;  %v865_v11 = vld [vmem:[%s7625_s8 + $0x1388] sm:$0xff]  ;;  %v7181_v12 = vcombine.low %v921_v61, %v925_v63  ;;  %v7133_v39 = vcombine.low %v873_v0, %v877_v5  ;;  %v7174_v13 = vcombine.high %v913_v8, %v917_v10 }
 0x19f   : > { %5684 = vmatprep.subr.bf16.mxu1 %v7046_v19  ;;  %v869_v14 = vld [vmem:[%s7625_s8 + $0x13a8] sm:$0xff] }
 0x1a0   : > { %v7126_v19 = vcombine.high %v865_v11, %v869_v14  ;;  %v905_v15 = vld [vmem:[%s7625_s8 + $0x14c8] sm:$0xff] }
 0x1a1   : > { %5664 = vmatpush2.bf16.msra.mxu0 %v6965_v24  ;;  %v909_v17 = vld [vmem:[%s7625_s8 + $0x14e8] sm:$0xff]  ;;  %v7173_v24 = vcombine.low %v913_v8, %v917_v10 }
 0x1a2   : > { %5685 = vmatpush1.bf16.msra.mxu1 %v7045_v25  ;;  %5665 = vmatprep.subr.bf16.mxu0 %v6958_v26  ;;  %v857_v18 = vld [vmem:[%s7625_s8 + $0x1348] sm:$0xff]  ;;  %v7125_v25 = vcombine.low %v865_v11, %v869_v14  ;;  %v7166_v26 = vcombine.high %v905_v15, %v909_v17 }
 0x1a3   : > { %5686 = vmatprep.subr.bf16.mxu1 %v7038_v27  ;;  %v861_v21 = vld [vmem:[%s7625_s8 + $0x1368] sm:$0xff] }
 0x1a4   : > { %v7118_v27 = vcombine.high %v857_v18, %v861_v21  ;;  %v897_v28 = vld [vmem:[%s7625_s8 + $0x1488] sm:$0xff] }
 0x1a5   : > { %5666 = vmatpush2.bf16.msra.mxu0 %v6957_v33  ;;  %v901_v30 = vld [vmem:[%s7625_s8 + $0x14a8] sm:$0xff]  ;;  %v7165_v33 = vcombine.low %v905_v15, %v909_v17 }
 0x1a6   : > { %5687 = vmatpush1.bf16.msra.mxu1 %v7037_v34  ;;  %5667 = vmatprep.subr.bf16.mxu0 %v6950_v35  ;;  %v849_v31 = vld [vmem:[%s7625_s8 + $0x1308] sm:$0xff]  ;;  %v7117_v34 = vcombine.low %v857_v18, %v861_v21  ;;  %v7158_v35 = vcombine.high %v897_v28, %v901_v30 }
 0x1a7   : > { %5688 = vmatprep.subr.bf16.mxu1 %v7030_v37  ;;  %v853_v32 = vld [vmem:[%s7625_s8 + $0x1328] sm:$0xff] }
 0x1a8   : > { %v7110_v37 = vcombine.high %v849_v31, %v853_v32  ;;  %v889_v38 = vld [vmem:[%s7625_s8 + $0x1448] sm:$0xff] }
 0x1a9   : > { %5668 = vmatpush2.bf16.msra.mxu0 %v6949_v44  ;;  %v893_v41 = vld [vmem:[%s7625_s8 + $0x1468] sm:$0xff]  ;;  %v7157_v44 = vcombine.low %v897_v28, %v901_v30 }
 0x1aa   : > { %5689 = vmatpush1.bf16.msra.mxu1 %v7029_v45  ;;  %5719 = vmatprep.subr.bf16.mxu0 %v7198_v46  ;;  %v841_v42 = vld [vmem:[%s7625_s8 + $0x12c8] sm:$0xff]  ;;  %v7109_v45 = vcombine.low %v849_v31, %v853_v32  ;;  %v7150_v46 = vcombine.high %v889_v38, %v893_v41 }
 0x1ab   : > { %5690 = vmatprep.subr.bf16.mxu1 %v7022_v47  ;;  %v845_v43 = vld [vmem:[%s7625_s8 + $0x12e8] sm:$0xff] }
 0x1ac   : > { %5670 = vmatmul.mubr.bf16.vlgmr.msra.gmra.mxu0 %v7834_v40  ;;  %v7102_v47 = vcombine.high %v841_v42, %v845_v43  ;;  %v881_v48 = vld [vmem:[%s7625_s8 + $0x1408] sm:$0xff] }
 0x1ad   : > { %5720 = vmatpush1.bf16.msra.mxu0 %v7197_v55  ;;  %5751 = vmatprep.mubr.bf16.mxu0 %v7852_v49  ;;  %v885_v50 = vld [vmem:[%s7625_s8 + $0x1428] sm:$0xff]  ;;  %v7149_v55 = vcombine.low %v889_v38, %v893_v41 }
 0x1ae   : > { %5691 = vmatpush1.bf16.msra.mxu1 %v7021_v56  ;;  %5721 = vmatprep.subr.bf16.mxu0 %v7190_v57  ;;  %v833_v51 = vld [vmem:[%s7625_s8 + $0x1288] sm:$0xff]  ;;  %v7101_v56 = vcombine.low %v841_v42, %v845_v43  ;;  %v7142_v57 = vcombine.high %v881_v48, %v885_v50 }
 0x1af   : > { %5692 = vmatprep.subr.bf16.mxu1 %v7014_v60  ;;  %v837_v52 = vld [vmem:[%s7625_s8 + $0x12a8] sm:$0xff] }
 0x1b0   : > { %v7094_v60 = vcombine.high %v833_v51, %v837_v52  ;;  %v1001_v61 = vld [vmem:[%s7625_s8 + $0x17c8] sm:$0xff] }
 0x1b1   : > { %5722 = vmatpush1.bf16.msra.mxu0 %v7189_v1  ;;  %v1005_v63 = vld [vmem:[%s7625_s8 + $0x17e8] sm:$0xff]  ;;  %v7141_v1 = vcombine.low %v881_v48, %v885_v50 }
 0x1b2   : > { %5693 = vmatpush1.bf16.msra.mxu1 %v7013_v2  ;;  %5723 = vmatprep.subr.bf16.mxu0 %v7182_v3  ;;  %v825_v0 = vld [vmem:[%s7625_s8 + $0x1248] sm:$0xff]  ;;  %v7093_v2 = vcombine.low %v833_v51, %v837_v52  ;;  %v7262_v3 = vcombine.high %v1001_v61, %v1005_v63 }
 0x1b3   : > { %5694 = vmatprep.subr.bf16.mxu1 %v7134_v6  ;;  %v829_v5 = vld [vmem:[%s7625_s8 + $0x1268] sm:$0xff] }
 0x1b4   : > { %v7086_v6 = vcombine.high %v825_v0, %v829_v5  ;;  %v993_v8 = vld [vmem:[%s7625_s8 + $0x1788] sm:$0xff] }
 0x1b5   : > { %5724 = vmatpush1.bf16.msra.mxu0 %v7181_v12  ;;  %v997_v10 = vld [vmem:[%s7625_s8 + $0x17a8] sm:$0xff]  ;;  %v7261_v12 = vcombine.low %v1001_v61, %v1005_v63 }
 0x1b6   : > { %5695 = vmatpush2.bf16.msra.mxu1 %v7133_v39  ;;  %5725 = vmatprep.subr.bf16.mxu0 %v7174_v13  ;;  %v817_v11 = vld [vmem:[%s7625_s8 + $0x1208] sm:$0xff]  ;;  %v7085_v39 = vcombine.low %v825_v0, %v829_v5  ;;  %v7254_v13 = vcombine.high %v993_v8, %v997_v10 }
 0x1b7   : > { %5696 = vmatprep.subr.bf16.mxu1 %v7126_v19  ;;  %v821_v14 = vld [vmem:[%s7625_s8 + $0x1228] sm:$0xff] }
 0x1b8   : > { %v7078_v19 = vcombine.high %v817_v11, %v821_v14  ;;  %v985_v15 = vld [vmem:[%s7625_s8 + $0x1748] sm:$0xff] }
 0x1b9   : > { %5726 = vmatpush1.bf16.msra.mxu0 %v7173_v24  ;;  %v989_v17 = vld [vmem:[%s7625_s8 + $0x1768] sm:$0xff]  ;;  %v7253_v24 = vcombine.low %v993_v8, %v997_v10 }
 0x1ba   : > { %5697 = vmatpush2.bf16.msra.mxu1 %v7125_v25  ;;  %5727 = vmatprep.subr.bf16.mxu0 %v7166_v26  ;;  %v1049_v18 = vld [vmem:[%s7625_s8 + $0x1948] sm:$0xff]  ;;  %v7077_v25 = vcombine.low %v817_v11, %v821_v14  ;;  %v7246_v26 = vcombine.high %v985_v15, %v989_v17 }
 0x1bb   : > { %5698 = vmatprep.subr.bf16.mxu1 %v7118_v27  ;;  %v1053_v21 = vld [vmem:[%s7625_s8 + $0x1968] sm:$0xff] }
 0x1bc   : > { %v7310_v27 = vcombine.high %v1049_v18, %v1053_v21  ;;  %v977_v28 = vld [vmem:[%s7625_s8 + $0x1708] sm:$0xff] }
 0x1bd   : > { %5728 = vmatpush1.bf16.msra.mxu0 %v7165_v33  ;;  %v981_v30 = vld [vmem:[%s7625_s8 + $0x1728] sm:$0xff]  ;;  %v7245_v33 = vcombine.low %v985_v15, %v989_v17 }
 0x1be   : > { %5699 = vmatpush2.bf16.msra.mxu1 %v7117_v34  ;;  %5729 = vmatprep.subr.bf16.mxu0 %v7158_v35  ;;  %v1041_v31 = vld [vmem:[%s7625_s8 + $0x1908] sm:$0xff]  ;;  %v7309_v34 = vcombine.low %v1049_v18, %v1053_v21  ;;  %v7238_v35 = vcombine.high %v977_v28, %v981_v30 }
 0x1bf   : > { %5700 = vmatprep.subr.bf16.mxu1 %v7110_v37  ;;  %v1045_v32 = vld [vmem:[%s7625_s8 + $0x1928] sm:$0xff] }
 0x1c0   : > { %v7302_v37 = vcombine.high %v1041_v31, %v1045_v32  ;;  %v969_v38 = vld [vmem:[%s7625_s8 + $0x16c8] sm:$0xff]  ;;  %v7301_v48 = vcombine.low %v1041_v31, %v1045_v32  ;;  %v426_v31 = vld [vmem:[%s7625_s8 + $0x5d0] sm:$0xff] }
 0x1c1   : > { %5730 = vmatpush1.bf16.msra.mxu0 %v7157_v44  ;;  %v973_v41 = vld [vmem:[%s7625_s8 + $0x16e8] sm:$0xff]  ;;  %v430_v32 = vld [vmem:[%s7625_s8 + $0x5f0] sm:$0xff] }
 0x1c2   : > { %5701 = vmatpush2.bf16.msra.mxu1 %v7109_v45  ;;  %5731 = vmatprep.subr.bf16.mxu0 %v7150_v46  ;;  %v1033_v43 = vld [vmem:[%s7625_s8 + $0x18c8] sm:$0xff]  ;;  %v7237_v46 = vcombine.low %v977_v28, %v981_v30  ;;  %v7230_v50 = vcombine.high %v969_v38, %v973_v41  ;;  %v7229_v0 = vcombine.low %v969_v38, %v973_v41  ;;  %v298_v28 = vld [vmem:[%s7625_s8 + $0x1d0] sm:$0xff] }
 0x1c3   : > { %5702 = vmatprep.subr.bf16.mxu1 %v7102_v47  ;;  %v1037_v44 = vld [vmem:[%s7625_s8 + $0x18e8] sm:$0xff]  ;;  %v302_v30 = vld [vmem:[%s7625_s8 + $0x1f0] sm:$0xff]  ;;  %v6688_v38 = vcombine.high %v426_v31, %v430_v32 }
 0x1c4   : > { %v7294_v52 = vcombine.high %v1033_v43, %v1037_v44  ;;  %v1029_v61 = vld [vmem:[%s7625_s8 + $0x18a8] sm:$0xff]  ;;  %v290_v41 = vld [vmem:[%s7625_s8 + $0x190] sm:$0xff] }
 0x1c5   : > { %5732 = vmatpush1.bf16.msra.mxu0 %v7149_v55  ;;  %v961_v55 = vld [vmem:[%s7625_s8 + $0x1688] sm:$0xff] }
 0x1c6   : > { %5703 = vmatpush2.bf16.msra.mxu1 %v7101_v56  ;;  %5733 = vmatprep.subr.bf16.mxu0 %v7142_v57  ;;  %v965_v56 = vld [vmem:[%s7625_s8 + $0x16a8] sm:$0xff] }
 0x1c7   : > { %5704 = vmatprep.subr.bf16.mxu1 %v7094_v60  ;;  %v1025_v60 = vld [vmem:[%s7625_s8 + $0x1888] sm:$0xff] }
 0x1c8   : > { %v953_v8 = vld [vmem:[%s7625_s8 + $0x1648] sm:$0xff] }
 0x1c9   : > { %5734 = vmatpush1.bf16.msra.mxu0 %v7141_v1  ;;  %v7293_v1 = vcombine.low %v1033_v43, %v1037_v44  ;;  %v957_v10 = vld [vmem:[%s7625_s8 + $0x1668] sm:$0xff]  ;;  %v294_v43 = vld [vmem:[%s7625_s8 + $0x1b0] sm:$0xff] }
 0x1ca   : > { %5705 = vmatpush2.bf16.msra.mxu1 %v7093_v2  ;;  %5735 = vmatprep.subr.bf16.mxu0 %v7262_v3  ;;  %v7222_v2 = vcombine.high %v961_v55, %v965_v56  ;;  %v1017_v11 = vld [vmem:[%s7625_s8 + $0x1848] sm:$0xff]  ;;  %v418_v44 = vld [vmem:[%s7625_s8 + $0x590] sm:$0xff] }
 0x1cb   : > { %5706 = vmatprep.subr.bf16.mxu1 %v7086_v6  ;;  %v7286_v6 = vcombine.high %v1025_v60, %v1029_v61  ;;  %v1021_v14 = vld [vmem:[%s7625_s8 + $0x1868] sm:$0xff] }
 0x1cc   : > { %v945_v15 = vld [vmem:[%s7625_s8 + $0x1608] sm:$0xff] }
 0x1cd   : > { %5736 = vmatpush2.bf16.msra.mxu0 %v7261_v12  ;;  %v7221_v12 = vcombine.low %v961_v55, %v965_v56  ;;  %v949_v17 = vld [vmem:[%s7625_s8 + $0x1628] sm:$0xff]  ;;  %v282_v56 = vld [vmem:[%s7625_s8 + $0x150] sm:$0xff] }
 0x1ce   : > { %5707 = vmatpush2.bf16.msra.mxu1 %v7085_v39  ;;  %5737 = vmatprep.subr.bf16.mxu0 %v7254_v13  ;;  %v7285_v39 = vcombine.low %v1025_v60, %v1029_v61  ;;  %v7214_v13 = vcombine.high %v953_v8, %v957_v10  ;;  %v1009_v18 = vld [vmem:[%s7625_s8 + $0x1808] sm:$0xff]  ;;  %v414_v60 = vld [vmem:[%s7625_s8 + $0x570] sm:$0xff] }
 0x1cf   : > { %5708 = vmatprep.subr.bf16.mxu1 %v7078_v19  ;;  %v7278_v19 = vcombine.high %v1017_v11, %v1021_v14  ;;  %v1013_v21 = vld [vmem:[%s7625_s8 + $0x1828] sm:$0xff] }
 0x1d1   : > { %5738 = vmatpush2.bf16.msra.mxu0 %v7253_v24  ;;  %v7213_v24 = vcombine.low %v953_v8, %v957_v10  ;;  %v278_v8 = vld [vmem:[%s7625_s8 + $0x130] sm:$0xff] }
 0x1d2   : > { %5709 = vmatpush2.bf16.msra.mxu1 %v7077_v25  ;;  %5739 = vmatprep.subr.bf16.mxu0 %v7246_v26  ;;  %v7277_v25 = vcombine.low %v1017_v11, %v1021_v14  ;;  %v7206_v26 = vcombine.high %v945_v15, %v949_v17  ;;  %v402_v11 = vld [vmem:[%s7625_s8 + $0x510] sm:$0xff] }
 0x1d3   : > { %5764 = vmatprep.subr.bf16.mxu1 %v7310_v27  ;;  %v7270_v27 = vcombine.high %v1009_v18, %v1013_v21  ;;  %v406_v14 = vld [vmem:[%s7625_s8 + $0x530] sm:$0xff] }
 0x1d4   : > { %v8151_v42 = vpop.f32.mrf.mxu0 }
 0x1d5   : > { %v8155_v45 = vpop.f32.mrf.mxu1  ;;  %5711 = vmatmul.mubr.bf16.vlgmr.msra.gmra.mxu1 %v7917_v4  ;;  %5740 = vmatpush2.bf16.msra.mxu0 %v7245_v33  ;;  %v7205_v33 = vcombine.low %v945_v15, %v949_v17  ;;  %v6664_v15 = vcombine.high %v402_v11, %v406_v14  ;;  %v266_v17 = vld [vmem:[%s7625_s8 + $0xd0] sm:$0xff] }
 0x1d6   : > { %5765 = vmatpush1.bf16.msra.mxu1 %v7309_v34  ;;  %v8158_v47 = vpop.f32.mrf.mxu0  ;;  %5741 = vmatprep.subr.bf16.mxu0 %v7238_v35  ;;  %v7269_v34 = vcombine.low %v1009_v18, %v1013_v21  ;;  %v6560_v35 = vcombine.high %v298_v28, %v302_v30  ;;  %v270_v18 = vld [vmem:[%s7625_s8 + $0xf0] sm:$0xff] }
 0x1d7   : > { %v8160_v51 = vpop.f32.mrf.mxu1  ;;  %5766 = vmatprep.subr.bf16.mxu1 %v7302_v37  ;;  %5792 = vmatprep.mubr.bf16.mxu1 %v7493_v23  ;;  %v5426_v37 = vadd.f32 %v8151_v42, %v8081_v62  ;;  %v6552_v62 = vcombine.high %v290_v41, %v294_v43  ;;  %v394_v21 = vld [vmem:[%s7625_s8 + $0x4d0] sm:$0xff] }
 0x1d8   : > { %v5429_v57 = vpop.f32.mrf.mxu0 }
 0x1d9   : > { %v5470_v63 = vpop.f32.mrf.mxu1  ;;  %5742 = vmatpush2.bf16.msra.mxu0 %v7237_v46  ;;  %v422_v46 = vld [vmem:[%s7625_s8 + $0x5b0] sm:$0xff]  ;;  %v5467_v42 = vadd.f32 %v8155_v45, %v5426_v37 }
 0x1da   : > { %5767 = vmatpush1.bf16.msra.mxu1 %v7301_v48  ;;  %v5430_v5 = vpop.f32.mrf.mxu0  ;;  %5743 = vmatprep.subr.bf16.mxu0 %v7230_v50  ;;  %v5428_v48 = vadd.f32 %v8158_v47, %v8089_v9  ;;  %v6559_v50 = vcombine.low %v298_v28, %v302_v30  ;;  %v6680_v55 = vcombine.high %v418_v44, %v422_v46  ;;  %v286_v57 = vld [vmem:[%s7625_s8 + $0x170] sm:$0xff] }
 0x1db   : > { %v5471_v3 = vpop.f32.mrf.mxu1  ;;  %5768 = vmatprep.subr.bf16.mxu1 %v7294_v52  ;;  %v6687_v52 = vcombine.low %v426_v31, %v430_v32  ;;  %v410_v47 = vld [vmem:[%s7625_s8 + $0x550] sm:$0xff] }
 0x1dc   : > { %v5469_v61 = vadd.f32 %v8160_v51, %v5428_v48  ;;  %v7386_v63 = vld [vmem:[%s8715_s0 + $0x30] ss:$0 sps:$4 sm:$0xff]   ;;  %v6672_v3 = vcombine.high %v410_v47, %v414_v60 }
 0x1dd   : > { %5744 = vmatpush2.bf16.msra.mxu0 %v7229_v0  ;;  %v6551_v0 = vcombine.low %v290_v41, %v294_v43  ;;  %v258_v30 = vld [vmem:[%s7625_s8 + $0x90] sm:$0xff] }
 0x1de   : > { %5769 = vmatpush1.bf16.msra.mxu1 %v7293_v1  ;;  %5745 = vmatprep.subr.bf16.mxu0 %v7222_v2  ;;  %v6679_v1 = vcombine.low %v418_v44, %v422_v46  ;;  %v6544_v2 = vcombine.high %v282_v56, %v286_v57  ;;  %v262_v31 = vld [vmem:[%s7625_s8 + $0xb0] sm:$0xff] }
 0x1df   : > { %5770 = vmatprep.subr.bf16.mxu1 %v7286_v6  ;;  %v274_v6 = vld [vmem:[%s7625_s8 + $0x110] sm:$0xff]  ;;  %v6520_v37 = vcombine.high %v258_v30, %v262_v31  ;;  %v6519_v48 = vcombine.low %v258_v30, %v262_v31 }
 0x1e0   : > { %v386_v32 = vld [vmem:[%s7625_s8 + $0x490] sm:$0xff] }
 0x1e1   : > { %5746 = vmatpush2.bf16.msra.mxu0 %v7221_v12  ;;  %v6543_v12 = vcombine.low %v282_v56, %v286_v57  ;;  %v250_v41 = vld [vmem:[%s7625_s8 + $0x50] sm:$0xff] }
 0x1e2   : > { %5771 = vmatpush1.bf16.msra.mxu1 %v7285_v39  ;;  %5747 = vmatprep.subr.bf16.mxu0 %v7214_v13  ;;  %v6671_v13 = vcombine.low %v410_v47, %v414_v60  ;;  %v254_v43 = vld [vmem:[%s7625_s8 + $0x70] sm:$0xff] }
 0x1e3   : > { %5772 = vmatprep.subr.bf16.mxu1 %v7278_v19  ;;  %v6536_v19 = vcombine.high %v274_v6, %v278_v8  ;;  %v378_v44 = vld [vmem:[%s7625_s8 + $0x450] sm:$0xff] }
 0x1e4   : > { %v382_v46 = vld [vmem:[%s7625_s8 + $0x470] sm:$0xff] }
 0x1e5   : > { %5748 = vmatpush2.bf16.msra.mxu0 %v7213_v24  ;;  %v398_v24 = vld [vmem:[%s7625_s8 + $0x4f0] sm:$0xff]  ;;  %v6639_v47 = vcombine.low %v378_v44, %v382_v46 }
 0x1e6   : > { %5773 = vmatpush1.bf16.msra.mxu1 %v7277_v25  ;;  %5749 = vmatprep.subr.bf16.mxu0 %v7206_v26  ;;  %v6535_v25 = vcombine.low %v274_v6, %v278_v8  ;;  %v6663_v26 = vcombine.low %v402_v11, %v406_v14  ;;  %v6656_v28 = vcombine.high %v394_v21, %v398_v24  ;;  %v370_v56 = vld [vmem:[%s7625_s8 + $0x410] sm:$0xff] }
 0x1e7   : > { %5774 = vmatprep.subr.bf16.mxu1 %v7270_v27  ;;  %v6528_v27 = vcombine.high %v266_v17, %v270_v18  ;;  %v374_v57 = vld [vmem:[%s7625_s8 + $0x430] sm:$0xff] }
 0x1e8   : > { %v354_v6 = vld [vmem:[%s7625_s8 + $0x390] sm:$0xff] }
 0x1e9   : > { %5750 = vmatpush2.bf16.msra.mxu0 %v7205_v33  ;;  %v390_v33 = vld [vmem:[%s7625_s8 + $0x4b0] sm:$0xff] }
 0x1ea   : > { %5775 = vmatpush1.bf16.msra.mxu1 %v7269_v34  ;;  %5801 = vmatprep.subr.bf16.mxu0 %v6560_v35  ;;  %v6527_v34 = vcombine.low %v266_v17, %v270_v18  ;;  %v6655_v35 = vcombine.low %v394_v21, %v398_v24  ;;  %v358_v8 = vld [vmem:[%s7625_s8 + $0x3b0] sm:$0xff] }
 0x1eb   : > { %5842 = vmatprep.subr.bf16.mxu1 %v6688_v38  ;;  %v6648_v38 = vcombine.high %v386_v32, %v390_v33  ;;  %v486_v11 = vld [vmem:[%s7625_s8 + $0x7b0] sm:$0xff]  ;;  %v6615_v21 = vcombine.low %v354_v6, %v358_v8 }
 0x1ec   : > { %v5507_v9 = vpop.f32.mrf.mxu0  ;;  %5752 = vmatmul.mubr.bf16.vlgmr.msra.gmra.mxu0 %v7923_v7  ;;  %v474_v17 = vld [vmem:[%s7625_s8 + $0x750] sm:$0xff] }
 0x1ed   : > { %v5508_v45 = vadd.f32 %v5507_v9, %v5467_v42  ;;  %7316 = vmatmul.mubr.msk.bf16.vlgmr.msra.gmra.mxu1 %vm5223_vm0, %v7386_v63  ;;  %5802 = vmatpush1.bf16.msra.mxu0 %v6559_v50  ;;  %v6647_v50 = vcombine.low %v386_v32, %v390_v33  ;;  %v242_v42 = vld [vmem:[%s7625_s8 + $0x10] sm:$0xff]  ;;  %v6511_v9 = vcombine.low %v250_v41, %v254_v43 }
 0x1ee   : > { %5843 = vmatpush1.bf16.msra.mxu1 %v6687_v52  ;;  %v5509_v5 = vpop.f32.mrf.mxu0  ;;  %5803 = vmatprep.subr.bf16.mxu0 %v6552_v62  ;;  %v6512_v52 = vcombine.high %v250_v41, %v254_v43  ;;  %v6640_v62 = vcombine.high %v378_v44, %v382_v46  ;;  %v366_v63 = vld [vmem:[%s7625_s8 + $0x3f0] sm:$0xff] }
 0x1ef   : > { %6375 = vst [vmem:[%s8195_s6] sm:$0xff] %v5508_v45  ;;  %v5510_v51 = vadd.f32 %v5509_v5, %v5469_v61  ;;  %5844 = vmatprep.subr.bf16.mxu1 %v6680_v55  ;;  %5833 = vmatprep.mubr.bf16.mxu0 %v7679_v58  ;;  %v246_v55 = vld [vmem:[%s7625_s8 + $0x30] sm:$0xff]  ;;  %v6632_v61 = vcombine.high %v370_v56, %v374_v57 }
 0x1f0   : > { %v5511_v10 = vpop.f32.mrf.mxu0  ;;  %5874 = vmatprep.mubr.bf16.mxu1 %v7683_v59  ;;  %v6504_v60 = vcombine.high %v242_v42, %v246_v55  ;;  %v362_v45 = vld [vmem:[%s7625_s8 + $0x3d0] sm:$0xff] }
 0x1f1   : > { %6376 = vst [vmem:[%s8195_s6 + $0x8] sm:$0xff] %v5510_v51  ;;  %5804 = vmatpush1.bf16.msra.mxu0 %v6551_v0  ;;  %v490_v0 = vld [vmem:[%s7625_s8 + $0x7d0] sm:$0xff]  ;;  %v6624_v51 = vcombine.high %v362_v45, %v366_v63  ;;  %v6623_v14 = vcombine.low %v362_v45, %v366_v63 }
 0x1f2   : > { %5845 = vmatpush1.bf16.msra.mxu1 %v6679_v1  ;;  %v5512_v39 = vpop.f32.mrf.mxu0  ;;  %5805 = vmatprep.subr.bf16.mxu0 %v6544_v2  ;;  %v494_v5 = vld [vmem:[%s7625_s8 + $0x7f0] sm:$0xff]  ;;  %v6503_v1 = vcombine.low %v242_v42, %v246_v55  ;;  %v6631_v2 = vcombine.low %v370_v56, %v374_v57 }
 0x1f3   : > { %5846 = vmatprep.subr.bf16.mxu1 %v6672_v3  ;;  %v6752_v3 = vcombine.high %v490_v0, %v494_v5  ;;  %v482_v10 = vld [vmem:[%s7625_s8 + $0x790] sm:$0xff]  ;;  %v6616_v39 = vcombine.high %v354_v6, %v358_v8 }
 0x1f4   : > { %v478_v18 = vld [vmem:[%s7625_s8 + $0x770] sm:$0xff]  ;;  %v6743_v24 = vcombine.low %v482_v10, %v486_v11 }
 0x1f5   : > { %5806 = vmatpush1.bf16.msra.mxu0 %v6543_v12  ;;  %v6751_v12 = vcombine.low %v490_v0, %v494_v5  ;;  %v466_v30 = vld [vmem:[%s7625_s8 + $0x710] sm:$0xff]  ;;  %v6735_v33 = vcombine.low %v474_v17, %v478_v18 }
 0x1f6   : > { %5847 = vmatpush1.bf16.msra.mxu1 %v6671_v13  ;;  %5807 = vmatprep.subr.bf16.mxu0 %v6536_v19  ;;  %v6744_v13 = vcombine.high %v482_v10, %v486_v11  ;;  %v346_v19 = vld [vmem:[%s7625_s8 + $0x350] sm:$0xff] }
 0x1f7   : > { %5848 = vmatprep.subr.bf16.mxu1 %v6664_v15  ;;  %v350_v15 = vld [vmem:[%s7625_s8 + $0x370] sm:$0xff] }
 0x1f8   : > { %v470_v31 = vld [vmem:[%s7625_s8 + $0x730] sm:$0xff]  ;;  %v6607_v32 = vcombine.low %v346_v19, %v350_v15 }
 0x1f9   : > { %5808 = vmatpush1.bf16.msra.mxu0 %v6535_v25  ;;  %v6608_v25 = vcombine.high %v346_v19, %v350_v15  ;;  %v458_v41 = vld [vmem:[%s7625_s8 + $0x6d0] sm:$0xff]  ;;  %v1068_v15 = vsub.s32 2, %v7990_v22 }
 0x1fa   : > { %5849 = vmatpush1.bf16.msra.mxu1 %v6663_v26  ;;  %5809 = vmatprep.subr.bf16.mxu0 %v6528_v27  ;;  %v6736_v26 = vcombine.high %v474_v17, %v478_v18  ;;  %v338_v27 = vld [vmem:[%s7625_s8 + $0x310] sm:$0xff] }
 0x1fb   : > { %5850 = vmatprep.subr.bf16.mxu1 %v6656_v28  ;;  %v342_v28 = vld [vmem:[%s7625_s8 + $0x330] sm:$0xff] }
 0x1fc   : > { %v462_v43 = vld [vmem:[%s7625_s8 + $0x6f0] sm:$0xff]  ;;  %v6599_v46 = vcombine.low %v338_v27, %v342_v28 }
 0x1fd   : > { %5810 = vmatpush1.bf16.msra.mxu0 %v6527_v34  ;;  %v6600_v34 = vcombine.high %v338_v27, %v342_v28  ;;  %v322_v42 = vld [vmem:[%s7625_s8 + $0x290] sm:$0xff] }
 0x1fe   : > { %5851 = vmatpush1.bf16.msra.mxu1 %v6655_v35  ;;  %5811 = vmatprep.subr.bf16.mxu0 %v6520_v37  ;;  %v6728_v35 = vcombine.high %v466_v30, %v470_v31  ;;  %v330_v37 = vld [vmem:[%s7625_s8 + $0x2d0] sm:$0xff] }
 0x1ff   : > { %5852 = vmatprep.subr.bf16.mxu1 %v6648_v38  ;;  %v334_v38 = vld [vmem:[%s7625_s8 + $0x2f0] sm:$0xff] }
 0x200   : > { %v326_v55 = vld [vmem:[%s7625_s8 + $0x2b0] sm:$0xff] }
 0x201   : > { %5812 = vmatpush1.bf16.msra.mxu0 %v6519_v48  ;;  %v6727_v48 = vcombine.low %v466_v30, %v470_v31  ;;  %v450_v56 = vld [vmem:[%s7625_s8 + $0x690] sm:$0xff]  ;;  %v7387_v31 = vld [vmem:[%s7631_s25] sm:$0xff] }
 0x202   : > { %5853 = vmatpush1.bf16.msra.mxu1 %v6647_v50  ;;  %5813 = vmatprep.subr.bf16.mxu0 %v6512_v52  ;;  %v6592_v50 = vcombine.high %v330_v37, %v334_v38  ;;  %v454_v57 = vld [vmem:[%s7625_s8 + $0x6b0] sm:$0xff] }
 0x203   : > { %5854 = vmatprep.subr.bf16.mxu1 %v6640_v62  ;;  %v6720_v62 = vcombine.high %v458_v41, %v462_v43  ;;  %v6712_v63 = vcombine.high %v450_v56, %v454_v57  ;;  %v314_v0 = vld [vmem:[%s7625_s8 + $0x250] sm:$0xff] }
 0x204   : > { %v318_v5 = vld [vmem:[%s7625_s8 + $0x270] sm:$0xff] }
 0x205   : > { %5814 = vmatpush1.bf16.msra.mxu0 %v6511_v9  ;;  %v6576_v6 = vcombine.high %v314_v0, %v318_v5  ;;  %v306_v10 = vld [vmem:[%s7625_s8 + $0x210] sm:$0xff] }
 0x206   : > { %5855 = vmatpush1.bf16.msra.mxu1 %v6639_v47  ;;  %5815 = vmatprep.subr.bf16.mxu0 %v6504_v60  ;;  %v6591_v47 = vcombine.low %v330_v37, %v334_v38  ;;  %v6719_v60 = vcombine.low %v458_v41, %v462_v43  ;;  %v310_v11 = vld [vmem:[%s7625_s8 + $0x230] sm:$0xff] }
 0x207   : > { %5856 = vmatprep.subr.bf16.mxu1 %v6632_v61  ;;  %v6584_v61 = vcombine.high %v322_v42, %v326_v55  ;;  %v6568_v19 = vcombine.high %v306_v10, %v310_v11  ;;  %v554_v18 = vld [vmem:[%s7625_s8 + $0x9d0] sm:$0xff]  ;;  %v6567_v27 = vcombine.low %v306_v10, %v310_v11 }
 0x208   : > { %v674_v37 = vld [vmem:[%s7625_s8 + $0xd90] sm:$0xff] }
 0x209   : > { %5816 = vmatpush1.bf16.msra.mxu0 %v6503_v1  ;;  %v442_v1 = vld [vmem:[%s7625_s8 + $0x650] sm:$0xff] }
 0x20a   : > { %5857 = vmatpush1.bf16.msra.mxu1 %v6631_v2  ;;  %5817 = vmatprep.subr.bf16.mxu0 %v6624_v51  ;;  %v446_v2 = vld [vmem:[%s7625_s8 + $0x670] sm:$0xff]  ;;  %v6583_v51 = vcombine.low %v322_v42, %v326_v55 }
 0x20b   : > { %5858 = vmatprep.subr.bf16.mxu1 %v6752_v3  ;;  %v6711_v3 = vcombine.low %v450_v56, %v454_v57  ;;  %v6704_v8 = vcombine.high %v442_v1, %v446_v2  ;;  %v678_v38 = vld [vmem:[%s7625_s8 + $0xdb0] sm:$0xff] }
 0x20c   : > { %v538_v42 = vld [vmem:[%s7625_s8 + $0x950] sm:$0xff] }
 0x20d   : > { %5818 = vmatpush2.bf16.msra.mxu0 %v6623_v14  ;;  %v434_v14 = vld [vmem:[%s7625_s8 + $0x610] sm:$0xff] }
 0x20e   : > { %5859 = vmatpush2.bf16.msra.mxu1 %v6751_v12  ;;  %5819 = vmatprep.subr.bf16.mxu0 %v6616_v39  ;;  %v438_v12 = vld [vmem:[%s7625_s8 + $0x630] sm:$0xff]  ;;  %v6575_v39 = vcombine.low %v314_v0, %v318_v5 }
 0x20f   : > { %5860 = vmatprep.subr.bf16.mxu1 %v6744_v13  ;;  %v6703_v13 = vcombine.low %v442_v1, %v446_v2  ;;  %v6696_v17 = vcombine.high %v434_v14, %v438_v12  ;;  %v6695_v28 = vcombine.low %v434_v14, %v438_v12  ;;  %v542_v55 = vld [vmem:[%s7625_s8 + $0x970] sm:$0xff] }
 0x210   : > { %v666_v57 = vld [vmem:[%s7625_s8 + $0xd50] sm:$0xff] }
 0x211   : > { %5820 = vmatpush2.bf16.msra.mxu0 %v6615_v21  ;;  %v558_v21 = vld [vmem:[%s7625_s8 + $0x9f0] sm:$0xff] }
 0x212   : > { %5861 = vmatpush2.bf16.msra.mxu1 %v6743_v24  ;;  %5821 = vmatprep.subr.bf16.mxu0 %v6608_v25  ;;  %v682_v24 = vld [vmem:[%s7625_s8 + $0xdd0] sm:$0xff]  ;;  %v6816_v30 = vcombine.high %v554_v18, %v558_v21  ;;  %v6815_v43 = vcombine.low %v554_v18, %v558_v21 }
 0x213   : > { %5862 = vmatprep.subr.bf16.mxu1 %v6736_v26  ;;  %v686_v25 = vld [vmem:[%s7625_s8 + $0xdf0] sm:$0xff]  ;;  %v1072_v26 = vsub.s32 3, %v7990_v22 }
 0x214   : > { %v530_v1 = vld [vmem:[%s7625_s8 + $0x910] sm:$0xff] }
 0x215   : > { %v8249_v44 = vpop.f32.mrf.mxu1  ;;  %5822 = vmatpush2.bf16.msra.mxu0 %v6607_v32  ;;  %v1069_v32 = vrot.slane %v7387_v31, %v1068_v15  ;;  %v1073_v41 = vrot.slane %v7387_v31, %v1072_v26  ;;  %v522_v12 = vld [vmem:[%s7625_s8 + $0x8d0] sm:$0xff] }
 0x216   : > { %5863 = vmatpush2.bf16.msra.mxu1 %v6735_v33  ;;  %5823 = vmatprep.subr.bf16.mxu0 %v6600_v34  ;;  %v6944_v33 = vcombine.high %v682_v24, %v686_v25  ;;  %v546_v34 = vld [vmem:[%s7625_s8 + $0x990] sm:$0xff] }
 0x217   : > { %v8251_v52 = vpop.f32.mrf.mxu1  ;;  %5864 = vmatprep.subr.bf16.mxu1 %v6728_v35  ;;  %v550_v35 = vld [vmem:[%s7625_s8 + $0x9b0] sm:$0xff] }
 0x218   : > { %v642_v26 = vld [vmem:[%s7625_s8 + $0xc90] sm:$0xff] }
 0x219   : > { %v5552_v9 = vpop.f32.mrf.mxu1  ;;  %5824 = vmatpush2.bf16.msra.mxu0 %v6599_v46  ;;  %v6943_v46 = vcombine.low %v682_v24, %v686_v25  ;;  %v514_v24 = vld [vmem:[%s7625_s8 + $0x890] sm:$0xff] }
 0x21a   : > { %5865 = vmatpush2.bf16.msra.mxu1 %v6727_v48  ;;  %5825 = vmatprep.subr.bf16.mxu0 %v6592_v50  ;;  %v6808_v48 = vcombine.high %v546_v34, %v550_v35  ;;  %v5549_v50 = vadd.f32 %v8249_v44, %v1069_v32  ;;  %v670_v9 = vld [vmem:[%s7625_s8 + $0xd70] sm:$0xff]  ;;  %v6807_v44 = vcombine.low %v546_v34, %v550_v35 }
 0x21b   : > { %v5553_v45 = vpop.f32.mrf.mxu1  ;;  %5866 = vmatprep.subr.bf16.mxu1 %v6720_v62  ;;  %v6936_v62 = vcombine.high %v674_v37, %v678_v38  ;;  %v6928_v5 = vcombine.high %v666_v57, %v670_v9  ;;  %v6927_v10 = vcombine.low %v666_v57, %v670_v9  ;;  %v518_v25 = vld [vmem:[%s7625_s8 + $0x8b0] sm:$0xff] }
 0x21c   : > { %v6935_v45 = vcombine.low %v674_v37, %v678_v38  ;;  %v6776_v31 = vcombine.high %v514_v24, %v518_v25  ;;  %v510_v34 = vld [vmem:[%s7625_s8 + $0x870] sm:$0xff]  ;;  %v6775_v38 = vcombine.low %v514_v24, %v518_v25 }
 0x21d   : > { %5826 = vmatpush2.bf16.msra.mxu0 %v6591_v47  ;;  %v5551_v47 = vadd.f32 %v8251_v52, %v1073_v41  ;;  %v534_v52 = vld [vmem:[%s7625_s8 + $0x930] sm:$0xff] }
 0x21e   : > { %5867 = vmatpush2.bf16.msra.mxu1 %v6719_v60  ;;  %5827 = vmatprep.subr.bf16.mxu0 %v6584_v61  ;;  %v6792_v11 = vcombine.high %v530_v1, %v534_v52  ;;  %v6791_v15 = vcombine.low %v530_v1, %v534_v52  ;;  %v634_v35 = vld [vmem:[%s7625_s8 + $0xc50] sm:$0xff] }
 0x21f   : > { %5868 = vmatprep.subr.bf16.mxu1 %v6712_v63  ;;  %v6800_v63 = vcombine.high %v538_v42, %v542_v55  ;;  %v638_v37 = vld [vmem:[%s7625_s8 + $0xc70] sm:$0xff] }
 0x220   : > { %v594_v24 = vld [vmem:[%s7625_s8 + $0xb10] sm:$0xff] }
 0x221   : > { %5828 = vmatpush2.bf16.msra.mxu0 %v6583_v51  ;;  %v658_v51 = vld [vmem:[%s7625_s8 + $0xd10] sm:$0xff] }
 0x222   : > { %5869 = vmatpush2.bf16.msra.mxu1 %v6711_v3  ;;  %5829 = vmatprep.subr.bf16.mxu0 %v6576_v6  ;;  %v662_v3 = vld [vmem:[%s7625_s8 + $0xd30] sm:$0xff]  ;;  %v6799_v6 = vcombine.low %v538_v42, %v542_v55 }
 0x223   : > { %5870 = vmatprep.subr.bf16.mxu1 %v6704_v8  ;;  %v6920_v14 = vcombine.high %v658_v51, %v662_v3  ;;  %v630_v42 = vld [vmem:[%s7625_s8 + $0xc30] sm:$0xff] }
 0x224   : > { %v598_v25 = vld [vmem:[%s7625_s8 + $0xb30] sm:$0xff] }
 0x225   : > { %5830 = vmatpush2.bf16.msra.mxu0 %v6575_v39  ;;  %v526_v39 = vld [vmem:[%s7625_s8 + $0x8f0] sm:$0xff] }
 0x226   : > { %5871 = vmatpush2.bf16.msra.mxu1 %v6703_v13  ;;  %5831 = vmatprep.subr.bf16.mxu0 %v6568_v19  ;;  %v650_v13 = vld [vmem:[%s7625_s8 + $0xcd0] sm:$0xff]  ;;  %v6784_v18 = vcombine.high %v522_v12, %v526_v39 }
 0x227   : > { %5872 = vmatprep.subr.bf16.mxu1 %v6696_v17  ;;  %v654_v19 = vld [vmem:[%s7625_s8 + $0xcf0] sm:$0xff]  ;;  %v6919_v17 = vcombine.low %v658_v51, %v662_v3 }
 0x228   : > { %v6912_v21 = vcombine.high %v650_v13, %v654_v19  ;;  %v614_v51 = vld [vmem:[%s7625_s8 + $0xbb0] sm:$0xff] }
 0x229   : > { %5832 = vmatpush2.bf16.msra.mxu0 %v6567_v27  ;;  %v646_v27 = vld [vmem:[%s7625_s8 + $0xcb0] sm:$0xff] }
 0x22a   : > { %5873 = vmatpush2.bf16.msra.mxu1 %v6695_v28  ;;  %5883 = vmatprep.subr.bf16.mxu0 %v6816_v30  ;;  %v6783_v28 = vcombine.low %v522_v12, %v526_v39  ;;  %v6911_v30 = vcombine.low %v650_v13, %v654_v19  ;;  %v6904_v32 = vcombine.high %v642_v26, %v646_v27  ;;  %v738_v3 = vld [vmem:[%s7625_s8 + $0xf90] sm:$0xff] }
 0x22b   : > { %5924 = vmatprep.subr.bf16.mxu1 %v6944_v33  ;;  %v506_v33 = vld [vmem:[%s7625_s8 + $0x850] sm:$0xff]  ;;  %v6903_v41 = vcombine.low %v642_v26, %v646_v27 }
 0x22c   : > { %v5589_v56 = vpop.f32.mrf.mxu0  ;;  %5834 = vmatmul.mubr.bf16.vlgmr.msra.gmra.mxu0 %v7729_v16  ;;  %v6767_v55 = vcombine.low %v506_v33, %v510_v34  ;;  %v602_v12 = vld [vmem:[%s7625_s8 + $0xb50] sm:$0xff] }
 0x22d   : > { %v8283_v60 = vadd.f32 %v5589_v56, %v5549_v50  ;;  %5875 = vmatmul.mubr.bf16.vlgmr.msra.gmra.mxu1 %v7740_v20  ;;  %5884 = vmatpush1.bf16.msra.mxu0 %v6815_v43  ;;  %v6768_v43 = vcombine.high %v506_v33, %v510_v34  ;;  %v502_v50 = vld [vmem:[%s7625_s8 + $0x830] sm:$0xff]  ;;  %v6895_v56 = vcombine.low %v634_v35, %v638_v37 }
 0x22e   : > { %5925 = vmatpush1.bf16.msra.mxu1 %v6943_v46  ;;  %v5591_v61 = vpop.f32.mrf.mxu0  ;;  %5885 = vmatprep.subr.bf16.mxu0 %v6808_v48  ;;  %v6896_v46 = vcombine.high %v634_v35, %v638_v37  ;;  %v498_v48 = vld [vmem:[%s7625_s8 + $0x810] sm:$0xff] }
 0x22f   : > { %v8286_v0 = vadd.f32 %v5591_v61, %v5551_v47  ;;  %5926 = vmatprep.subr.bf16.mxu1 %v6936_v62  ;;  %5915 = vmatprep.mubr.bf16.mxu0 %v7751_v54  ;;  %v626_v62 = vld [vmem:[%s7625_s8 + $0xc10] sm:$0xff]  ;;  %v6760_v57 = vcombine.high %v498_v48, %v502_v50 }
 0x230   : > { %v5593_v2 = vpop.f32.mrf.mxu0  ;;  %5956 = vmatprep.mubr.bf16.mxu1 %v7758_v29  ;;  %v6888_v9 = vcombine.high %v626_v62, %v630_v42  ;;  %v618_v47 = vld [vmem:[%s7625_s8 + $0xbd0] sm:$0xff] }
 0x231   : > { %5886 = vmatpush1.bf16.msra.mxu0 %v6807_v44  ;;  %v622_v44 = vld [vmem:[%s7625_s8 + $0xbf0] sm:$0xff] }
 0x232   : > { %5927 = vmatpush1.bf16.msra.mxu1 %v6935_v45  ;;  %v5594_v8 = vpop.f32.mrf.mxu0  ;;  %5887 = vmatprep.subr.bf16.mxu0 %v6800_v63  ;;  %v746_v61 = vld [vmem:[%s7625_s8 + $0xfd0] sm:$0xff]  ;;  %v6759_v63 = vcombine.low %v498_v48, %v502_v50  ;;  %v6880_v1 = vcombine.high %v618_v47, %v622_v44 }
 0x233   : > { %5928 = vmatprep.subr.bf16.mxu1 %v6928_v5  ;;  %v750_v45 = vld [vmem:[%s7625_s8 + $0xff0] sm:$0xff]  ;;  %v6887_v5 = vcombine.low %v626_v62, %v630_v42  ;;  %v6879_v8 = vcombine.low %v618_v47, %v622_v44 }
 0x234   : > { %v7008_v52 = vcombine.high %v746_v61, %v750_v45  ;;  %v610_v2 = vld [vmem:[%s7625_s8 + $0xb90] sm:$0xff] }
 0x235   : > { %5888 = vmatpush1.bf16.msra.mxu0 %v6799_v6  ;;  %v742_v6 = vld [vmem:[%s7625_s8 + $0xfb0] sm:$0xff] }
 0x236   : > { %5929 = vmatpush1.bf16.msra.mxu1 %v6927_v10  ;;  %5889 = vmatprep.subr.bf16.mxu0 %v6792_v11  ;;  %v7007_v10 = vcombine.low %v746_v61, %v750_v45  ;;  %v6872_v11 = vcombine.high %v610_v2, %v614_v51  ;;  %v606_v39 = vld [vmem:[%s7625_s8 + $0xb70] sm:$0xff] }
 0x237   : > { %5930 = vmatprep.subr.bf16.mxu1 %v6920_v14  ;;  %v7000_v14 = vcombine.high %v738_v3, %v742_v6  ;;  %v730_v13 = vld [vmem:[%s7625_s8 + $0xf50] sm:$0xff] }
 0x238   : > { %v734_v19 = vld [vmem:[%s7625_s8 + $0xf70] sm:$0xff] }
 0x239   : > { %5890 = vmatpush1.bf16.msra.mxu0 %v6791_v15  ;;  %v6871_v15 = vcombine.low %v610_v2, %v614_v51  ;;  %v722_v26 = vld [vmem:[%s7625_s8 + $0xf10] sm:$0xff] }
 0x23a   : > { %5931 = vmatpush1.bf16.msra.mxu1 %v6919_v17  ;;  %5891 = vmatprep.subr.bf16.mxu0 %v6784_v18  ;;  %v6999_v17 = vcombine.low %v738_v3, %v742_v6  ;;  %v6864_v18 = vcombine.high %v602_v12, %v606_v39  ;;  %v726_v27 = vld [vmem:[%s7625_s8 + $0xf30] sm:$0xff] }
 0x23b   : > { %5932 = vmatprep.subr.bf16.mxu1 %v6912_v21  ;;  %v6992_v21 = vcombine.high %v730_v13, %v734_v19  ;;  %v586_v33 = vld [vmem:[%s7625_s8 + $0xad0] sm:$0xff] }
 0x23c   : > { %v590_v34 = vld [vmem:[%s7625_s8 + $0xaf0] sm:$0xff] }
 0x23d   : > { %5892 = vmatpush1.bf16.msra.mxu0 %v6783_v28  ;;  %v6863_v28 = vcombine.low %v602_v12, %v606_v39  ;;  %v714_v35 = vld [vmem:[%s7625_s8 + $0xed0] sm:$0xff]  ;;  %v6848_v48 = vcombine.high %v586_v33, %v590_v34  ;;  %v6847_v47 = vcombine.low %v586_v33, %v590_v34 }
 0x23e   : > { %5933 = vmatpush1.bf16.msra.mxu1 %v6911_v30  ;;  %5893 = vmatprep.subr.bf16.mxu0 %v6776_v31  ;;  %v6991_v30 = vcombine.low %v730_v13, %v734_v19  ;;  %v6856_v31 = vcombine.high %v594_v24, %v598_v25  ;;  %v718_v37 = vld [vmem:[%s7625_s8 + $0xef0] sm:$0xff] }
 0x23f   : > { %5934 = vmatprep.subr.bf16.mxu1 %v6904_v32  ;;  %v6984_v32 = vcombine.high %v722_v26, %v726_v27  ;;  %v6976_v62 = vcombine.high %v714_v35, %v718_v37  ;;  %v578_v42 = vld [vmem:[%s7625_s8 + $0xa90] sm:$0xff]  ;;  %v6975_v44 = vcombine.low %v714_v35, %v718_v37 }
 0x241   : > { %5894 = vmatpush1.bf16.msra.mxu0 %v6775_v38 }
 0x242   : > { %5935 = vmatpush1.bf16.msra.mxu1 %v6903_v41  ;;  %5895 = vmatprep.subr.bf16.mxu0 %v6768_v43  ;;  %v6855_v41 = vcombine.low %v594_v24, %v598_v25 }
 0x243   : > { %5936 = vmatprep.subr.bf16.mxu1 %v6896_v46  ;;  %v6983_v46 = vcombine.low %v722_v26, %v726_v27 }
 0x245   : > { %5896 = vmatpush1.bf16.msra.mxu0 %v6767_v55  ;;  %v582_v55 = vld [vmem:[%s7625_s8 + $0xab0] sm:$0xff] }
 0x246   : > { %5937 = vmatpush1.bf16.msra.mxu1 %v6895_v56  ;;  %5897 = vmatprep.subr.bf16.mxu0 %v6760_v57  ;;  %v706_v57 = vld [vmem:[%s7625_s8 + $0xe90] sm:$0xff]  ;;  %v6840_v61 = vcombine.high %v578_v42, %v582_v55  ;;  %v6839_v2 = vcombine.low %v578_v42, %v582_v55 }
 0x247   : > { %5938 = vmatprep.subr.bf16.mxu1 %v6888_v9  ;;  %v710_v9 = vld [vmem:[%s7625_s8 + $0xeb0] sm:$0xff] }
 0x248   : > { %v6967_v51 = vcombine.low %v706_v57, %v710_v9 }
 0x249   : > { %5898 = vmatpush1.bf16.msra.mxu0 %v6759_v63  ;;  %v6968_v63 = vcombine.high %v706_v57, %v710_v9 }
 0x24a   : > { %5939 = vmatpush1.bf16.msra.mxu1 %v6887_v5  ;;  %5899 = vmatprep.subr.bf16.mxu0 %v6880_v1  ;;  %v570_v5 = vld [vmem:[%s7625_s8 + $0xa50] sm:$0xff] }
 0x24b   : > { %5940 = vmatprep.subr.bf16.mxu1 %v7008_v52  ;;  %v698_v1 = vld [vmem:[%s7625_s8 + $0xe50] sm:$0xff] }
 0x24c   : > { %v702_v52 = vld [vmem:[%s7625_s8 + $0xe70] sm:$0xff] }
 0x24d   : > { %5900 = vmatpush2.bf16.msra.mxu0 %v6879_v8  ;;  %v6960_v6 = vcombine.high %v698_v1, %v702_v52  ;;  %v562_v8 = vld [vmem:[%s7625_s8 + $0xa10] sm:$0xff]  ;;  %v6959_v39 = vcombine.low %v698_v1, %v702_v52 }
 0x24e   : > { %5941 = vmatpush2.bf16.msra.mxu1 %v7007_v10  ;;  %5901 = vmatprep.subr.bf16.mxu0 %v6872_v11  ;;  %v566_v10 = vld [vmem:[%s7625_s8 + $0xa30] sm:$0xff] }
 0x24f   : > { %5942 = vmatprep.subr.bf16.mxu1 %v7000_v14  ;;  %v690_v11 = vld [vmem:[%s7625_s8 + $0xe10] sm:$0xff]  ;;  %v6824_v13 = vcombine.high %v562_v8, %v566_v10  ;;  %v6823_v24 = vcombine.low %v562_v8, %v566_v10 }
 0x250   : > { %v694_v14 = vld [vmem:[%s7625_s8 + $0xe30] sm:$0xff] }
 0x251   : > { %5902 = vmatpush2.bf16.msra.mxu0 %v6871_v15  ;;  %v6952_v19 = vcombine.high %v690_v11, %v694_v14  ;;  %v810_v15 = vld [vmem:[%s7625_s8 + $0x11d0] sm:$0xff]  ;;  %v6951_v25 = vcombine.low %v690_v11, %v694_v14 }
 0x252   : > { %5943 = vmatpush2.bf16.msra.mxu1 %v6999_v17  ;;  %5903 = vmatprep.subr.bf16.mxu0 %v6864_v18  ;;  %v814_v17 = vld [vmem:[%s7625_s8 + $0x11f0] sm:$0xff] }
 0x253   : > { %5944 = vmatprep.subr.bf16.mxu1 %v6992_v21  ;;  %v938_v18 = vld [vmem:[%s7625_s8 + $0x15d0] sm:$0xff]  ;;  %v7072_v26 = vcombine.high %v810_v15, %v814_v17  ;;  %v7071_v33 = vcombine.low %v810_v15, %v814_v17 }
 0x254   : > { %v942_v21 = vld [vmem:[%s7625_s8 + $0x15f0] sm:$0xff] }
 0x255   : > { %v5630_v38 = vpop.f32.mrf.mxu1  ;;  %5904 = vmatpush2.bf16.msra.mxu0 %v6863_v28  ;;  %v7200_v27 = vcombine.high %v938_v18, %v942_v21  ;;  %v802_v28 = vld [vmem:[%s7625_s8 + $0x1190] sm:$0xff]  ;;  %v7199_v34 = vcombine.low %v938_v18, %v942_v21 }
 0x256   : > { %v8331_v43 = vadd.f32 %v5630_v38, %v8283_v60  ;;  %5945 = vmatpush2.bf16.msra.mxu1 %v6991_v30  ;;  %5905 = vmatprep.subr.bf16.mxu0 %v6856_v31  ;;  %v806_v30 = vld [vmem:[%s7625_s8 + $0x11b0] sm:$0xff] }
 0x257   : > { %v5632_v50 = vpop.f32.mrf.mxu1  ;;  %5946 = vmatprep.subr.bf16.mxu1 %v6984_v32  ;;  %v930_v31 = vld [vmem:[%s7625_s8 + $0x1590] sm:$0xff]  ;;  %v7064_v35 = vcombine.high %v802_v28, %v806_v30 }
 0x258   : > { %v8336_v56 = vadd.f32 %v5632_v50, %v8286_v0  ;;  %v574_v0 = vld [vmem:[%s7625_s8 + $0xa70] sm:$0xff] }
 0x259   : > { %v5634_v60 = vpop.f32.mrf.mxu1  ;;  %5906 = vmatpush2.bf16.msra.mxu0 %v6855_v41  ;;  %v6832_v3 = vcombine.high %v570_v5, %v574_v0  ;;  %v6831_v12 = vcombine.low %v570_v5, %v574_v0  ;;  %v934_v32 = vld [vmem:[%s7625_s8 + $0x15b0] sm:$0xff] }
 0x25a   : > { %5947 = vmatpush2.bf16.msra.mxu1 %v6983_v46  ;;  %5907 = vmatprep.subr.bf16.mxu0 %v6848_v48  ;;  %v7192_v37 = vcombine.high %v930_v31, %v934_v32  ;;  %v794_v38 = vld [vmem:[%s7625_s8 + $0x1150] sm:$0xff]  ;;  %v7191_v55 = vcombine.low %v930_v31, %v934_v32 }
 0x25b   : > { %v5635_v45 = vpop.f32.mrf.mxu1  ;;  %5948 = vmatprep.subr.bf16.mxu1 %v6976_v62  ;;  %v798_v41 = vld [vmem:[%s7625_s8 + $0x1170] sm:$0xff]  ;;  %v7063_v62 = vcombine.low %v802_v28, %v806_v30 }
 0x25c   : > { %v922_v48 = vld [vmem:[%s7625_s8 + $0x1550] sm:$0xff]  ;;  %v7056_v57 = vcombine.high %v794_v38, %v798_v41 }
 0x25d   : > { %5908 = vmatpush2.bf16.msra.mxu0 %v6847_v47  ;;  %v926_v50 = vld [vmem:[%s7625_s8 + $0x1570] sm:$0xff] }
 0x25e   : > { %5949 = vmatpush2.bf16.msra.mxu1 %v6975_v44  ;;  %5909 = vmatprep.subr.bf16.mxu0 %v6840_v61  ;;  %v7184_v9 = vcombine.high %v922_v48, %v926_v50  ;;  %v786_v60 = vld [vmem:[%s7625_s8 + $0x1110] sm:$0xff]  ;;  %v7183_v0 = vcombine.low %v922_v48, %v926_v50 }
 0x25f   : > { %5950 = vmatprep.subr.bf16.mxu1 %v6968_v63  ;;  %v790_v47 = vld [vmem:[%s7625_s8 + $0x1130] sm:$0xff]  ;;  %v7055_v63 = vcombine.low %v794_v38, %v798_v41 }
 0x260   : > { %v914_v61 = vld [vmem:[%s7625_s8 + $0x1510] sm:$0xff]  ;;  %v7048_v1 = vcombine.high %v786_v60, %v790_v47  ;;  %v7047_v8 = vcombine.low %v786_v60, %v790_v47 }
 0x261   : > { %5910 = vmatpush2.bf16.msra.mxu0 %v6839_v2  ;;  %v918_v45 = vld [vmem:[%s7625_s8 + $0x1530] sm:$0xff] }
 0x262   : > { %5951 = vmatpush2.bf16.msra.mxu1 %v6967_v51  ;;  %5911 = vmatprep.subr.bf16.mxu0 %v6832_v3  ;;  %v7176_v52 = vcombine.high %v914_v61, %v918_v45  ;;  %v778_v2 = vld [vmem:[%s7625_s8 + $0x10d0] sm:$0xff]  ;;  %v7175_v10 = vcombine.low %v914_v61, %v918_v45 }
 0x263   : > { %5952 = vmatprep.subr.bf16.mxu1 %v6960_v6  ;;  %v782_v51 = vld [vmem:[%s7625_s8 + $0x10f0] sm:$0xff] }
 0x264   : > { %v906_v3 = vld [vmem:[%s7625_s8 + $0x14d0] sm:$0xff]  ;;  %v7040_v11 = vcombine.high %v778_v2, %v782_v51  ;;  %v7039_v15 = vcombine.low %v778_v2, %v782_v51 }
 0x265   : > { %5912 = vmatpush2.bf16.msra.mxu0 %v6831_v12  ;;  %v910_v6 = vld [vmem:[%s7625_s8 + $0x14f0] sm:$0xff] }
 0x266   : > { %5953 = vmatpush2.bf16.msra.mxu1 %v6959_v39  ;;  %5913 = vmatprep.subr.bf16.mxu0 %v6824_v13  ;;  %v7168_v14 = vcombine.high %v906_v3, %v910_v6  ;;  %v770_v12 = vld [vmem:[%s7625_s8 + $0x1090] sm:$0xff]  ;;  %v7167_v17 = vcombine.low %v906_v3, %v910_v6 }
 0x267   : > { %5954 = vmatprep.subr.bf16.mxu1 %v6952_v19  ;;  %v774_v39 = vld [vmem:[%s7625_s8 + $0x10b0] sm:$0xff] }
 0x268   : > { %v898_v13 = vld [vmem:[%s7625_s8 + $0x1490] sm:$0xff]  ;;  %v7032_v18 = vcombine.high %v770_v12, %v774_v39  ;;  %v7031_v28 = vcombine.low %v770_v12, %v774_v39 }
 0x269   : > { %5914 = vmatpush2.bf16.msra.mxu0 %v6823_v24  ;;  %v902_v19 = vld [vmem:[%s7625_s8 + $0x14b0] sm:$0xff] }
 0x26a   : > { %5955 = vmatpush2.bf16.msra.mxu1 %v6951_v25  ;;  %5965 = vmatprep.subr.bf16.mxu0 %v7072_v26  ;;  %v7160_v21 = vcombine.high %v898_v13, %v902_v19  ;;  %v762_v24 = vld [vmem:[%s7625_s8 + $0x1050] sm:$0xff]  ;;  %v7159_v30 = vcombine.low %v898_v13, %v902_v19 }
 0x26b   : > { %6006 = vmatprep.subr.bf16.mxu1 %v7200_v27  ;;  %v766_v25 = vld [vmem:[%s7625_s8 + $0x1070] sm:$0xff] }
 0x26c   : > { %v8358_v46 = vpop.f32.mrf.mxu0  ;;  %5916 = vmatmul.mubr.bf16.vlgmr.msra.gmra.mxu0 %v7823_v36  ;;  %v890_v26 = vld [vmem:[%s7625_s8 + $0x1450] sm:$0xff]  ;;  %v7024_v31 = vcombine.high %v762_v24, %v766_v25  ;;  %v7023_v38 = vcombine.low %v762_v24, %v766_v25 }
 0x26d   : > { %5957 = vmatmul.mubr.bf16.vlgmr.msra.gmra.mxu1 %v7834_v40  ;;  %5966 = vmatpush1.bf16.msra.mxu0 %v7071_v33  ;;  %v894_v27 = vld [vmem:[%s7625_s8 + $0x1470] sm:$0xff] }
 0x26e   : > { %6007 = vmatpush1.bf16.msra.mxu1 %v7199_v34  ;;  %v8364_v42 = vpop.f32.mrf.mxu0  ;;  %5967 = vmatprep.subr.bf16.mxu0 %v7064_v35  ;;  %v7152_v32 = vcombine.high %v890_v26, %v894_v27  ;;  %v754_v33 = vld [vmem:[%s7625_s8 + $0x1010] sm:$0xff]  ;;  %v7151_v41 = vcombine.low %v890_v26, %v894_v27 }
 0x26f   : > { %6008 = vmatprep.subr.bf16.mxu1 %v7192_v37  ;;  %5997 = vmatprep.mubr.bf16.mxu0 %v7845_v53  ;;  %v758_v34 = vld [vmem:[%s7625_s8 + $0x1030] sm:$0xff] }
 0x270   : > { %v5675_v44 = vpop.f32.mrf.mxu0  ;;  %6038 = vmatprep.mubr.bf16.mxu1 %v7852_v49  ;;  %v882_v35 = vld [vmem:[%s7625_s8 + $0x1410] sm:$0xff]  ;;  %v7016_v48 = vcombine.high %v754_v33, %v758_v34  ;;  %v7015_v60 = vcombine.low %v754_v33, %v758_v34 }
 0x271   : > { %5968 = vmatpush1.bf16.msra.mxu0 %v7063_v62  ;;  %v886_v37 = vld [vmem:[%s7625_s8 + $0x1430] sm:$0xff] }
 0x272   : > { %6009 = vmatpush1.bf16.msra.mxu1 %v7191_v55  ;;  %v5676_v5 = vpop.f32.mrf.mxu0  ;;  %5969 = vmatprep.subr.bf16.mxu0 %v7056_v57  ;;  %v7144_v50 = vcombine.high %v882_v35, %v886_v37  ;;  %v874_v62 = vld [vmem:[%s7625_s8 + $0x13d0] sm:$0xff]  ;;  %v7143_v47 = vcombine.low %v882_v35, %v886_v37 }
 0x273   : > { %6010 = vmatprep.subr.bf16.mxu1 %v7184_v9  ;;  %v878_v55 = vld [vmem:[%s7625_s8 + $0x13f0] sm:$0xff] }
 0x274   : > { %v1002_v57 = vld [vmem:[%s7625_s8 + $0x17d0] sm:$0xff]  ;;  %v7136_v44 = vcombine.high %v874_v62, %v878_v55 }
 0x275   : > { %5970 = vmatpush1.bf16.msra.mxu0 %v7055_v63  ;;  %v1006_v9 = vld [vmem:[%s7625_s8 + $0x17f0] sm:$0xff] }
 0x276   : > { %6011 = vmatpush1.bf16.msra.mxu1 %v7183_v0  ;;  %5971 = vmatprep.subr.bf16.mxu0 %v7048_v1  ;;  %v7264_v61 = vcombine.high %v1002_v57, %v1006_v9  ;;  %v866_v45 = vld [vmem:[%s7625_s8 + $0x1390] sm:$0xff]  ;;  %v7135_v1 = vcombine.low %v874_v62, %v878_v55 }
 0x277   : > { %6012 = vmatprep.subr.bf16.mxu1 %v7176_v52  ;;  %v870_v63 = vld [vmem:[%s7625_s8 + $0x13b0] sm:$0xff]  ;;  %v7263_v52 = vcombine.low %v1002_v57, %v1006_v9 }
 0x278   : > { %v994_v5 = vld [vmem:[%s7625_s8 + $0x1790] sm:$0xff]  ;;  %v7128_v2 = vcombine.high %v866_v45, %v870_v63 }
 0x279   : > { %5972 = vmatpush1.bf16.msra.mxu0 %v7047_v8  ;;  %v998_v0 = vld [vmem:[%s7625_s8 + $0x17b0] sm:$0xff] }
 0x27a   : > { %6013 = vmatpush1.bf16.msra.mxu1 %v7175_v10  ;;  %5973 = vmatprep.subr.bf16.mxu0 %v7040_v11  ;;  %v7256_v51 = vcombine.high %v994_v5, %v998_v0  ;;  %v858_v3 = vld [vmem:[%s7625_s8 + $0x1350] sm:$0xff]  ;;  %v7127_v11 = vcombine.low %v866_v45, %v870_v63 }
 0x27b   : > { %6014 = vmatprep.subr.bf16.mxu1 %v7168_v14  ;;  %v862_v6 = vld [vmem:[%s7625_s8 + $0x1370] sm:$0xff]  ;;  %v7255_v14 = vcombine.low %v994_v5, %v998_v0 }
 0x27c   : > { %v986_v8 = vld [vmem:[%s7625_s8 + $0x1750] sm:$0xff]  ;;  %v7120_v12 = vcombine.high %v858_v3, %v862_v6 }
 0x27d   : > { %5974 = vmatpush1.bf16.msra.mxu0 %v7039_v15  ;;  %v990_v10 = vld [vmem:[%s7625_s8 + $0x1770] sm:$0xff] }
 0x27e   : > { %6015 = vmatpush1.bf16.msra.mxu1 %v7167_v17  ;;  %5975 = vmatprep.subr.bf16.mxu0 %v7032_v18  ;;  %v7248_v39 = vcombine.high %v986_v8, %v990_v10  ;;  %v850_v13 = vld [vmem:[%s7625_s8 + $0x1310] sm:$0xff]  ;;  %v7119_v18 = vcombine.low %v858_v3, %v862_v6 }
 0x27f   : > { %6016 = vmatprep.subr.bf16.mxu1 %v7160_v21  ;;  %v854_v19 = vld [vmem:[%s7625_s8 + $0x1330] sm:$0xff]  ;;  %v7247_v21 = vcombine.low %v986_v8, %v990_v10 }
 0x280   : > { %v978_v15 = vld [vmem:[%s7625_s8 + $0x1710] sm:$0xff]  ;;  %v7112_v24 = vcombine.high %v850_v13, %v854_v19 }
 0x281   : > { %5976 = vmatpush1.bf16.msra.mxu0 %v7031_v28  ;;  %v982_v17 = vld [vmem:[%s7625_s8 + $0x1730] sm:$0xff] }
 0x282   : > { %6017 = vmatpush1.bf16.msra.mxu1 %v7159_v30  ;;  %5977 = vmatprep.subr.bf16.mxu0 %v7024_v31  ;;  %v7240_v25 = vcombine.high %v978_v15, %v982_v17  ;;  %v842_v26 = vld [vmem:[%s7625_s8 + $0x12d0] sm:$0xff]  ;;  %v7239_v33 = vcombine.low %v978_v15, %v982_v17 }
 0x283   : > { %6018 = vmatprep.subr.bf16.mxu1 %v7152_v32  ;;  %v846_v27 = vld [vmem:[%s7625_s8 + $0x12f0] sm:$0xff]  ;;  %v7111_v32 = vcombine.low %v850_v13, %v854_v19  ;;  %v299_v13 = vld [vmem:[%s7625_s8 + $0x1d8] sm:$0xff] }
 0x284   : > { %v970_v28 = vld [vmem:[%s7625_s8 + $0x16d0] sm:$0xff]  ;;  %v7104_v34 = vcombine.high %v842_v26, %v846_v27  ;;  %v7103_v55 = vcombine.low %v842_v26, %v846_v27  ;;  %v303_v19 = vld [vmem:[%s7625_s8 + $0x1f8] sm:$0xff] }
 0x285   : > { %5978 = vmatpush1.bf16.msra.mxu0 %v7023_v38  ;;  %v974_v30 = vld [vmem:[%s7625_s8 + $0x16f0] sm:$0xff]  ;;  %v291_v26 = vld [vmem:[%s7625_s8 + $0x198] sm:$0xff] }
 0x286   : > { %6019 = vmatpush1.bf16.msra.mxu1 %v7151_v41  ;;  %5979 = vmatprep.subr.bf16.mxu0 %v7016_v48  ;;  %v7232_v37 = vcombine.high %v970_v28, %v974_v30  ;;  %v834_v38 = vld [vmem:[%s7625_s8 + $0x1290] sm:$0xff]  ;;  %v7231_v57 = vcombine.low %v970_v28, %v974_v30  ;;  %v295_v27 = vld [vmem:[%s7625_s8 + $0x1b8] sm:$0xff]  ;;  %v5672_v28 = vadd.f32 %v8358_v46, %v8331_v43 }
 0x287   : > { %6020 = vmatprep.subr.bf16.mxu1 %v7144_v50  ;;  %v838_v41 = vld [vmem:[%s7625_s8 + $0x12b0] sm:$0xff]  ;;  %v283_v43 = vld [vmem:[%s7625_s8 + $0x158] sm:$0xff] }
 0x288   : > { %v962_v48 = vld [vmem:[%s7625_s8 + $0x1690] sm:$0xff]  ;;  %v7096_v9 = vcombine.high %v834_v38, %v838_v41  ;;  %v7095_v5 = vcombine.low %v834_v38, %v838_v41  ;;  %v6554_v38 = vcombine.high %v291_v26, %v295_v27  ;;  %v287_v46 = vld [vmem:[%s7625_s8 + $0x178] sm:$0xff] }
 0x289   : > { %5980 = vmatpush1.bf16.msra.mxu0 %v7015_v60  ;;  %v966_v50 = vld [vmem:[%s7625_s8 + $0x16b0] sm:$0xff] }
 0x28a   : > { %6021 = vmatpush1.bf16.msra.mxu1 %v7143_v47  ;;  %5981 = vmatprep.subr.bf16.mxu0 %v7136_v44  ;;  %v7224_v47 = vcombine.high %v962_v48, %v966_v50  ;;  %v826_v44 = vld [vmem:[%s7625_s8 + $0x1250] sm:$0xff]  ;;  %v7223_v0 = vcombine.low %v962_v48, %v966_v50 }
 0x28b   : > { %6022 = vmatprep.subr.bf16.mxu1 %v7264_v61  ;;  %v830_v61 = vld [vmem:[%s7625_s8 + $0x1270] sm:$0xff] }
 0x28c   : > { %v954_v45 = vld [vmem:[%s7625_s8 + $0x1650] sm:$0xff]  ;;  %v7087_v8 = vcombine.low %v826_v44, %v830_v61 }
 0x28d   : > { %5982 = vmatpush2.bf16.msra.mxu0 %v7135_v1  ;;  %v958_v63 = vld [vmem:[%s7625_s8 + $0x1670] sm:$0xff]  ;;  %v7088_v1 = vcombine.high %v826_v44, %v830_v61 }
 0x28e   : > { %6023 = vmatpush2.bf16.msra.mxu1 %v7263_v52  ;;  %5983 = vmatprep.subr.bf16.mxu0 %v7128_v2  ;;  %v7216_v52 = vcombine.high %v954_v45, %v958_v63  ;;  %v818_v2 = vld [vmem:[%s7625_s8 + $0x1210] sm:$0xff]  ;;  %v7215_v10 = vcombine.low %v954_v45, %v958_v63 }
 0x28f   : > { %6024 = vmatprep.subr.bf16.mxu1 %v7256_v51  ;;  %v822_v51 = vld [vmem:[%s7625_s8 + $0x1230] sm:$0xff] }
 0x290   : > { %v946_v3 = vld [vmem:[%s7625_s8 + $0x1610] sm:$0xff]  ;;  %v7079_v15 = vcombine.low %v818_v2, %v822_v51 }
 0x291   : > { %5984 = vmatpush2.bf16.msra.mxu0 %v7127_v11  ;;  %v950_v6 = vld [vmem:[%s7625_s8 + $0x1630] sm:$0xff]  ;;  %v7080_v11 = vcombine.high %v818_v2, %v822_v51 }
 0x292   : > { %6025 = vmatpush2.bf16.msra.mxu1 %v7255_v14  ;;  %5985 = vmatprep.subr.bf16.mxu0 %v7120_v12  ;;  %v7208_v14 = vcombine.high %v946_v3, %v950_v6  ;;  %v1050_v12 = vld [vmem:[%s7625_s8 + $0x1950] sm:$0xff]  ;;  %v7207_v17 = vcombine.low %v946_v3, %v950_v6  ;;  %v6545_v3 = vcombine.low %v283_v43, %v287_v46 }
 0x293   : > { %6026 = vmatprep.subr.bf16.mxu1 %v7248_v39  ;;  %v1054_v39 = vld [vmem:[%s7625_s8 + $0x1970] sm:$0xff] }
 0x294   : > { %v7311_v30 = vcombine.low %v1050_v12, %v1054_v39  ;;  %v1034_v41 = vld [vmem:[%s7625_s8 + $0x18d0] sm:$0xff] }
 0x295   : > { %v8408_v31 = vpop.f32.mrf.mxu1  ;;  %5986 = vmatpush2.bf16.msra.mxu0 %v7119_v18  ;;  %v7312_v18 = vcombine.high %v1050_v12, %v1054_v39  ;;  %v1038_v48 = vld [vmem:[%s7625_s8 + $0x18f0] sm:$0xff]  ;;  %v271_v12 = vld [vmem:[%s7625_s8 + $0xf8] sm:$0xff] }
 0x296   : > { %6027 = vmatpush2.bf16.msra.mxu1 %v7247_v21  ;;  %5987 = vmatprep.subr.bf16.mxu0 %v7112_v24  ;;  %v6562_v21 = vcombine.high %v299_v13, %v303_v19  ;;  %v1042_v24 = vld [vmem:[%s7625_s8 + $0x1910] sm:$0xff]  ;;  %v7295_v2 = vcombine.low %v1034_v41, %v1038_v48 }
 0x297   : > { %v8410_v35 = vpop.f32.mrf.mxu1  ;;  %6028 = vmatprep.subr.bf16.mxu1 %v7240_v25  ;;  %v1046_v25 = vld [vmem:[%s7625_s8 + $0x1930] sm:$0xff] }
 0x298   : > { %v1026_v61 = vld [vmem:[%s7625_s8 + $0x1890] sm:$0xff] }
 0x299   : > { %v5716_v62 = vpop.f32.mrf.mxu1  ;;  %5988 = vmatpush2.bf16.msra.mxu0 %v7111_v32  ;;  %v6561_v32 = vcombine.low %v299_v13, %v303_v19  ;;  %v1030_v45 = vld [vmem:[%s7625_s8 + $0x18b0] sm:$0xff] }
 0x29a   : > { %6029 = vmatpush2.bf16.msra.mxu1 %v7239_v33  ;;  %5989 = vmatprep.subr.bf16.mxu0 %v7104_v34  ;;  %v7304_v33 = vcombine.high %v1042_v24, %v1046_v25  ;;  %v5674_v34 = vadd.f32 %v8364_v42, %v8336_v56  ;;  %v7303_v56 = vcombine.low %v1042_v24, %v1046_v25  ;;  %v263_v24 = vld [vmem:[%s7625_s8 + $0xb8] sm:$0xff] }
 0x29b   : > { %v5717_v60 = vpop.f32.mrf.mxu1  ;;  %6030 = vmatprep.subr.bf16.mxu1 %v7232_v37  ;;  %v5713_v37 = vadd.f32 %v8408_v31, %v5672_v28  ;;  %v6553_v31 = vcombine.low %v291_v26, %v295_v27  ;;  %v7288_v6 = vcombine.high %v1026_v61, %v1030_v45  ;;  %v7287_v39 = vcombine.low %v1026_v61, %v1030_v45 }
 0x29c   : > { %v5715_v62 = vadd.f32 %v8410_v35, %v5674_v34  ;;  %v6546_v35 = vcombine.high %v283_v43, %v287_v46  ;;  %v255_v34 = vld [vmem:[%s7625_s8 + $0x78] sm:$0xff] }
 0x29d   : > { %5990 = vmatpush2.bf16.msra.mxu0 %v7103_v55  ;;  %v423_v43 = vld [vmem:[%s7625_s8 + $0x5b8] sm:$0xff] }
 0x29e   : > { %6031 = vmatpush2.bf16.msra.mxu1 %v7231_v57  ;;  %5991 = vmatprep.subr.bf16.mxu0 %v7096_v9  ;;  %v7296_v9 = vcombine.high %v1034_v41, %v1038_v48  ;;  %v243_v46 = vld [vmem:[%s7625_s8 + $0x18] sm:$0xff] }
 0x29f   : > { %6032 = vmatprep.subr.bf16.mxu1 %v7224_v47 }
 0x2a1   : > { %5992 = vmatpush2.bf16.msra.mxu0 %v7095_v5  ;;  %v275_v5 = vld [vmem:[%s7625_s8 + $0x118] sm:$0xff] }
 0x2a2   : > { %6033 = vmatpush2.bf16.msra.mxu1 %v7223_v0  ;;  %5993 = vmatprep.subr.bf16.mxu0 %v7088_v1  ;;  %v279_v0 = vld [vmem:[%s7625_s8 + $0x138] sm:$0xff] }
 0x2a3   : > { %6034 = vmatprep.subr.bf16.mxu1 %v7216_v52  ;;  %v6537_v13 = vcombine.low %v275_v5, %v279_v0 }
 0x2a5   : > { %5994 = vmatpush2.bf16.msra.mxu0 %v7087_v8 }
 0x2a6   : > { %6035 = vmatpush2.bf16.msra.mxu1 %v7215_v10  ;;  %5995 = vmatprep.subr.bf16.mxu0 %v7080_v11  ;;  %v1018_v10 = vld [vmem:[%s7625_s8 + $0x1850] sm:$0xff] }
 0x2a7   : > { %6036 = vmatprep.subr.bf16.mxu1 %v7208_v14  ;;  %v1022_v11 = vld [vmem:[%s7625_s8 + $0x1870] sm:$0xff]  ;;  %v267_v14 = vld [vmem:[%s7625_s8 + $0xd8] sm:$0xff] }
 0x2a8   : > { %v7280_v19 = vcombine.high %v1018_v10, %v1022_v11  ;;  %v7279_v25 = vcombine.low %v1018_v10, %v1022_v11  ;;  %v6529_v26 = vcombine.low %v267_v14, %v271_v12  ;;  %v351_v10 = vld [vmem:[%s7625_s8 + $0x378] sm:$0xff] }
 0x2a9   : > { %5996 = vmatpush2.bf16.msra.mxu0 %v7079_v15  ;;  %v6530_v15 = vcombine.high %v267_v14, %v271_v12 }
 0x2aa   : > { %6037 = vmatpush2.bf16.msra.mxu1 %v7207_v17  ;;  %6051 = vmatprep.subr.bf16.mxu0 %v7312_v18  ;;  %v1010_v17 = vld [vmem:[%s7625_s8 + $0x1810] sm:$0xff] }
 0x2ab   : > { %6088 = vmatprep.subr.bf16.mxu1 %v6562_v21  ;;  %v1014_v18 = vld [vmem:[%s7625_s8 + $0x1830] sm:$0xff]  ;;  %v259_v21 = vld [vmem:[%s7625_s8 + $0x98] sm:$0xff] }
 0x2ac   : > { %v5753_v50 = vpop.f32.mrf.mxu0  ;;  %5998 = vmatmul.mubr.bf16.vlgmr.msra.gmra.mxu0 %v7917_v4  ;;  %v7272_v27 = vcombine.high %v1010_v17, %v1014_v18  ;;  %v6522_v28 = vcombine.high %v259_v21, %v263_v24 }
 0x2ad   : > { %v5754_v55 = vadd.f32 %v5753_v50, %v5713_v37  ;;  %v5794_v57 = vpop.f32.mrf.mxu1  ;;  %6039 = vmatmul.mubr.bf16.vlgmr.msra.gmra.mxu1 %v7923_v7  ;;  %6052 = vmatpush1.bf16.msra.mxu0 %v7311_v30  ;;  %v427_v30 = vld [vmem:[%s7625_s8 + $0x5d8] sm:$0xff]  ;;  %v7271_v37 = vcombine.low %v1010_v17, %v1014_v18 }
 0x2ae   : > { %6089 = vmatpush1.bf16.msra.mxu1 %v6561_v32  ;;  %v5755_v42 = vpop.f32.mrf.mxu0  ;;  %6053 = vmatprep.subr.bf16.mxu0 %v7304_v33  ;;  %v431_v32 = vld [vmem:[%s7625_s8 + $0x5f8] sm:$0xff] }
 0x2af   : > { %v5795_v60 = vadd.f32 %v5794_v57, %v5754_v55  ;;  %v5756_v47 = vadd.f32 %v5755_v42, %v5715_v62  ;;  %v5796_v44 = vpop.f32.mrf.mxu1  ;;  %6090 = vmatprep.subr.bf16.mxu1 %v6554_v38  ;;  %6079 = vmatprep.mubr.bf16.mxu0 %v7493_v23  ;;  %v251_v33 = vld [vmem:[%s7625_s8 + $0x58] sm:$0xff]  ;;  %v6521_v38 = vcombine.low %v259_v21, %v263_v24 }
 0x2b0   : > { %v5757_v63 = vpop.f32.mrf.mxu0  ;;  %6120 = vmatprep.mubr.bf16.mxu1 %v7679_v58  ;;  %v6538_v58 = vcombine.high %v275_v5, %v279_v0  ;;  %v6690_v41 = vcombine.high %v427_v30, %v431_v32  ;;  %v6514_v48 = vcombine.high %v251_v33, %v255_v34  ;;  %v419_v50 = vld [vmem:[%s7625_s8 + $0x598] sm:$0xff]  ;;  %v6689_v55 = vcombine.low %v427_v30, %v431_v32 }
 0x2b1   : > { %6377 = vst [vmem:[%s8195_s6 + $0x10] sm:$0xff] %v5795_v60  ;;  %v5797_v1 = vadd.f32 %v5796_v44, %v5756_v47  ;;  %v5798_v52 = vpop.f32.mrf.mxu1  ;;  %6054 = vmatpush1.bf16.msra.mxu0 %v7303_v56  ;;  %v247_v62 = vld [vmem:[%s7625_s8 + $0x38] sm:$0xff]  ;;  %v6513_v57 = vcombine.low %v251_v33, %v255_v34  ;;  %v6682_v56 = vcombine.high %v419_v50, %v423_v43  ;;  %v7388_v60 = vld [vmem:[%s8715_s0 + $0x30] ss:$0 sps:$4 sm:$0xff]  }
 0x2b2   : > { %6091 = vmatpush1.bf16.msra.mxu1 %v6553_v31  ;;  %v5758_v51 = vpop.f32.mrf.mxu0  ;;  %6055 = vmatprep.subr.bf16.mxu0 %v7296_v9  ;;  %v6506_v42 = vcombine.high %v243_v46, %v247_v62  ;;  %v411_v31 = vld [vmem:[%s7625_s8 + $0x558] sm:$0xff]  ;;  %v6505_v61 = vcombine.low %v243_v46, %v247_v62 }
 0x2b3   : > { %6378 = vst [vmem:[%s8195_s6 + $0x18] sm:$0xff] %v5797_v1  ;;  %v5799_v8 = vpop.f32.mrf.mxu1  ;;  %6092 = vmatprep.subr.bf16.mxu1 %v6546_v35  ;;  %v415_v9 = vld [vmem:[%s7625_s8 + $0x578] sm:$0xff]  ;;  %v6681_v35 = vcombine.low %v419_v50, %v423_v43 }
 0x2b4   : > { %v363_v47 = vld [vmem:[%s7625_s8 + $0x3d8] sm:$0xff]  ;;  %v6674_v45 = vcombine.high %v411_v31, %v415_v9 }
 0x2b5   : > { %6056 = vmatpush1.bf16.msra.mxu0 %v7295_v2  ;;  %v367_v44 = vld [vmem:[%s7625_s8 + $0x3f8] sm:$0xff]  ;;  %v6673_v2 = vcombine.low %v411_v31, %v415_v9 }
 0x2b6   : > { %6093 = vmatpush1.bf16.msra.mxu1 %v6545_v3  ;;  %6057 = vmatprep.subr.bf16.mxu0 %v7288_v6  ;;  %v6626_v63 = vcombine.high %v363_v47, %v367_v44  ;;  %v403_v5 = vld [vmem:[%s7625_s8 + $0x518] sm:$0xff]  ;;  %v6625_v51 = vcombine.low %v363_v47, %v367_v44 }
 0x2b7   : > { %6094 = vmatprep.subr.bf16.mxu1 %v6538_v58  ;;  %v407_v0 = vld [vmem:[%s7625_s8 + $0x538] sm:$0xff] }
 0x2b8   : > { %v355_v1 = vld [vmem:[%s7625_s8 + $0x398] sm:$0xff]  ;;  %v6665_v11 = vcombine.low %v403_v5, %v407_v0 }
 0x2b9   : > { %6058 = vmatpush1.bf16.msra.mxu0 %v7287_v39  ;;  %v359_v52 = vld [vmem:[%s7625_s8 + $0x3b8] sm:$0xff] }
 0x2ba   : > { %6095 = vmatpush1.bf16.msra.mxu1 %v6537_v13  ;;  %6059 = vmatprep.subr.bf16.mxu0 %v7280_v19  ;;  %v6618_v3 = vcombine.high %v355_v1, %v359_v52  ;;  %v395_v6 = vld [vmem:[%s7625_s8 + $0x4d8] sm:$0xff]  ;;  %v6617_v14 = vcombine.low %v355_v1, %v359_v52 }
 0x2bb   : > { %6096 = vmatprep.subr.bf16.mxu1 %v6530_v15  ;;  %v399_v8 = vld [vmem:[%s7625_s8 + $0x4f8] sm:$0xff] }
 0x2bc   : > { %v347_v58 = vld [vmem:[%s7625_s8 + $0x358] sm:$0xff]  ;;  %v6658_v12 = vcombine.high %v395_v6, %v399_v8  ;;  %v6657_v18 = vcombine.low %v395_v6, %v399_v8  ;;  %v1076_v8 = vsub.s32 4, %v7990_v22 }
 0x2bd   : > { %6060 = vmatpush1.bf16.msra.mxu0 %v7279_v25  ;;  %v6610_v39 = vcombine.high %v347_v58, %v351_v10  ;;  %v387_v13 = vld [vmem:[%s7625_s8 + $0x498] sm:$0xff]  ;;  %v6609_v21 = vcombine.low %v347_v58, %v351_v10 }
 0x2be   : > { %6097 = vmatpush1.bf16.msra.mxu1 %v6529_v26  ;;  %6061 = vmatprep.subr.bf16.mxu0 %v7272_v27  ;;  %v391_v19 = vld [vmem:[%s7625_s8 + $0x4b8] sm:$0xff] }
 0x2bf   : > { %6098 = vmatprep.subr.bf16.mxu1 %v6522_v28  ;;  %v339_v15 = vld [vmem:[%s7625_s8 + $0x318] sm:$0xff]  ;;  %v6650_v24 = vcombine.high %v387_v13, %v391_v19  ;;  %v6649_v32 = vcombine.low %v387_v13, %v391_v19 }
 0x2c0   : > { %v343_v17 = vld [vmem:[%s7625_s8 + $0x338] sm:$0xff] }
 0x2c1   : > { %6062 = vmatpush1.bf16.msra.mxu0 %v7271_v37  ;;  %v6602_v25 = vcombine.high %v339_v15, %v343_v17  ;;  %v379_v26 = vld [vmem:[%s7625_s8 + $0x458] sm:$0xff]  ;;  %v6601_v33 = vcombine.low %v339_v15, %v343_v17  ;;  %v8516_v15 = vld [vmem:[%s7631_s25] sm:$0xff] }
 0x2c2   : > { %6099 = vmatpush1.bf16.msra.mxu1 %v6521_v38  ;;  %6129 = vmatprep.subr.bf16.mxu0 %v6690_v41  ;;  %v383_v27 = vld [vmem:[%s7625_s8 + $0x478] sm:$0xff]  ;;  %v1077_v17 = vrot.slane %v8516_v15, %v1076_v8 }
 0x2c3   : > { %6100 = vmatprep.subr.bf16.mxu1 %v6514_v48  ;;  %v331_v28 = vld [vmem:[%s7625_s8 + $0x2d8] sm:$0xff]  ;;  %v6642_v34 = vcombine.high %v379_v26, %v383_v27  ;;  %v6641_v43 = vcombine.low %v379_v26, %v383_v27 }
 0x2c4   : > { %7317 = vmatmul.mubr.msk.bf16.vlgmr.msra.gmra.mxu0 %vm5223_vm0, %v7388_v60  ;;  %v335_v30 = vld [vmem:[%s7625_s8 + $0x2f8] sm:$0xff] }
 0x2c5   : > { %6130 = vmatpush1.bf16.msra.mxu0 %v6689_v55  ;;  %6161 = vmatprep.mubr.bf16.mxu0 %v7683_v59  ;;  %v6666_v59 = vcombine.high %v403_v5, %v407_v0  ;;  %v6594_v37 = vcombine.high %v331_v28, %v335_v30  ;;  %v371_v38 = vld [vmem:[%s7625_s8 + $0x418] sm:$0xff]  ;;  %v6593_v46 = vcombine.low %v331_v28, %v335_v30 }
 0x2c6   : > { %6101 = vmatpush1.bf16.msra.mxu1 %v6513_v57  ;;  %6131 = vmatprep.subr.bf16.mxu0 %v6682_v56  ;;  %v375_v41 = vld [vmem:[%s7625_s8 + $0x438] sm:$0xff] }
 0x2c7   : > { %6102 = vmatprep.subr.bf16.mxu1 %v6506_v42  ;;  %v323_v48 = vld [vmem:[%s7625_s8 + $0x298] sm:$0xff]  ;;  %v6634_v62 = vcombine.high %v371_v38, %v375_v41  ;;  %v6633_v9 = vcombine.low %v371_v38, %v375_v41 }
 0x2c8   : > { %v327_v50 = vld [vmem:[%s7625_s8 + $0x2b8] sm:$0xff] }
 0x2c9   : > { %6132 = vmatpush1.bf16.msra.mxu0 %v6681_v35  ;;  %v6586_v55 = vcombine.high %v323_v48, %v327_v50  ;;  %v491_v57 = vld [vmem:[%s7625_s8 + $0x7d8] sm:$0xff]  ;;  %v6585_v60 = vcombine.low %v323_v48, %v327_v50 }
 0x2ca   : > { %6103 = vmatpush1.bf16.msra.mxu1 %v6505_v61  ;;  %6133 = vmatprep.subr.bf16.mxu0 %v6674_v45  ;;  %v495_v56 = vld [vmem:[%s7625_s8 + $0x7f8] sm:$0xff] }
 0x2cb   : > { %6104 = vmatprep.subr.bf16.mxu1 %v6626_v63  ;;  %v315_v42 = vld [vmem:[%s7625_s8 + $0x258] sm:$0xff]  ;;  %v6754_v47 = vcombine.high %v491_v57, %v495_v56  ;;  %v6753_v5 = vcombine.low %v491_v57, %v495_v56 }
 0x2cc   : > { %v319_v31 = vld [vmem:[%s7625_s8 + $0x278] sm:$0xff] }
 0x2cd   : > { %6134 = vmatpush1.bf16.msra.mxu0 %v6673_v2  ;;  %v6578_v44 = vcombine.high %v315_v42, %v319_v31  ;;  %v483_v35 = vld [vmem:[%s7625_s8 + $0x798] sm:$0xff]  ;;  %v6577_v0 = vcombine.low %v315_v42, %v319_v31 }
 0x2ce   : > { %6105 = vmatpush2.bf16.msra.mxu1 %v6625_v51  ;;  %6135 = vmatprep.subr.bf16.mxu0 %v6666_v59  ;;  %v487_v61 = vld [vmem:[%s7625_s8 + $0x7b8] sm:$0xff] }
 0x2cf   : > { %6106 = vmatprep.subr.bf16.mxu1 %v6618_v3  ;;  %v307_v45 = vld [vmem:[%s7625_s8 + $0x218] sm:$0xff]  ;;  %v6746_v1 = vcombine.high %v483_v35, %v487_v61  ;;  %v6745_v6 = vcombine.low %v483_v35, %v487_v61 }
 0x2d0   : > { %v311_v63 = vld [vmem:[%s7625_s8 + $0x238] sm:$0xff] }
 0x2d1   : > { %6136 = vmatpush1.bf16.msra.mxu0 %v6665_v11  ;;  %v6570_v52 = vcombine.high %v307_v45, %v311_v63  ;;  %v475_v2 = vld [vmem:[%s7625_s8 + $0x758] sm:$0xff]  ;;  %v6569_v58 = vcombine.low %v307_v45, %v311_v63 }
 0x2d2   : > { %6107 = vmatpush2.bf16.msra.mxu1 %v6617_v14  ;;  %6137 = vmatprep.subr.bf16.mxu0 %v6658_v12  ;;  %v479_v51 = vld [vmem:[%s7625_s8 + $0x778] sm:$0xff]  ;;  %v1080_v14 = vsub.s32 5, %v7990_v22 }
 0x2d3   : > { %6108 = vmatprep.subr.bf16.mxu1 %v6610_v39  ;;  %v555_v59 = vld [vmem:[%s7625_s8 + $0x9d8] sm:$0xff]  ;;  %v6738_v10 = vcombine.high %v475_v2, %v479_v51 }
 0x2d4   : > { %v559_v3 = vld [vmem:[%s7625_s8 + $0x9f8] sm:$0xff] }
 0x2d5   : > { %6138 = vmatpush1.bf16.msra.mxu0 %v6657_v18  ;;  %v6818_v11 = vcombine.high %v555_v59, %v559_v3  ;;  %v467_v12 = vld [vmem:[%s7625_s8 + $0x718] sm:$0xff]  ;;  %v6737_v18 = vcombine.low %v475_v2, %v479_v51 }
 0x2d6   : > { %6109 = vmatpush2.bf16.msra.mxu1 %v6609_v21  ;;  %6139 = vmatprep.subr.bf16.mxu0 %v6650_v24  ;;  %v471_v39 = vld [vmem:[%s7625_s8 + $0x738] sm:$0xff]  ;;  %v6817_v21 = vcombine.low %v555_v59, %v559_v3 }
 0x2d7   : > { %6110 = vmatprep.subr.bf16.mxu1 %v6602_v25  ;;  %v547_v13 = vld [vmem:[%s7625_s8 + $0x998] sm:$0xff]  ;;  %v6730_v24 = vcombine.high %v467_v12, %v471_v39  ;;  %v1081_v25 = vrot.slane %v8516_v15, %v1080_v14  ;;  %v6729_v38 = vcombine.low %v467_v12, %v471_v39 }
 0x2d8   : > { %v551_v19 = vld [vmem:[%s7625_s8 + $0x9b8] sm:$0xff] }
 0x2d9   : > { %6140 = vmatpush1.bf16.msra.mxu0 %v6649_v32  ;;  %v6810_v26 = vcombine.high %v547_v13, %v551_v19  ;;  %v459_v27 = vld [vmem:[%s7625_s8 + $0x6d8] sm:$0xff]  ;;  %v6809_v48 = vcombine.low %v547_v13, %v551_v19 }
 0x2da   : > { %6111 = vmatpush2.bf16.msra.mxu1 %v6601_v33  ;;  %6141 = vmatprep.subr.bf16.mxu0 %v6642_v34  ;;  %v463_v28 = vld [vmem:[%s7625_s8 + $0x6f8] sm:$0xff] }
 0x2db   : > { %6112 = vmatprep.subr.bf16.mxu1 %v6594_v37  ;;  %v539_v32 = vld [vmem:[%s7625_s8 + $0x958] sm:$0xff]  ;;  %v6722_v50 = vcombine.high %v459_v27, %v463_v28 }
 0x2dc   : > { %v543_v33 = vld [vmem:[%s7625_s8 + $0x978] sm:$0xff] }
 0x2dd   : > { %6142 = vmatpush1.bf16.msra.mxu0 %v6641_v43  ;;  %v451_v57 = vld [vmem:[%s7625_s8 + $0x698] sm:$0xff]  ;;  %v6801_v35 = vcombine.low %v539_v32, %v543_v33 }
 0x2de   : > { %6113 = vmatpush2.bf16.msra.mxu1 %v6593_v46  ;;  %6143 = vmatprep.subr.bf16.mxu0 %v6634_v62  ;;  %v455_v56 = vld [vmem:[%s7625_s8 + $0x6b8] sm:$0xff] }
 0x2df   : > { %6114 = vmatprep.subr.bf16.mxu1 %v6586_v55  ;;  %v6802_v55 = vcombine.high %v539_v32, %v543_v33  ;;  %v531_v42 = vld [vmem:[%s7625_s8 + $0x918] sm:$0xff]  ;;  %v6714_v61 = vcombine.high %v451_v57, %v455_v56 }
 0x2e0   : > { %v535_v31 = vld [vmem:[%s7625_s8 + $0x938] sm:$0xff] }
 0x2e1   : > { %6144 = vmatpush1.bf16.msra.mxu0 %v6633_v9  ;;  %v443_v63 = vld [vmem:[%s7625_s8 + $0x658] sm:$0xff]  ;;  %v6793_v2 = vcombine.low %v531_v42, %v535_v31 }
 0x2e2   : > { %6115 = vmatpush2.bf16.msra.mxu1 %v6585_v60  ;;  %6145 = vmatprep.subr.bf16.mxu0 %v6754_v47  ;;  %v6721_v47 = vcombine.low %v459_v27, %v463_v28  ;;  %v435_v3 = vld [vmem:[%s7625_s8 + $0x618] sm:$0xff] }
 0x2e3   : > { %6116 = vmatprep.subr.bf16.mxu1 %v6578_v44  ;;  %v515_v8 = vld [vmem:[%s7625_s8 + $0x898] sm:$0xff] }
 0x2e4   : > { %v683_v39 = vld [vmem:[%s7625_s8 + $0xdd8] sm:$0xff] }
 0x2e5   : > { %6146 = vmatpush2.bf16.msra.mxu0 %v6753_v5  ;;  %v447_v5 = vld [vmem:[%s7625_s8 + $0x678] sm:$0xff] }
 0x2e6   : > { %6117 = vmatpush2.bf16.msra.mxu1 %v6577_v0  ;;  %6147 = vmatprep.subr.bf16.mxu0 %v6746_v1  ;;  %v523_v0 = vld [vmem:[%s7625_s8 + $0x8d8] sm:$0xff]  ;;  %v6706_v51 = vcombine.high %v443_v63, %v447_v5 }
 0x2e7   : > { %6118 = vmatprep.subr.bf16.mxu1 %v6570_v52  ;;  %v527_v1 = vld [vmem:[%s7625_s8 + $0x8f8] sm:$0xff]  ;;  %v6713_v52 = vcombine.low %v451_v57, %v455_v56 }
 0x2e8   : > { %v6786_v59 = vcombine.high %v523_v0, %v527_v1  ;;  %v687_v13 = vld [vmem:[%s7625_s8 + $0xdf8] sm:$0xff] }
 0x2e9   : > { %6148 = vmatpush2.bf16.msra.mxu0 %v6745_v6  ;;  %v439_v6 = vld [vmem:[%s7625_s8 + $0x638] sm:$0xff]  ;;  %v6945_v32 = vcombine.low %v683_v39, %v687_v13 }
 0x2ea   : > { %6119 = vmatpush2.bf16.msra.mxu1 %v6569_v58  ;;  %6149 = vmatprep.subr.bf16.mxu0 %v6738_v10  ;;  %v519_v58 = vld [vmem:[%s7625_s8 + $0x8b8] sm:$0xff]  ;;  %v6705_v10 = vcombine.low %v443_v63, %v447_v5  ;;  %v6698_v14 = vcombine.high %v435_v3, %v439_v6 }
 0x2eb   : > { %6170 = vmatprep.subr.bf16.mxu1 %v6818_v11  ;;  %v6785_v11 = vcombine.low %v523_v0, %v527_v1  ;;  %v6778_v12 = vcombine.high %v515_v8, %v519_v58  ;;  %v507_v19 = vld [vmem:[%s7625_s8 + $0x858] sm:$0xff] }
 0x2ec   : > { %v5835_v30 = vpop.f32.mrf.mxu0  ;;  %v679_v27 = vld [vmem:[%s7625_s8 + $0xdb8] sm:$0xff] }
 0x2ed   : > { %v5836_v34 = vadd.f32 %v5835_v30, %v1077_v17  ;;  %v5876_v37 = vpop.f32.mrf.mxu1  ;;  %6121 = vmatmul.mubr.bf16.vlgmr.msra.gmra.mxu1 %v7729_v16  ;;  %6150 = vmatpush2.bf16.msra.mxu0 %v6737_v18  ;;  %v511_v17 = vld [vmem:[%s7625_s8 + $0x878] sm:$0xff]  ;;  %v6697_v18 = vcombine.low %v435_v3, %v439_v6 }
 0x2ee   : > { %6171 = vmatpush1.bf16.msra.mxu1 %v6817_v21  ;;  %v5837_v41 = vpop.f32.mrf.mxu0  ;;  %6151 = vmatprep.subr.bf16.mxu0 %v6730_v24  ;;  %v6777_v21 = vcombine.low %v515_v8, %v519_v58  ;;  %v6946_v24 = vcombine.high %v683_v39, %v687_v13  ;;  %v499_v28 = vld [vmem:[%s7625_s8 + $0x818] sm:$0xff]  ;;  %v6769_v33 = vcombine.low %v507_v19, %v511_v17 }
 0x2ef   : > { %v8525_v43 = vadd.f32 %v5876_v37, %v5836_v34  ;;  %v5838_v46 = vadd.f32 %v5837_v41, %v1081_v25  ;;  %v5878_v62 = vpop.f32.mrf.mxu1  ;;  %6172 = vmatprep.subr.bf16.mxu1 %v6810_v26  ;;  %6202 = vmatprep.mubr.bf16.mxu1 %v7751_v54  ;;  %v6794_v54 = vcombine.high %v531_v42, %v535_v31  ;;  %v675_v26 = vld [vmem:[%s7625_s8 + $0xd98] sm:$0xff] }
 0x2f0   : > { %v5839_v16 = vpop.f32.mrf.mxu0  ;;  %v6770_v25 = vcombine.high %v507_v19, %v511_v17  ;;  %v503_v30 = vld [vmem:[%s7625_s8 + $0x838] sm:$0xff]  ;;  %v6938_v34 = vcombine.high %v675_v26, %v679_v27 }
 0x2f1   : > { %v8532_v9 = vadd.f32 %v5878_v62, %v5838_v46  ;;  %v5880_v60 = vpop.f32.mrf.mxu1  ;;  %6152 = vmatpush2.bf16.msra.mxu0 %v6729_v38  ;;  %v6762_v37 = vcombine.high %v499_v28, %v503_v30  ;;  %v667_v38 = vld [vmem:[%s7625_s8 + $0xd58] sm:$0xff]  ;;  %v6937_v46 = vcombine.low %v675_v26, %v679_v27  ;;  %v6761_v62 = vcombine.low %v499_v28, %v503_v30 }
 0x2f2   : > { %6173 = vmatpush1.bf16.msra.mxu1 %v6809_v48  ;;  %v5840_v44 = vpop.f32.mrf.mxu0  ;;  %6153 = vmatprep.subr.bf16.mxu0 %v6722_v50  ;;  %v671_v41 = vld [vmem:[%s7625_s8 + $0xd78] sm:$0xff] }
 0x2f3   : > { %v5881_v45 = vpop.f32.mrf.mxu1  ;;  %6174 = vmatprep.subr.bf16.mxu1 %v6802_v55  ;;  %v619_v48 = vld [vmem:[%s7625_s8 + $0xbd8] sm:$0xff]  ;;  %v6930_v55 = vcombine.high %v667_v38, %v671_v41  ;;  %v6929_v31 = vcombine.low %v667_v38, %v671_v41 }
 0x2f4   : > { %v623_v50 = vld [vmem:[%s7625_s8 + $0xbf8] sm:$0xff] }
 0x2f5   : > { %6154 = vmatpush2.bf16.msra.mxu0 %v6721_v47  ;;  %v6882_v57 = vcombine.high %v619_v48, %v623_v50  ;;  %v659_v56 = vld [vmem:[%s7625_s8 + $0xd18] sm:$0xff]  ;;  %v6881_v60 = vcombine.low %v619_v48, %v623_v50 }
 0x2f6   : > { %6175 = vmatpush1.bf16.msra.mxu1 %v6801_v35  ;;  %6155 = vmatprep.subr.bf16.mxu0 %v6714_v61  ;;  %v663_v16 = vld [vmem:[%s7625_s8 + $0xd38] sm:$0xff] }
 0x2f7   : > { %6176 = vmatprep.subr.bf16.mxu1 %v6794_v54  ;;  %v611_v42 = vld [vmem:[%s7625_s8 + $0xb98] sm:$0xff]  ;;  %v6921_v54 = vcombine.low %v659_v56, %v663_v16 }
 0x2f8   : > { %v651_v44 = vld [vmem:[%s7625_s8 + $0xcd8] sm:$0xff] }
 0x2f9   : > { %6156 = vmatpush2.bf16.msra.mxu0 %v6713_v52  ;;  %v655_v35 = vld [vmem:[%s7625_s8 + $0xcf8] sm:$0xff] }
 0x2fa   : > { %6177 = vmatpush1.bf16.msra.mxu1 %v6793_v2  ;;  %6157 = vmatprep.subr.bf16.mxu0 %v6706_v51  ;;  %v603_v61 = vld [vmem:[%s7625_s8 + $0xb58] sm:$0xff]  ;;  %v6914_v5 = vcombine.high %v651_v44, %v655_v35 }
 0x2fb   : > { %6178 = vmatprep.subr.bf16.mxu1 %v6786_v59  ;;  %v607_v45 = vld [vmem:[%s7625_s8 + $0xb78] sm:$0xff]  ;;  %v6913_v59 = vcombine.low %v651_v44, %v655_v35 }
 0x2fc   : > { %v6866_v0 = vcombine.high %v603_v61, %v607_v45  ;;  %v643_v1 = vld [vmem:[%s7625_s8 + $0xc98] sm:$0xff]  ;;  %v6865_v3 = vcombine.low %v603_v61, %v607_v45 }
 0x2fd   : > { %6158 = vmatpush2.bf16.msra.mxu0 %v6705_v10  ;;  %v647_v52 = vld [vmem:[%s7625_s8 + $0xcb8] sm:$0xff] }
 0x2fe   : > { %6179 = vmatpush1.bf16.msra.mxu1 %v6785_v11  ;;  %6159 = vmatprep.subr.bf16.mxu0 %v6698_v14  ;;  %v595_v2 = vld [vmem:[%s7625_s8 + $0xb18] sm:$0xff]  ;;  %v6906_v6 = vcombine.high %v643_v1, %v647_v52 }
 0x2ff   : > { %6180 = vmatprep.subr.bf16.mxu1 %v6778_v12  ;;  %v599_v51 = vld [vmem:[%s7625_s8 + $0xb38] sm:$0xff]  ;;  %v6905_v12 = vcombine.low %v643_v1, %v647_v52 }
 0x300   : > { %v6858_v8 = vcombine.high %v595_v2, %v599_v51  ;;  %v635_v58 = vld [vmem:[%s7625_s8 + $0xc58] sm:$0xff]  ;;  %v6857_v39 = vcombine.low %v595_v2, %v599_v51 }
 0x301   : > { %6160 = vmatpush2.bf16.msra.mxu0 %v6697_v18  ;;  %v639_v10 = vld [vmem:[%s7625_s8 + $0xc78] sm:$0xff] }
 0x302   : > { %6181 = vmatpush1.bf16.msra.mxu1 %v6777_v21  ;;  %6211 = vmatprep.subr.bf16.mxu0 %v6946_v24  ;;  %v587_v11 = vld [vmem:[%s7625_s8 + $0xad8] sm:$0xff]  ;;  %v6898_v13 = vcombine.high %v635_v58, %v639_v10 }
 0x303   : > { %6182 = vmatprep.subr.bf16.mxu1 %v6770_v25  ;;  %v591_v14 = vld [vmem:[%s7625_s8 + $0xaf8] sm:$0xff]  ;;  %v6897_v25 = vcombine.low %v635_v58, %v639_v10 }
 0x304   : > { %6162 = vmatmul.mubr.bf16.vlgmr.msra.gmra.mxu0 %v7740_v20  ;;  %v615_v20 = vld [vmem:[%s7625_s8 + $0xbb8] sm:$0xff]  ;;  %v6850_v19 = vcombine.high %v587_v11, %v591_v14  ;;  %v6849_v26 = vcombine.low %v587_v11, %v591_v14 }
 0x305   : > { %6212 = vmatpush1.bf16.msra.mxu0 %v6945_v32  ;;  %6243 = vmatprep.mubr.bf16.mxu0 %v7758_v29  ;;  %v6922_v29 = vcombine.high %v659_v56, %v663_v16  ;;  %v6874_v47 = vcombine.high %v611_v42, %v615_v20  ;;  %v6873_v63 = vcombine.low %v611_v42, %v615_v20  ;;  %v627_v17 = vld [vmem:[%s7625_s8 + $0xc18] sm:$0xff] }
 0x306   : > { %6183 = vmatpush1.bf16.msra.mxu1 %v6769_v33  ;;  %6213 = vmatprep.subr.bf16.mxu0 %v6938_v34  ;;  %v631_v18 = vld [vmem:[%s7625_s8 + $0xc38] sm:$0xff] }
 0x307   : > { %6184 = vmatprep.subr.bf16.mxu1 %v6762_v37  ;;  %v579_v21 = vld [vmem:[%s7625_s8 + $0xa98] sm:$0xff]  ;;  %v6890_v27 = vcombine.high %v627_v17, %v631_v18  ;;  %v6889_v37 = vcombine.low %v627_v17, %v631_v18 }
 0x308   : > { %v583_v24 = vld [vmem:[%s7625_s8 + $0xab8] sm:$0xff] }
 0x309   : > { %6214 = vmatpush1.bf16.msra.mxu0 %v6937_v46  ;;  %v6842_v28 = vcombine.high %v579_v21, %v583_v24  ;;  %v747_v30 = vld [vmem:[%s7625_s8 + $0xfd8] sm:$0xff]  ;;  %v6841_v38 = vcombine.low %v579_v21, %v583_v24 }
 0x30a   : > { %6185 = vmatpush1.bf16.msra.mxu1 %v6761_v62  ;;  %6215 = vmatprep.subr.bf16.mxu0 %v6930_v55  ;;  %v751_v32 = vld [vmem:[%s7625_s8 + $0xff8] sm:$0xff] }
 0x30b   : > { %6186 = vmatprep.subr.bf16.mxu1 %v6882_v57  ;;  %v571_v33 = vld [vmem:[%s7625_s8 + $0xa58] sm:$0xff]  ;;  %v7010_v41 = vcombine.high %v747_v30, %v751_v32  ;;  %v7009_v57 = vcombine.low %v747_v30, %v751_v32 }
 0x30c   : > { %v575_v34 = vld [vmem:[%s7625_s8 + $0xa78] sm:$0xff] }
 0x30d   : > { %6216 = vmatpush1.bf16.msra.mxu0 %v6929_v31  ;;  %v6834_v48 = vcombine.high %v571_v33, %v575_v34  ;;  %v739_v50 = vld [vmem:[%s7625_s8 + $0xf98] sm:$0xff]  ;;  %v6833_v56 = vcombine.low %v571_v33, %v575_v34 }
 0x30e   : > { %6187 = vmatpush2.bf16.msra.mxu1 %v6881_v60  ;;  %6217 = vmatprep.subr.bf16.mxu0 %v6922_v29  ;;  %v743_v46 = vld [vmem:[%s7625_s8 + $0xfb8] sm:$0xff] }
 0x30f   : > { %6188 = vmatprep.subr.bf16.mxu1 %v6874_v47  ;;  %v563_v62 = vld [vmem:[%s7625_s8 + $0xa18] sm:$0xff]  ;;  %v7002_v16 = vcombine.high %v739_v50, %v743_v46  ;;  %v7001_v47 = vcombine.low %v739_v50, %v743_v46 }
 0x310   : > { %v567_v55 = vld [vmem:[%s7625_s8 + $0xa38] sm:$0xff] }
 0x311   : > { %6218 = vmatpush1.bf16.msra.mxu0 %v6921_v54  ;;  %v6826_v42 = vcombine.high %v563_v62, %v567_v55  ;;  %v731_v20 = vld [vmem:[%s7625_s8 + $0xf58] sm:$0xff]  ;;  %v6825_v44 = vcombine.low %v563_v62, %v567_v55 }
 0x312   : > { %6189 = vmatpush2.bf16.msra.mxu1 %v6873_v63  ;;  %6219 = vmatprep.subr.bf16.mxu0 %v6914_v5  ;;  %v735_v31 = vld [vmem:[%s7625_s8 + $0xf78] sm:$0xff] }
 0x313   : > { %6190 = vmatprep.subr.bf16.mxu1 %v6866_v0  ;;  %v811_v60 = vld [vmem:[%s7625_s8 + $0x11d8] sm:$0xff]  ;;  %v6994_v35 = vcombine.high %v731_v20, %v735_v31  ;;  %v6993_v0 = vcombine.low %v731_v20, %v735_v31 }
 0x314   : > { %v815_v29 = vld [vmem:[%s7625_s8 + $0x11f8] sm:$0xff] }
 0x315   : > { %6220 = vmatpush1.bf16.msra.mxu0 %v6913_v59  ;;  %v7074_v61 = vcombine.high %v811_v60, %v815_v29  ;;  %v723_v45 = vld [vmem:[%s7625_s8 + $0xf18] sm:$0xff]  ;;  %v7073_v1 = vcombine.low %v811_v60, %v815_v29 }
 0x316   : > { %6191 = vmatpush2.bf16.msra.mxu1 %v6865_v3  ;;  %6221 = vmatprep.subr.bf16.mxu0 %v6906_v6  ;;  %v727_v54 = vld [vmem:[%s7625_s8 + $0xf38] sm:$0xff] }
 0x317   : > { %6192 = vmatprep.subr.bf16.mxu1 %v6858_v8  ;;  %v803_v63 = vld [vmem:[%s7625_s8 + $0x1198] sm:$0xff]  ;;  %v6986_v52 = vcombine.high %v723_v45, %v727_v54  ;;  %v6985_v11 = vcombine.low %v723_v45, %v727_v54 }
 0x318   : > { %v807_v5 = vld [vmem:[%s7625_s8 + $0x11b8] sm:$0xff] }
 0x319   : > { %6222 = vmatpush1.bf16.msra.mxu0 %v6905_v12  ;;  %v7066_v2 = vcombine.high %v803_v63, %v807_v5  ;;  %v715_v51 = vld [vmem:[%s7625_s8 + $0xed8] sm:$0xff]  ;;  %v7065_v12 = vcombine.low %v803_v63, %v807_v5 }
 0x31a   : > { %6193 = vmatpush2.bf16.msra.mxu1 %v6857_v39  ;;  %6223 = vmatprep.subr.bf16.mxu0 %v6898_v13  ;;  %v719_v59 = vld [vmem:[%s7625_s8 + $0xef8] sm:$0xff] }
 0x31b   : > { %6194 = vmatprep.subr.bf16.mxu1 %v6850_v19  ;;  %v795_v6 = vld [vmem:[%s7625_s8 + $0x1158] sm:$0xff]  ;;  %v6978_v39 = vcombine.high %v715_v51, %v719_v59 }
 0x31c   : > { %v799_v8 = vld [vmem:[%s7625_s8 + $0x1178] sm:$0xff] }
 0x31d   : > { %6224 = vmatpush1.bf16.msra.mxu0 %v6897_v25  ;;  %v707_v18 = vld [vmem:[%s7625_s8 + $0xe98] sm:$0xff]  ;;  %v7057_v30 = vcombine.low %v795_v6, %v799_v8 }
 0x31e   : > { %6195 = vmatpush2.bf16.msra.mxu1 %v6849_v26  ;;  %6225 = vmatprep.subr.bf16.mxu0 %v6890_v27  ;;  %v711_v21 = vld [vmem:[%s7625_s8 + $0xeb8] sm:$0xff] }
 0x31f   : > { %6196 = vmatprep.subr.bf16.mxu1 %v6842_v28  ;;  %v787_v24 = vld [vmem:[%s7625_s8 + $0x1118] sm:$0xff]  ;;  %v6977_v28 = vcombine.low %v715_v51, %v719_v59  ;;  %v6970_v32 = vcombine.high %v707_v18, %v711_v21 }
 0x320   : > { %v791_v25 = vld [vmem:[%s7625_s8 + $0x1138] sm:$0xff] }
 0x321   : > { %6226 = vmatpush1.bf16.msra.mxu0 %v6889_v37  ;;  %v699_v34 = vld [vmem:[%s7625_s8 + $0xe58] sm:$0xff]  ;;  %v7049_v50 = vcombine.low %v787_v24, %v791_v25 }
 0x322   : > { %6197 = vmatpush2.bf16.msra.mxu1 %v6841_v38  ;;  %6227 = vmatprep.subr.bf16.mxu0 %v7010_v41  ;;  %v703_v37 = vld [vmem:[%s7625_s8 + $0xe78] sm:$0xff] }
 0x323   : > { %6198 = vmatprep.subr.bf16.mxu1 %v6834_v48  ;;  %v779_v38 = vld [vmem:[%s7625_s8 + $0x10d8] sm:$0xff]  ;;  %v6969_v48 = vcombine.low %v707_v18, %v711_v21  ;;  %v6962_v46 = vcombine.high %v699_v34, %v703_v37 }
 0x324   : > { %v783_v41 = vld [vmem:[%s7625_s8 + $0x10f8] sm:$0xff] }
 0x325   : > { %6228 = vmatpush2.bf16.msra.mxu0 %v7009_v57  ;;  %v7042_v62 = vcombine.high %v779_v38, %v783_v41  ;;  %v691_v55 = vld [vmem:[%s7625_s8 + $0xe18] sm:$0xff]  ;;  %v7041_v20 = vcombine.low %v779_v38, %v783_v41 }
 0x326   : > { %6199 = vmatpush2.bf16.msra.mxu1 %v6833_v56  ;;  %6229 = vmatprep.subr.bf16.mxu0 %v7002_v16  ;;  %v695_v57 = vld [vmem:[%s7625_s8 + $0xe38] sm:$0xff] }
 0x327   : > { %6200 = vmatprep.subr.bf16.mxu1 %v6826_v42  ;;  %v771_v56 = vld [vmem:[%s7625_s8 + $0x1098] sm:$0xff]  ;;  %v6961_v42 = vcombine.low %v699_v34, %v703_v37  ;;  %v6954_v31 = vcombine.high %v691_v55, %v695_v57 }
 0x328   : > { %v775_v16 = vld [vmem:[%s7625_s8 + $0x10b8] sm:$0xff] }
 0x329   : > { %6230 = vmatpush2.bf16.msra.mxu0 %v7001_v47  ;;  %v7034_v60 = vcombine.high %v771_v56, %v775_v16  ;;  %v939_v29 = vld [vmem:[%s7625_s8 + $0x15d8] sm:$0xff]  ;;  %v7033_v45 = vcombine.low %v771_v56, %v775_v16 }
 0x32a   : > { %6201 = vmatpush2.bf16.msra.mxu1 %v6825_v44  ;;  %6231 = vmatprep.subr.bf16.mxu0 %v6994_v35  ;;  %v943_v47 = vld [vmem:[%s7625_s8 + $0x15f8] sm:$0xff] }
 0x32b   : > { %6252 = vmatprep.subr.bf16.mxu1 %v7074_v61  ;;  %v763_v44 = vld [vmem:[%s7625_s8 + $0x1058] sm:$0xff]  ;;  %v6953_v61 = vcombine.low %v691_v55, %v695_v57  ;;  %v7202_v54 = vcombine.high %v939_v29, %v943_v47 }
 0x32c   : > { %v5917_v3 = vpop.f32.mrf.mxu0  ;;  %v767_v35 = vld [vmem:[%s7625_s8 + $0x1078] sm:$0xff] }
 0x32d   : > { %v5918_v58 = vadd.f32 %v5917_v3, %v8525_v43  ;;  %v5958_v10 = vpop.f32.mrf.mxu1  ;;  %6203 = vmatmul.mubr.bf16.vlgmr.msra.gmra.mxu1 %v7823_v36  ;;  %6232 = vmatpush2.bf16.msra.mxu0 %v6993_v0  ;;  %v7058_v43 = vcombine.high %v795_v6, %v799_v8  ;;  %v7026_v63 = vcombine.high %v763_v44, %v767_v35  ;;  %v931_v5 = vld [vmem:[%s7625_s8 + $0x1598] sm:$0xff] }
 0x32e   : > { %6253 = vmatpush1.bf16.msra.mxu1 %v7073_v1  ;;  %v5919_v14 = vpop.f32.mrf.mxu0  ;;  %6233 = vmatprep.subr.bf16.mxu0 %v6986_v52  ;;  %v935_v0 = vld [vmem:[%s7625_s8 + $0x15b8] sm:$0xff]  ;;  %v7025_v51 = vcombine.low %v763_v44, %v767_v35 }
 0x32f   : > { %v8598_v13 = vadd.f32 %v5958_v10, %v5918_v58  ;;  %v5920_v19 = vadd.f32 %v5919_v14, %v8532_v9  ;;  %v5960_v17 = vpop.f32.mrf.mxu1  ;;  %6254 = vmatprep.subr.bf16.mxu1 %v7066_v2  ;;  %6284 = vmatprep.mubr.bf16.mxu1 %v7845_v53  ;;  %v7050_v53 = vcombine.high %v787_v24, %v791_v25  ;;  %v755_v1 = vld [vmem:[%s7625_s8 + $0x1018] sm:$0xff] }
 0x330   : > { %v5921_v36 = vpop.f32.mrf.mxu0  ;;  %v759_v52 = vld [vmem:[%s7625_s8 + $0x1038] sm:$0xff]  ;;  %v7201_v2 = vcombine.low %v939_v29, %v943_v47  ;;  %v7194_v59 = vcombine.high %v931_v5, %v935_v0 }
 0x331   : > { %v8606_v26 = vadd.f32 %v5960_v17, %v5920_v19  ;;  %v5962_v27 = vpop.f32.mrf.mxu1  ;;  %6234 = vmatpush2.bf16.msra.mxu0 %v6985_v11  ;;  %v7018_v3 = vcombine.high %v755_v1, %v759_v52  ;;  %v923_v6 = vld [vmem:[%s7625_s8 + $0x1558] sm:$0xff]  ;;  %v7193_v11 = vcombine.low %v931_v5, %v935_v0  ;;  %v7017_v14 = vcombine.low %v755_v1, %v759_v52 }
 0x332   : > { %6255 = vmatpush1.bf16.msra.mxu1 %v7065_v12  ;;  %v5922_v9 = vpop.f32.mrf.mxu0  ;;  %6235 = vmatprep.subr.bf16.mxu0 %v6978_v39  ;;  %v927_v8 = vld [vmem:[%s7625_s8 + $0x1578] sm:$0xff] }
 0x333   : > { %v5963_v33 = vpop.f32.mrf.mxu1  ;;  %6256 = vmatprep.subr.bf16.mxu1 %v7058_v43  ;;  %v875_v58 = vld [vmem:[%s7625_s8 + $0x13d8] sm:$0xff]  ;;  %v7186_v12 = vcombine.high %v923_v6, %v927_v8  ;;  %v7185_v18 = vcombine.low %v923_v6, %v927_v8 }
 0x334   : > { %v879_v10 = vld [vmem:[%s7625_s8 + $0x13f8] sm:$0xff] }
 0x335   : > { %6236 = vmatpush2.bf16.msra.mxu0 %v6977_v28  ;;  %v7138_v39 = vcombine.high %v875_v58, %v879_v10  ;;  %v915_v19 = vld [vmem:[%s7625_s8 + $0x1518] sm:$0xff]  ;;  %v7137_v21 = vcombine.low %v875_v58, %v879_v10 }
 0x336   : > { %6257 = vmatpush1.bf16.msra.mxu1 %v7057_v30  ;;  %6237 = vmatprep.subr.bf16.mxu0 %v6970_v32  ;;  %v919_v17 = vld [vmem:[%s7625_s8 + $0x1538] sm:$0xff] }
 0x337   : > { %6258 = vmatprep.subr.bf16.mxu1 %v7050_v53  ;;  %v867_v43 = vld [vmem:[%s7625_s8 + $0x1398] sm:$0xff]  ;;  %v7177_v9 = vcombine.low %v915_v19, %v919_v17 }
 0x338   : > { %v907_v24 = vld [vmem:[%s7625_s8 + $0x14d8] sm:$0xff] }
 0x339   : > { %6238 = vmatpush2.bf16.msra.mxu0 %v6969_v48  ;;  %v911_v25 = vld [vmem:[%s7625_s8 + $0x14f8] sm:$0xff] }
 0x33a   : > { %6259 = vmatpush1.bf16.msra.mxu1 %v7049_v50  ;;  %6239 = vmatprep.subr.bf16.mxu0 %v6962_v46  ;;  %v859_v27 = vld [vmem:[%s7625_s8 + $0x1358] sm:$0xff]  ;;  %v7170_v32 = vcombine.high %v907_v24, %v911_v25  ;;  %v7169_v41 = vcombine.low %v907_v24, %v911_v25 }
 0x33b   : > { %6260 = vmatprep.subr.bf16.mxu1 %v7042_v62  ;;  %v863_v28 = vld [vmem:[%s7625_s8 + $0x1378] sm:$0xff] }
 0x33c   : > { %v7122_v33 = vcombine.high %v859_v27, %v863_v28  ;;  %v899_v53 = vld [vmem:[%s7625_s8 + $0x1498] sm:$0xff]  ;;  %v7121_v48 = vcombine.low %v859_v27, %v863_v28 }
 0x33d   : > { %6240 = vmatpush2.bf16.msra.mxu0 %v6961_v42  ;;  %v903_v34 = vld [vmem:[%s7625_s8 + $0x14b8] sm:$0xff] }
 0x33e   : > { %6261 = vmatpush1.bf16.msra.mxu1 %v7041_v20  ;;  %6241 = vmatprep.subr.bf16.mxu0 %v6954_v31  ;;  %v851_v37 = vld [vmem:[%s7625_s8 + $0x1318] sm:$0xff]  ;;  %v7162_v50 = vcombine.high %v899_v53, %v903_v34  ;;  %v7161_v16 = vcombine.low %v899_v53, %v903_v34 }
 0x33f   : > { %6262 = vmatprep.subr.bf16.mxu1 %v7034_v60  ;;  %v855_v38 = vld [vmem:[%s7625_s8 + $0x1338] sm:$0xff] }
 0x340   : > { %v7114_v46 = vcombine.high %v851_v37, %v855_v38  ;;  %v891_v62 = vld [vmem:[%s7625_s8 + $0x1458] sm:$0xff]  ;;  %v7113_v42 = vcombine.low %v851_v37, %v855_v38 }
 0x341   : > { %6242 = vmatpush2.bf16.msra.mxu0 %v6953_v61  ;;  %v895_v55 = vld [vmem:[%s7625_s8 + $0x1478] sm:$0xff] }
 0x342   : > { %6263 = vmatpush1.bf16.msra.mxu1 %v7033_v45  ;;  %6293 = vmatprep.subr.bf16.mxu0 %v7202_v54  ;;  %v843_v57 = vld [vmem:[%s7625_s8 + $0x12d8] sm:$0xff]  ;;  %v7154_v20 = vcombine.high %v891_v62, %v895_v55  ;;  %v7153_v35 = vcombine.low %v891_v62, %v895_v55 }
 0x343   : > { %6264 = vmatprep.subr.bf16.mxu1 %v7026_v63  ;;  %v847_v56 = vld [vmem:[%s7625_s8 + $0x12f8] sm:$0xff] }
 0x344   : > { %6244 = vmatmul.mubr.bf16.vlgmr.msra.gmra.mxu0 %v7834_v40  ;;  %v871_v40 = vld [vmem:[%s7625_s8 + $0x13b8] sm:$0xff]  ;;  %v7106_v31 = vcombine.high %v843_v57, %v847_v56  ;;  %v7105_v61 = vcombine.low %v843_v57, %v847_v56 }
 0x345   : > { %6294 = vmatpush1.bf16.msra.mxu0 %v7201_v2  ;;  %6325 = vmatprep.mubr.bf16.mxu0 %v7852_v49  ;;  %v7178_v49 = vcombine.high %v915_v19, %v919_v17  ;;  %v7130_v36 = vcombine.high %v867_v43, %v871_v40  ;;  %v7129_v30 = vcombine.low %v867_v43, %v871_v40  ;;  %v883_v60 = vld [vmem:[%s7625_s8 + $0x1418] sm:$0xff] }
 0x346   : > { %6265 = vmatpush1.bf16.msra.mxu1 %v7025_v51  ;;  %6295 = vmatprep.subr.bf16.mxu0 %v7194_v59  ;;  %v887_v29 = vld [vmem:[%s7625_s8 + $0x1438] sm:$0xff] }
 0x347   : > { %6266 = vmatprep.subr.bf16.mxu1 %v7018_v3  ;;  %v835_v47 = vld [vmem:[%s7625_s8 + $0x1298] sm:$0xff]  ;;  %v7146_v45 = vcombine.high %v883_v60, %v887_v29  ;;  %v7145_v52 = vcombine.low %v883_v60, %v887_v29 }
 0x348   : > { %v839_v44 = vld [vmem:[%s7625_s8 + $0x12b8] sm:$0xff] }
 0x349   : > { %6296 = vmatpush1.bf16.msra.mxu0 %v7193_v11  ;;  %v7098_v54 = vcombine.high %v835_v47, %v839_v44  ;;  %v1003_v63 = vld [vmem:[%s7625_s8 + $0x17d8] sm:$0xff]  ;;  %v7097_v2 = vcombine.low %v835_v47, %v839_v44 }
 0x34a   : > { %6267 = vmatpush1.bf16.msra.mxu1 %v7017_v14  ;;  %6297 = vmatprep.subr.bf16.mxu0 %v7186_v12  ;;  %v1007_v5 = vld [vmem:[%s7625_s8 + $0x17f8] sm:$0xff] }
 0x34b   : > { %6268 = vmatprep.subr.bf16.mxu1 %v7138_v39  ;;  %v827_v0 = vld [vmem:[%s7625_s8 + $0x1258] sm:$0xff]  ;;  %v7266_v51 = vcombine.high %v1003_v63, %v1007_v5  ;;  %v7265_v10 = vcombine.low %v1003_v63, %v1007_v5 }
 0x34c   : > { %v831_v1 = vld [vmem:[%s7625_s8 + $0x1278] sm:$0xff] }
 0x34d   : > { %6298 = vmatpush1.bf16.msra.mxu0 %v7185_v18  ;;  %v7090_v59 = vcombine.high %v827_v0, %v831_v1  ;;  %v995_v3 = vld [vmem:[%s7625_s8 + $0x1798] sm:$0xff]  ;;  %v7089_v11 = vcombine.low %v827_v0, %v831_v1 }
 0x34e   : > { %6269 = vmatpush2.bf16.msra.mxu1 %v7137_v21  ;;  %6299 = vmatprep.subr.bf16.mxu0 %v7178_v49  ;;  %v999_v6 = vld [vmem:[%s7625_s8 + $0x17b8] sm:$0xff] }
 0x34f   : > { %6270 = vmatprep.subr.bf16.mxu1 %v7130_v36  ;;  %v819_v8 = vld [vmem:[%s7625_s8 + $0x1218] sm:$0xff]  ;;  %v7258_v14 = vcombine.high %v995_v3, %v999_v6  ;;  %v7257_v40 = vcombine.low %v995_v3, %v999_v6 }
 0x350   : > { %v823_v58 = vld [vmem:[%s7625_s8 + $0x1238] sm:$0xff] }
 0x351   : > { %6300 = vmatpush1.bf16.msra.mxu0 %v7177_v9  ;;  %v7082_v12 = vcombine.high %v819_v8, %v823_v58  ;;  %v987_v39 = vld [vmem:[%s7625_s8 + $0x1758] sm:$0xff]  ;;  %v7081_v18 = vcombine.low %v819_v8, %v823_v58 }
 0x352   : > { %6271 = vmatpush2.bf16.msra.mxu1 %v7129_v30  ;;  %6301 = vmatprep.subr.bf16.mxu0 %v7170_v32  ;;  %v991_v19 = vld [vmem:[%s7625_s8 + $0x1778] sm:$0xff] }
 0x353   : > { %6272 = vmatprep.subr.bf16.mxu1 %v7122_v33  ;;  %v1051_v17 = vld [vmem:[%s7625_s8 + $0x1958] sm:$0xff]  ;;  %v7250_v21 = vcombine.high %v987_v39, %v991_v19  ;;  %v7249_v28 = vcombine.low %v987_v39, %v991_v19 }
 0x354   : > { %v1055_v43 = vld [vmem:[%s7625_s8 + $0x1978] sm:$0xff] }
 0x355   : > { %6302 = vmatpush1.bf16.msra.mxu0 %v7169_v41  ;;  %v7314_v49 = vcombine.high %v1051_v17, %v1055_v43  ;;  %v979_v36 = vld [vmem:[%s7625_s8 + $0x1718] sm:$0xff]  ;;  %v7313_v9 = vcombine.low %v1051_v17, %v1055_v43 }
 0x356   : > { %6273 = vmatpush2.bf16.msra.mxu1 %v7121_v48  ;;  %6303 = vmatprep.subr.bf16.mxu0 %v7162_v50  ;;  %v983_v24 = vld [vmem:[%s7625_s8 + $0x1738] sm:$0xff] }
 0x357   : > { %6274 = vmatprep.subr.bf16.mxu1 %v7114_v46  ;;  %v1043_v25 = vld [vmem:[%s7625_s8 + $0x1918] sm:$0xff]  ;;  %v7242_v30 = vcombine.high %v979_v36, %v983_v24  ;;  %v7241_v48 = vcombine.low %v979_v36, %v983_v24 }
 0x358   : > { %v1047_v27 = vld [vmem:[%s7625_s8 + $0x1938] sm:$0xff] }
 0x359   : > { %6304 = vmatpush1.bf16.msra.mxu0 %v7161_v16  ;;  %v7306_v32 = vcombine.high %v1043_v25, %v1047_v27  ;;  %v971_v33 = vld [vmem:[%s7625_s8 + $0x16d8] sm:$0xff]  ;;  %v7305_v46 = vcombine.low %v1043_v25, %v1047_v27 }
 0x35a   : > { %6275 = vmatpush2.bf16.msra.mxu1 %v7113_v42  ;;  %6305 = vmatprep.subr.bf16.mxu0 %v7154_v20  ;;  %v975_v53 = vld [vmem:[%s7625_s8 + $0x16f8] sm:$0xff] }
 0x35b   : > { %6276 = vmatprep.subr.bf16.mxu1 %v7106_v31  ;;  %v1035_v37 = vld [vmem:[%s7625_s8 + $0x18d8] sm:$0xff]  ;;  %v7234_v62 = vcombine.high %v971_v33, %v975_v53  ;;  %v7233_v60 = vcombine.low %v971_v33, %v975_v53 }
 0x35c   : > { %v1039_v38 = vld [vmem:[%s7625_s8 + $0x18f8] sm:$0xff] }
 0x35d   : > { %6306 = vmatpush1.bf16.msra.mxu0 %v7153_v35  ;;  %v7298_v57 = vcombine.high %v1035_v37, %v1039_v38  ;;  %v963_v56 = vld [vmem:[%s7625_s8 + $0x1698] sm:$0xff]  ;;  %v7297_v47 = vcombine.low %v1035_v37, %v1039_v38 }
 0x35e   : > { %6277 = vmatpush2.bf16.msra.mxu1 %v7105_v61  ;;  %6307 = vmatprep.subr.bf16.mxu0 %v7146_v45  ;;  %v967_v16 = vld [vmem:[%s7625_s8 + $0x16b8] sm:$0xff] }
 0x35f   : > { %6278 = vmatprep.subr.bf16.mxu1 %v7098_v54  ;;  %v1031_v20 = vld [vmem:[%s7625_s8 + $0x18b8] sm:$0xff]  ;;  %v7226_v44 = vcombine.high %v963_v56, %v967_v16  ;;  %v7225_v5 = vcombine.low %v963_v56, %v967_v16 }
 0x360   : > { %v955_v61 = vld [vmem:[%s7625_s8 + $0x1658] sm:$0xff] }
 0x361   : > { %6308 = vmatpush1.bf16.msra.mxu0 %v7145_v52  ;;  %v959_v45 = vld [vmem:[%s7625_s8 + $0x1678] sm:$0xff] }
 0x362   : > { %6279 = vmatpush2.bf16.msra.mxu1 %v7097_v2  ;;  %6309 = vmatprep.subr.bf16.mxu0 %v7266_v51  ;;  %v1019_v54 = vld [vmem:[%s7625_s8 + $0x1858] sm:$0xff]  ;;  %v7218_v1 = vcombine.high %v955_v61, %v959_v45  ;;  %v7217_v6 = vcombine.low %v955_v61, %v959_v45 }
 0x363   : > { %6280 = vmatprep.subr.bf16.mxu1 %v7090_v59  ;;  %v1023_v63 = vld [vmem:[%s7625_s8 + $0x1878] sm:$0xff] }
 0x364   : > { %v7282_v52 = vcombine.high %v1019_v54, %v1023_v63  ;;  %v947_v2 = vld [vmem:[%s7625_s8 + $0x1618] sm:$0xff]  ;;  %v7281_v8 = vcombine.low %v1019_v54, %v1023_v63 }
 0x365   : > { %6310 = vmatpush2.bf16.msra.mxu0 %v7265_v10  ;;  %v951_v51 = vld [vmem:[%s7625_s8 + $0x1638] sm:$0xff] }
 0x366   : > { %6281 = vmatpush2.bf16.msra.mxu1 %v7089_v11  ;;  %6311 = vmatprep.subr.bf16.mxu0 %v7258_v14  ;;  %v1011_v59 = vld [vmem:[%s7625_s8 + $0x1818] sm:$0xff]  ;;  %v7210_v58 = vcombine.high %v947_v2, %v951_v51  ;;  %v7209_v11 = vcombine.low %v947_v2, %v951_v51 }
 0x367   : > { %6282 = vmatprep.subr.bf16.mxu1 %v7082_v12  ;;  %v1015_v3 = vld [vmem:[%s7625_s8 + $0x1838] sm:$0xff] }
 0x368   : > { %v7274_v10 = vcombine.high %v1011_v59, %v1015_v3  ;;  %v7273_v14 = vcombine.low %v1011_v59, %v1015_v3 }
 0x369   : > { %6312 = vmatpush2.bf16.msra.mxu0 %v7257_v40 }
 0x36a   : > { %6283 = vmatpush2.bf16.msra.mxu1 %v7081_v18  ;;  %6313 = vmatprep.subr.bf16.mxu0 %v7250_v21  ;;  %v7390_v18 = vld [vmem:[%s8715_s0 + $0x30] ss:$0 sps:$4 sm:$0xff]  }
 0x36b   : > { %6338 = vmatprep.subr.bf16.mxu1 %v7314_v49 }
 0x36c   : > { %v5999_v34 = vpop.f32.mrf.mxu0 }
 0x36d   : > { %v8670_v41 = vpop.f32.mrf.mxu1  ;;  %6285 = vmatmul.mubr.bf16.vlgmr.msra.gmra.mxu1 %v7917_v4  ;;  %6314 = vmatpush2.bf16.msra.mxu0 %v7249_v28  ;;  %v1027_v4 = vld [vmem:[%s7625_s8 + $0x1898] sm:$0xff]  ;;  %v6000_v12 = vadd.f32 %v5999_v34, %v8598_v13  ;;  %v1088_v28 = vsub.s32 7, %v7990_v22 }
 0x36e   : > { %6339 = vmatpush1.bf16.msra.mxu1 %v7313_v9  ;;  %v6001_v50 = vpop.f32.mrf.mxu0  ;;  %6315 = vmatprep.subr.bf16.mxu0 %v7242_v30  ;;  %v7289_v0 = vcombine.low %v1027_v4, %v1031_v20  ;;  %v7391_v30 = vld [vmem:[%s7631_s25] sm:$0xff] }
 0x36f   : > { %v6042_v55 = vpop.f32.mrf.mxu1  ;;  %6340 = vmatprep.subr.bf16.mxu1 %v7306_v32  ;;  %6366 = vmatprep.mubr.bf16.mxu1 %v7493_v23  ;;  %v7290_v23 = vcombine.high %v1027_v4, %v1031_v20  ;;  %v6002_v39 = vadd.f32 %v6001_v50, %v8606_v26  ;;  %v6041_v19 = vadd.f32 %v8670_v41, %v6000_v12 }
 0x370   : > { %v6003_v42 = vpop.f32.mrf.mxu0  ;;  %v1089_v32 = vrot.slane %v7391_v30, %v1088_v28 }
 0x371   : > { %v6044_v31 = vpop.f32.mrf.mxu1  ;;  %6316 = vmatpush2.bf16.msra.mxu0 %v7241_v48  ;;  %v6043_v43 = vadd.f32 %v6042_v55, %v6002_v39 }
 0x372   : > { %6341 = vmatpush1.bf16.msra.mxu1 %v7305_v46  ;;  %v6004_v29 = vpop.f32.mrf.mxu0  ;;  %6317 = vmatprep.subr.bf16.mxu0 %v7234_v62 }
 0x373   : > { %v6045_v35 = vpop.f32.mrf.mxu1  ;;  %6342 = vmatprep.subr.bf16.mxu1 %v7298_v57 }
 0x375   : > { %6318 = vmatpush2.bf16.msra.mxu0 %v7233_v60 }
 0x376   : > { %6343 = vmatpush1.bf16.msra.mxu1 %v7297_v47  ;;  %6319 = vmatprep.subr.bf16.mxu0 %v7226_v44 }
 0x377   : > { %6344 = vmatprep.subr.bf16.mxu1 %v7290_v23 }
 0x379   : > { %6320 = vmatpush2.bf16.msra.mxu0 %v7225_v5 }
 0x37a   : > { %6345 = vmatpush1.bf16.msra.mxu1 %v7289_v0  ;;  %6321 = vmatprep.subr.bf16.mxu0 %v7218_v1 }
 0x37b   : > { %6346 = vmatprep.subr.bf16.mxu1 %v7282_v52 }
 0x37d   : > { %6322 = vmatpush2.bf16.msra.mxu0 %v7217_v6 }
 0x37e   : > { %6347 = vmatpush1.bf16.msra.mxu1 %v7281_v8  ;;  %6323 = vmatprep.subr.bf16.mxu0 %v7210_v58 }
 0x37f   : > { %6348 = vmatprep.subr.bf16.mxu1 %v7274_v10 }
 0x381   : > { %6324 = vmatpush2.bf16.msra.mxu0 %v7209_v11 }
 0x382   : > { %6349 = vmatpush1.bf16.msra.mxu1 %v7273_v14 }
 0x384   : > { %v6081_v17 = vpop.f32.mrf.mxu0  ;;  %6326 = vmatmul.mubr.bf16.vlgmr.msra.gmra.mxu0 %v7923_v7  ;;  %v1084_v7 = vsub.s32 6, %v7990_v22 }
 0x385   : > { %v6082_v40 = vadd.f32 %v6081_v17, %v6041_v19  ;;  %7318 = vmatmul.mubr.msk.bf16.vlgmr.msra.gmra.mxu1 %vm5223_vm0, %v7390_v18 }
 0x386   : > { %v6083_v13 = vpop.f32.mrf.mxu0  ;;  %v1085_v9 = vrot.slane %v8516_v15, %v1084_v7 }
 0x387   : > { %6379 = vst [vmem:[%s8195_s6 + $0x20] sm:$0xff] %v6082_v40  ;;  %v6084_v21 = vadd.f32 %v6083_v13, %v6043_v43 }
 0x388   : > { %v6085_v26 = vpop.f32.mrf.mxu0 }
 0x389   : > { %6380 = vst [vmem:[%s8195_s6 + $0x28] sm:$0xff] %v6084_v21 }
 0x38a   : > { %v6086_v49 = vpop.f32.mrf.mxu0 }
 0x3ad   : > { %v6122_v36 = vpop.f32.mrf.mxu1 }
 0x3ae   : > { %v6123_v33 = vadd.f32 %v6122_v36, %v1085_v9 }
 0x3af   : > { %v6124_v24 = vpop.f32.mrf.mxu1 }
 0x3b0   : > { %v6125_v34 = vadd.f32 %v6124_v24, %v1089_v32 }
 0x3b1   : > { %v6126_v25 = vpop.f32.mrf.mxu1 }
 0x3b3   : > { %v6127_v27 = vpop.f32.mrf.mxu1 }
 0x3c4   : > { %v6163_v53 = vpop.f32.mrf.mxu0 }
 0x3c5   : > { %v6164_v37 = vadd.f32 %v6163_v53, %v6123_v33 }
 0x3c6   : > { %v6165_v38 = vpop.f32.mrf.mxu0 }
 0x3c7   : > { %v6166_v41 = vadd.f32 %v6165_v38, %v6125_v34 }
 0x3c8   : > { %v6167_v48 = vpop.f32.mrf.mxu0 }
 0x3ca   : > { %v6168_v50 = vpop.f32.mrf.mxu0 }
 0x3ed   : > { %v6204_v46 = vpop.f32.mrf.mxu1 }
 0x3ee   : > { %v6205_v62 = vadd.f32 %v6204_v46, %v6164_v37 }
 0x3ef   : > { %v6206_v55 = vpop.f32.mrf.mxu1 }
 0x3f0   : > { %v6207_v57 = vadd.f32 %v6206_v55, %v6166_v41 }
 0x3f1   : > { %v6208_v56 = vpop.f32.mrf.mxu1 }
 0x3f3   : > { %v6209_v16 = vpop.f32.mrf.mxu1 }
 0x404   : > { %v6245_v42 = vpop.f32.mrf.mxu0 }
 0x405   : > { %v6246_v47 = vadd.f32 %v6245_v42, %v6205_v62 }
 0x406   : > { %v6247_v22 = vpop.f32.mrf.mxu0 }
 0x407   : > { %v6248_v44 = vadd.f32 %v6247_v22, %v6207_v57 }
 0x408   : > { %v6249_v4 = vpop.f32.mrf.mxu0 }
 0x40a   : > { %v6250_v15 = vpop.f32.mrf.mxu0 }
 0x42d   : > { %v6286_v20 = vpop.f32.mrf.mxu1 }
 0x42e   : > { %v6287_v35 = vadd.f32 %v6286_v20, %v6246_v47 }
 0x42f   : > { %v6288_v31 = vpop.f32.mrf.mxu1 }
 0x430   : > { %v6289_v61 = vadd.f32 %v6288_v31, %v6248_v44 }
 0x431   : > { %v6290_v60 = vpop.f32.mrf.mxu1 }
 0x433   : > { %v6291_v29 = vpop.f32.mrf.mxu1 }
 0x444   : > { %v6327_v23 = vpop.f32.mrf.mxu0 }
 0x445   : > { %v6328_v45 = vadd.f32 %v6327_v23, %v6287_v35  ;;  %v6368_v54 = vpop.f32.mrf.mxu1 }
 0x446   : > { %v6329_v63 = vpop.f32.mrf.mxu0 }
 0x447   : > { %v6369_v5 = vadd.f32 %v6368_v54, %v6328_v45  ;;  %v6330_v0 = vadd.f32 %v6329_v63, %v6289_v61  ;;  %v6370_v1 = vpop.f32.mrf.mxu1 }
 0x448   : > { %v6331_v52 = vpop.f32.mrf.mxu0 }
 0x449   : > { %6381 = vst [vmem:[%s8195_s6 + $0x30] sm:$0xff] %v6369_v5  ;;  %v6371_v2 = vadd.f32 %v6370_v1, %v6330_v0  ;;  %v6372_v51 = vpop.f32.mrf.mxu1 }
 0x44a   : > { %v6332_v59 = vpop.f32.mrf.mxu0 }
 0x44b   : > { %6382 = vst [vmem:[%s8195_s6 + $0x38] sm:$0xff] %v6371_v2  ;;  %v6373_v3 = vpop.f32.mrf.mxu1 }
 0x44c PF: > { %p16_p8 = scmp.ge.s32.totalorder %s7534_s17, 11   ;;  %s8725_s12 = smov %s7478_s13 }
 0x44d   : > { %s8726_s13 = smov %s7482_s14  ;;  %s8727_s14 = smov %s7544_s20 }
 0x44e   : > { %s8728_s15 = smov %s7534_s17  ;;  %18 = sbr.rel (!%p16_p8) target bundleno = 5 (0x5), region = 85 }
 0x453   :  { %6405 = vsyncpa [#allocation3], 1 }
 0x454   :  { %6407 = vsyncpa [#allocation3 + $0x1], 1 }
 0x455   :  { %6408 = vsyncpa [#allocation5], 1 }
 0x456   :  { %6410 = vsyncpa [#allocation5 + $0x1], 1 }

</bundles_post_ra>
